<compile_context>
chip_gen: v7x
topology: tpu7x:2x2x1
jax: 0.10.0
libtpu: 0.0.40
codegen_flags: <defaults>
</compile_context>

<pallas_src>
import numpy as np
import jax
import jax.numpy as jnp
from jax import lax
from jax.experimental import pallas as pl
from jax.experimental.pallas import tpu as pltpu

KSIZE = 3
C1_OUT = 32
C2_OUT = 64
POOL1 = 13          # spatial after conv1 (26x26) + 2x2 pool
POOL2 = 5           # spatial after conv2 (11x11) + 2x2 pool
CONV2_HW = 11       # conv2 output spatial (pre-pool)
P1_PAD = 176        # 13*13 = 169 rows, padded to a multiple of 8 per image
HIDDEN = 128
NCLASS = 10
FEAT = C2_OUT * POOL2 * POOL2  # 1600

# conv2 3x3 tap offsets in the row-major flattened 13x13 pooled1 grid
TAP_OFFSETS = tuple(dy * POOL1 + dx for dy in range(KSIZE) for dx in range(KSIZE))


def _round_up(x, m):
    return (x + m - 1) // m * m


# ---------------------------------------------------------------------------
# Fused Pallas kernel: conv1+pool -> conv2+pool -> flatten -> fc1 -> fc2
# ---------------------------------------------------------------------------
def fused_forward_kernel(win_ref, w1_ref, b1_ref, w2_ref, b2_ref, sel_ref,
                         wf1_ref, bf1_ref, wf2_ref, bf2_ref, o_ref,
                         p1s_ref, a2_ref, p2s_ref, feat_ref):
    B = o_ref.shape[0]
    L = a2_ref.shape[0]        # rows covering all valid conv2 positions
    g2 = p2s_ref.shape[0]      # padded rows per conv2 pool-offset group

    # ---- conv1 + 2x2 pool: ONE (B*176,16)x(16,128) matmul. The 4 pool-offset
    # groups live in 32-lane column blocks; pool-max over those blocks, then
    # bias + ReLU (both commute with max).  Stored once as bf16.
    h1 = jnp.dot(win_ref[...], w1_ref[...], preferred_element_type=jnp.float32)
    m1 = jnp.maximum(jnp.maximum(h1[:, 0:C1_OUT], h1[:, C1_OUT:2 * C1_OUT]),
                     jnp.maximum(h1[:, 2 * C1_OUT:3 * C1_OUT],
                                 h1[:, 3 * C1_OUT:4 * C1_OUT]))
    p1s_ref[...] = jnp.maximum(m1 + b1_ref[...], 0.0).astype(jnp.bfloat16)

    # ---- conv2: K-concat.  Stage the 9 shifted pooled1 slices into one
    # (L, 288) bf16 operand (9 lane-offset copies), then a single K=288
    # matmul with f32 accumulation (no per-tap pops / adds).
    for tap, t in enumerate(TAP_OFFSETS):
        a2_ref[:, pl.ds(tap * C1_OUT, C1_OUT)] = p1s_ref[pl.ds(t, L), :]
    h2 = jnp.dot(a2_ref[...], w2_ref[...], preferred_element_type=jnp.float32)

    # ---- 2x2 max-pool of conv2 via a 0/1 bf16 selection matmul (exact for
    # 0/1 weights), max over the 4 pool-offset row blocks, bias + ReLU.
    e = jnp.dot(sel_ref[...], h2.astype(jnp.bfloat16),
                preferred_element_type=jnp.float32)
    m2 = jnp.maximum(jnp.maximum(e[0:g2], e[g2:2 * g2]),
                     jnp.maximum(e[2 * g2:3 * g2], e[3 * g2:4 * g2]))
    p2s_ref[...] = jnp.maximum(m2 + b2_ref[...], 0.0).astype(jnp.bfloat16)

    # ---- flatten: rows (s, b) -> lanes (s*64 + ch); fc1 weight is host-
    # permuted to this (s, ch) order so PyTorch's (C,H,W) flatten is matched.
    # bf16 end-to-end: no cast before fc1, half the masked-store bytes.
    for s in range(POOL2 * POOL2):
        feat_ref[:, pl.ds(s * C2_OUT, C2_OUT)] = p2s_ref[pl.ds(s * B, B), :]

    # ---- fc1 + ReLU + fc2 ---------------------------------------------------
    h = jnp.dot(feat_ref[...], wf1_ref[...], preferred_element_type=jnp.float32)
    h = jnp.maximum(h + bf1_ref[...], 0.0)
    o_ref[...] = (jnp.dot(h.astype(jnp.bfloat16), wf2_ref[...],
                          preferred_element_type=jnp.float32) + bf2_ref[...])


# ---------------------------------------------------------------------------
# Host-side glue (cheap XLA ops / trace-time constants)
# ---------------------------------------------------------------------------
def _conv1_windows(img):
    """img: (B, 28, 28) -> (B*176, 16) bf16.

    One row per pooled-output position p = i*13 + j (padded 169 -> 176 with
    zeros), containing the flattened 4x4 input window starting at (2i, 2j).
    That window covers all four conv1 3x3 patches of the 2x2 pool group.
    """
    B = img.shape[0]
    ij = jnp.arange(POOL1)
    d = jnp.arange(4)
    rows = (2 * ij)[:, None, None, None] + d[None, None, :, None]   # (13,1,4,1)
    cols = (2 * ij)[None, :, None, None] + d[None, None, None, :]   # (1,13,1,4)
    win = img[:, rows, cols].reshape(B, POOL1 * POOL1, 16)          # (B,169,16)
    win = jnp.pad(win, ((0, 0), (0, P1_PAD - POOL1 * POOL1), (0, 0)))
    return win.reshape(B * P1_PAD, 16).astype(jnp.bfloat16)


def _pack_conv1_weight(w_c1):
    """(32,1,3,3) -> (16,128) bf16: 3x3 kernel embedded at each of the 4 pool
    offsets (u,v) of the 4x4 window; group g=2u+v -> column block [g*32,(g+1)*32)."""
    w = np.asarray(w_c1)                      # (32, 1, 3, 3)
    big = np.zeros((16, 4 * C1_OUT), np.float32)
    for u in range(2):
        for v in range(2):
            g = 2 * u + v
            for dy in range(KSIZE):
                for dx in range(KSIZE):
                    big[(u + dy) * 4 + (v + dx),
                        g * C1_OUT:(g + 1) * C1_OUT] = w[:, 0, dy, dx]
    return jnp.asarray(big, jnp.bfloat16)


def _pool2_selection(B, g2, L):
    """0/1 matrix gathering the 4 pool-offset groups of conv2's output rows."""
    sel = np.zeros((4 * g2, L), np.float32)
    for u in range(2):
        for v in range(2):
            g = 2 * u + v
            for b in range(B):
                for i in range(POOL2):
                    for j in range(POOL2):
                        row = g * g2 + (i * POOL2 + j) * B + b
                        col = b * P1_PAD + (2 * i + u) * POOL1 + (2 * j + v)
                        sel[row, col] = 1.0
    return sel


def pack_params(params):
    """One-time weight packing (transposes, flatten-order permute, bf16 cast)."""
    (w_c1, b_c1, w_c2, b_c2, w_f1, b_f1, w_f2, b_f2) = params
    bf16, f32 = jnp.bfloat16, jnp.float32
    w1 = _pack_conv1_weight(w_c1)                                       # (16,128)
    # conv2 weight in K-concat order: row = tap*32 + ci, tap = dy*3 + dx
    w2 = jnp.transpose(w_c2, (2, 3, 1, 0)).reshape(
        KSIZE * KSIZE * C1_OUT, C2_OUT).astype(bf16)                    # (288,64)
    # fc1 weight permuted from PyTorch (ch*25 + s) order to (s*64 + ch) order
    wf1 = jnp.transpose(w_f1.reshape(HIDDEN, C2_OUT, POOL2 * POOL2), (2, 1, 0))
    wf1 = wf1.reshape(FEAT, HIDDEN).astype(bf16)
    wf2 = jnp.transpose(w_f2).astype(bf16)
    return (w1, b_c1.reshape(1, C1_OUT).astype(f32),
            w2, b_c2.reshape(1, C2_OUT).astype(f32),
            wf1, b_f1.reshape(1, HIDDEN).astype(f32),
            wf2, b_f2.reshape(1, NCLASS).astype(f32))


def mnist_cnn_forward(x_nchw, packed):
    (w1, b1, w2, b2, wf1, bf1, wf2, bf2) = packed
    B = x_nchw.shape[0]
    g2 = _round_up(B * POOL2 * POOL2, 8)
    max_p = (CONV2_HW - 1) * POOL1 + (CONV2_HW - 1)      # last valid conv2 row
    L = (B - 1) * P1_PAD + _round_up(max_p + 1, 8)       # 320 for B=2
    # Padded pooled1 rows (169..175 per image) hold relu(bias) != 0, but they
    # are never read for VALID conv2 positions (taps stay within 0..168) and
    # `sel` only selects valid rows; this assert guards the staged slices.
    assert L + max(TAP_OFFSETS) <= B * P1_PAD

    win = _conv1_windows(x_nchw[:, 0])                   # (B*176, 16) bf16
    sel = jnp.asarray(_pool2_selection(B, g2, L), jnp.bfloat16)  # 0/1 exact in bf16

    return pl.pallas_call(
        fused_forward_kernel,
        out_shape=jax.ShapeDtypeStruct((B, NCLASS), jnp.float32),
        grid=(1,),
        in_specs=[
            pl.BlockSpec(win.shape, lambda i: (0, 0)),
            pl.BlockSpec(w1.shape, lambda i: (0, 0)),
            pl.BlockSpec(b1.shape, lambda i: (0, 0)),
            pl.BlockSpec(w2.shape, lambda i: (0, 0)),
            pl.BlockSpec(b2.shape, lambda i: (0, 0)),
            pl.BlockSpec(sel.shape, lambda i: (0, 0)),
            pl.BlockSpec(wf1.shape, lambda i: (0, 0)),
            pl.BlockSpec(bf1.shape, lambda i: (0, 0)),
            pl.BlockSpec(wf2.shape, lambda i: (0, 0)),
            pl.BlockSpec(bf2.shape, lambda i: (0, 0)),
        ],
        out_specs=pl.BlockSpec((B, NCLASS), lambda i: (0, 0)),
        scratch_shapes=[
            pltpu.VMEM((B * P1_PAD, C1_OUT), jnp.bfloat16),          # pooled1
            pltpu.VMEM((L, KSIZE * KSIZE * C1_OUT), jnp.bfloat16),   # conv2 K-concat
            pltpu.VMEM((g2, C2_OUT), jnp.bfloat16),                  # pooled2
            pltpu.VMEM((B, FEAT), jnp.bfloat16),                     # flattened feats
        ],
        compiler_params=pltpu.CompilerParams(dimension_semantics=("arbitrary",)),
    )(win, w1, b1, w2, b2, sel, wf1, bf1, wf2, bf2)


# ---------------------------------------------------------------------------
# Pure-JAX reference (same math, XLA conv ops, f32 HIGHEST) for validation
# ---------------------------------------------------------------------------
def reference_forward(x_nchw, params):
    (w_c1, b_c1, w_c2, b_c2, w_f1, b_f1, w_f2, b_f2) = params
    dn = ("NCHW", "OIHW", "NCHW")
    y = lax.conv_general_dilated(
        x_nchw, w_c1, (1, 1), "VALID", dimension_numbers=dn,
        precision=lax.Precision.HIGHEST) + b_c1[None, :, None, None]
    y = jnp.maximum(y, 0.0)
    y = lax.reduce_window(y, -jnp.inf, lax.max, (1, 1, 2, 2), (1, 1, 2, 2), "VALID")
    y = lax.conv_general_dilated(
        y, w_c2, (1, 1), "VALID", dimension_numbers=dn,
        precision=lax.Precision.HIGHEST) + b_c2[None, :, None, None]
    y = jnp.maximum(y, 0.0)
    y = lax.reduce_window(y, -jnp.inf, lax.max, (1, 1, 2, 2), (1, 1, 2, 2), "VALID")
    y = y.reshape(y.shape[0], -1)
    y = jnp.maximum(y @ w_f1.T + b_f1, 0.0)
    return y @ w_f2.T + b_f2


# ---------------------------------------------------------------------------
def init_params(key):
    ks = jax.random.split(key, 8)
    f32 = jnp.float32
    w_c1 = jax.random.normal(ks[0], (32, 1, 3, 3), f32) * (1.0 / 3.0)
    b_c1 = jax.random.normal(ks[1], (32,), f32) * 0.05
    w_c2 = jax.random.normal(ks[2], (64, 32, 3, 3), f32) * (1.0 / jnp.sqrt(288.0))
    b_c2 = jax.random.normal(ks[3], (64,), f32) * 0.05
    w_f1 = jax.random.normal(ks[4], (128, 64 * 5 * 5), f32) * (1.0 / jnp.sqrt(1600.0))
    b_f1 = jax.random.normal(ks[5], (128,), f32) * 0.05
    w_f2 = jax.random.normal(ks[6], (10, 128), f32) * (1.0 / jnp.sqrt(128.0))
    b_f2 = jax.random.normal(ks[7], (10,), f32) * 0.05
    return (w_c1, b_c1, w_c2, b_c2, w_f1, b_f1, w_f2, b_f2)


if __name__ == "__main__":
    key = jax.random.PRNGKey(0)
    k_x, k_p = jax.random.split(key)
    params = init_params(k_p)

    # MNIST geometry is fixed by fc1 (64*5*5) -> spatial must be 28x28; batch=2.
    x = jax.random.normal(k_x, (2, 1, 28, 28), jnp.float32)

    packed = pack_params(params)                 # one-time weight packing
    out = jax.jit(mnist_cnn_forward)(x, packed)
    out = jax.block_until_ready(out)

    ref = reference_forward(x, params)
    assert out.shape == (2, 10) and out.dtype == jnp.float32
    max_diff = jnp.max(jnp.abs(out - ref))
    # bf16 matmul operands / bf16-staged intermediates (f32 accumulation)
    # vs f32-HIGHEST reference -> loose tolerance, still catches layout bugs.
    assert jnp.allclose(out, ref, atol=5e-2, rtol=5e-2), f"max abs diff {max_diff}"

    print("KERNEL_OK")
</pallas_src>

<mosaic_0001>
module attributes {stable_mosaic.version = 11 : i64} {
  func.func @fused_forward_kernel(%arg0: i32, %arg1: memref<352x16xbf16, #tpu.memory_space<vmem>>, %arg2: memref<16x128xbf16, #tpu.memory_space<vmem>>, %arg3: memref<1x32xf32, #tpu.memory_space<vmem>>, %arg4: memref<288x64xbf16, #tpu.memory_space<vmem>>, %arg5: memref<1x64xf32, #tpu.memory_space<vmem>>, %arg6: memref<224x320xbf16, #tpu.memory_space<vmem>>, %arg7: memref<1600x128xbf16, #tpu.memory_space<vmem>>, %arg8: memref<1x128xf32, #tpu.memory_space<vmem>>, %arg9: memref<128x10xbf16, #tpu.memory_space<vmem>>, %arg10: memref<1x10xf32, #tpu.memory_space<vmem>>, %arg11: memref<2x10xf32, #tpu.memory_space<vmem>>, %arg12: memref<352x32xbf16, #tpu.memory_space<vmem>>, %arg13: memref<320x288xbf16, #tpu.memory_space<vmem>>, %arg14: memref<56x64xbf16, #tpu.memory_space<vmem>>, %arg15: memref<2x1600xbf16, #tpu.memory_space<vmem>>) attributes {dimension_semantics = [#tpu.dimension_semantics<arbitrary>], iteration_bounds = array<i64: 1>, scalar_prefetch = 0 : i64, scratch_operands = 4 : i64, tpu.core_type = #tpu.core_type<tc>, window_params = [{pipeline_mode = #tpu.pipeline_mode<synchronous>, transform_indices = @transform_0, window_bounds = array<i64: 352, 16>}, {pipeline_mode = #tpu.pipeline_mode<synchronous>, transform_indices = @transform_1, window_bounds = array<i64: 16, 128>}, {pipeline_mode = #tpu.pipeline_mode<synchronous>, transform_indices = @transform_2, window_bounds = array<i64: 1, 32>}, {pipeline_mode = #tpu.pipeline_mode<synchronous>, transform_indices = @transform_3, window_bounds = array<i64: 288, 64>}, {pipeline_mode = #tpu.pipeline_mode<synchronous>, transform_indices = @transform_4, window_bounds = array<i64: 1, 64>}, {pipeline_mode = #tpu.pipeline_mode<synchronous>, transform_indices = @transform_5, window_bounds = array<i64: 224, 320>}, {pipeline_mode = #tpu.pipeline_mode<synchronous>, transform_indices = @transform_6, window_bounds = array<i64: 1600, 128>}, {pipeline_mode = #tpu.pipeline_mode<synchronous>, transform_indices = @transform_7, window_bounds = array<i64: 1, 128>}, {pipeline_mode = #tpu.pipeline_mode<synchronous>, transform_indices = @transform_8, window_bounds = array<i64: 128, 10>}, {pipeline_mode = #tpu.pipeline_mode<synchronous>, transform_indices = @transform_9, window_bounds = array<i64: 1, 10>}, {pipeline_mode = #tpu.pipeline_mode<synchronous>, transform_indices = @transform_10, window_bounds = array<i64: 2, 10>}]} {
    %c0 = arith.constant 0 : index
    %c0_0 = arith.constant 0 : index
    %0 = vector.load %arg1[%c0, %c0_0] : memref<352x16xbf16, #tpu.memory_space<vmem>>, vector<352x16xbf16>
    %c0_1 = arith.constant 0 : index
    %c0_2 = arith.constant 0 : index
    %1 = vector.load %arg2[%c0_1, %c0_2] : memref<16x128xbf16, #tpu.memory_space<vmem>>, vector<16x128xbf16>
    %cst = arith.constant dense<0.000000e+00> : vector<352x128xf32>
    %2 = tpu.matmul %0, %1, %cst {dimension_numbers = #tpu.dot_dimension_numbers<[1], [0], [0], [1], [0, 0, 1, 1], [], []>} : vector<352x16xbf16>, vector<16x128xbf16>, vector<352x128xf32> -> vector<352x128xf32>
    %3 = vector.extract_strided_slice %2 {offsets = [0, 0], sizes = [352, 32], strides = [1, 1]} : vector<352x128xf32> to vector<352x32xf32>
    %4 = vector.extract_strided_slice %2 {offsets = [0, 32], sizes = [352, 32], strides = [1, 1]} : vector<352x128xf32> to vector<352x32xf32>
    %5 = arith.maximumf %3, %4 : vector<352x32xf32>
    %6 = vector.extract_strided_slice %2 {offsets = [0, 64], sizes = [352, 32], strides = [1, 1]} : vector<352x128xf32> to vector<352x32xf32>
    %7 = vector.extract_strided_slice %2 {offsets = [0, 96], sizes = [352, 32], strides = [1, 1]} : vector<352x128xf32> to vector<352x32xf32>
    %8 = arith.maximumf %6, %7 : vector<352x32xf32>
    %9 = arith.maximumf %5, %8 : vector<352x32xf32>
    %c0_3 = arith.constant 0 : index
    %c0_4 = arith.constant 0 : index
    %10 = vector.load %arg3[%c0_3, %c0_4] : memref<1x32xf32, #tpu.memory_space<vmem>>, vector<1x32xf32>
    %11 = vector.broadcast %10 : vector<1x32xf32> to vector<352x32xf32>
    %12 = arith.addf %9, %11 : vector<352x32xf32>
    %cst_5 = arith.constant 0.000000e+00 : f32
    %13 = vector.broadcast %cst_5 : f32 to vector<352x32xf32>
    %14 = arith.maximumf %12, %13 : vector<352x32xf32>
    %15 = arith.truncf %14 : vector<352x32xf32> to vector<352x32xbf16>
    %c0_6 = arith.constant 0 : index
    %c0_7 = arith.constant 0 : index
    %16 = vector.load %arg12[%c0_6, %c0_7] : memref<352x32xbf16, #tpu.memory_space<vmem>>, vector<352x32xbf16>
    tpu.vector_store %arg12[%c0_6, %c0_7], %15 {strides = array<i32>} : memref<352x32xbf16, #tpu.memory_space<vmem>>, vector<352x32xbf16>,
    %c0_8 = arith.constant 0 : index
    %c0_9 = arith.constant 0 : index
    %17 = vector.load %arg12[%c0_8, %c0_9] : memref<352x32xbf16, #tpu.memory_space<vmem>>, vector<320x32xbf16>
    %c0_10 = arith.constant 0 : index
    %c0_11 = arith.constant 0 : index
    %18 = vector.load %arg13[%c0_10, %c0_11] : memref<320x288xbf16, #tpu.memory_space<vmem>>, vector<320x32xbf16>
    tpu.vector_store %arg13[%c0_10, %c0_11], %17 {strides = array<i32>} : memref<320x288xbf16, #tpu.memory_space<vmem>>, vector<320x32xbf16>,
    %c1 = arith.constant 1 : index
    %c0_12 = arith.constant 0 : index
    %19 = vector.load %arg12[%c1, %c0_12] : memref<352x32xbf16, #tpu.memory_space<vmem>>, vector<320x32xbf16>
    %c0_13 = arith.constant 0 : index
    %c32 = arith.constant 32 : index
    %20 = vector.load %arg13[%c0_13, %c32] : memref<320x288xbf16, #tpu.memory_space<vmem>>, vector<320x32xbf16>
    tpu.vector_store %arg13[%c0_13, %c32], %19 {strides = array<i32>} : memref<320x288xbf16, #tpu.memory_space<vmem>>, vector<320x32xbf16>,
    %c2 = arith.constant 2 : index
    %c0_14 = arith.constant 0 : index
    %21 = vector.load %arg12[%c2, %c0_14] : memref<352x32xbf16, #tpu.memory_space<vmem>>, vector<320x32xbf16>
    %c0_15 = arith.constant 0 : index
    %c64 = arith.constant 64 : index
    %22 = vector.load %arg13[%c0_15, %c64] : memref<320x288xbf16, #tpu.memory_space<vmem>>, vector<320x32xbf16>
    tpu.vector_store %arg13[%c0_15, %c64], %21 {strides = array<i32>} : memref<320x288xbf16, #tpu.memory_space<vmem>>, vector<320x32xbf16>,
    %c13 = arith.constant 13 : index
    %c0_16 = arith.constant 0 : index
    %23 = vector.load %arg12[%c13, %c0_16] : memref<352x32xbf16, #tpu.memory_space<vmem>>, vector<320x32xbf16>
    %c0_17 = arith.constant 0 : index
    %c96 = arith.constant 96 : index
    %24 = vector.load %arg13[%c0_17, %c96] : memref<320x288xbf16, #tpu.memory_space<vmem>>, vector<320x32xbf16>
    tpu.vector_store %arg13[%c0_17, %c96], %23 {strides = array<i32>} : memref<320x288xbf16, #tpu.memory_space<vmem>>, vector<320x32xbf16>,
    %c14 = arith.constant 14 : index
    %c0_18 = arith.constant 0 : index
    %25 = vector.load %arg12[%c14, %c0_18] : memref<352x32xbf16, #tpu.memory_space<vmem>>, vector<320x32xbf16>
    %c0_19 = arith.constant 0 : index
    %c128 = arith.constant 128 : index
    %26 = vector.load %arg13[%c0_19, %c128] : memref<320x288xbf16, #tpu.memory_space<vmem>>, vector<320x32xbf16>
    tpu.vector_store %arg13[%c0_19, %c128], %25 {strides = array<i32>} : memref<320x288xbf16, #tpu.memory_space<vmem>>, vector<320x32xbf16>,
    %c15 = arith.constant 15 : index
    %c0_20 = arith.constant 0 : index
    %27 = vector.load %arg12[%c15, %c0_20] : memref<352x32xbf16, #tpu.memory_space<vmem>>, vector<320x32xbf16>
    %c0_21 = arith.constant 0 : index
    %c160 = arith.constant 160 : index
    %28 = vector.load %arg13[%c0_21, %c160] : memref<320x288xbf16, #tpu.memory_space<vmem>>, vector<320x32xbf16>
    tpu.vector_store %arg13[%c0_21, %c160], %27 {strides = array<i32>} : memref<320x288xbf16, #tpu.memory_space<vmem>>, vector<320x32xbf16>,
    %c26 = arith.constant 26 : index
    %c0_22 = arith.constant 0 : index
    %29 = vector.load %arg12[%c26, %c0_22] : memref<352x32xbf16, #tpu.memory_space<vmem>>, vector<320x32xbf16>
    %c0_23 = arith.constant 0 : index
    %c192 = arith.constant 192 : index
    %30 = vector.load %arg13[%c0_23, %c192] : memref<320x288xbf16, #tpu.memory_space<vmem>>, vector<320x32xbf16>
    tpu.vector_store %arg13[%c0_23, %c192], %29 {strides = array<i32>} : memref<320x288xbf16, #tpu.memory_space<vmem>>, vector<320x32xbf16>,
    %c27 = arith.constant 27 : index
    %c0_24 = arith.constant 0 : index
    %31 = vector.load %arg12[%c27, %c0_24] : memref<352x32xbf16, #tpu.memory_space<vmem>>, vector<320x32xbf16>
    %c0_25 = arith.constant 0 : index
    %c224 = arith.constant 224 : index
    %32 = vector.load %arg13[%c0_25, %c224] : memref<320x288xbf16, #tpu.memory_space<vmem>>, vector<320x32xbf16>
    tpu.vector_store %arg13[%c0_25, %c224], %31 {strides = array<i32>} : memref<320x288xbf16, #tpu.memory_space<vmem>>, vector<320x32xbf16>,
    %c28 = arith.constant 28 : index
    %c0_26 = arith.constant 0 : index
    %33 = vector.load %arg12[%c28, %c0_26] : memref<352x32xbf16, #tpu.memory_space<vmem>>, vector<320x32xbf16>
    %c0_27 = arith.constant 0 : index
    %c256 = arith.constant 256 : index
    %34 = vector.load %arg13[%c0_27, %c256] : memref<320x288xbf16, #tpu.memory_space<vmem>>, vector<320x32xbf16>
    tpu.vector_store %arg13[%c0_27, %c256], %33 {strides = array<i32>} : memref<320x288xbf16, #tpu.memory_space<vmem>>, vector<320x32xbf16>,
    %c0_28 = arith.constant 0 : index
    %c0_29 = arith.constant 0 : index
    %35 = vector.load %arg13[%c0_28, %c0_29] : memref<320x288xbf16, #tpu.memory_space<vmem>>, vector<320x288xbf16>
    %c0_30 = arith.constant 0 : index
    %c0_31 = arith.constant 0 : index
    %36 = vector.load %arg4[%c0_30, %c0_31] : memref<288x64xbf16, #tpu.memory_space<vmem>>, vector<288x64xbf16>
    %cst_32 = arith.constant dense<0.000000e+00> : vector<320x64xf32>
    %37 = tpu.matmul %35, %36, %cst_32 {dimension_numbers = #tpu.dot_dimension_numbers<[1], [0], [0], [1], [0, 0, 1, 1], [], []>} : vector<320x288xbf16>, vector<288x64xbf16>, vector<320x64xf32> -> vector<320x64xf32>
    %c0_33 = arith.constant 0 : index
    %c0_34 = arith.constant 0 : index
    %38 = vector.load %arg6[%c0_33, %c0_34] : memref<224x320xbf16, #tpu.memory_space<vmem>>, vector<224x320xbf16>
    %39 = arith.truncf %37 : vector<320x64xf32> to vector<320x64xbf16>
    %cst_35 = arith.constant dense<0.000000e+00> : vector<224x64xf32>
    %40 = tpu.matmul %38, %39, %cst_35 {dimension_numbers = #tpu.dot_dimension_numbers<[1], [0], [0], [1], [0, 0, 1, 1], [], []>} : vector<224x320xbf16>, vector<320x64xbf16>, vector<224x64xf32> -> vector<224x64xf32>
    %41 = vector.extract_strided_slice %40 {offsets = [0, 0], sizes = [56, 64], strides = [1, 1]} : vector<224x64xf32> to vector<56x64xf32>
    %42 = vector.extract_strided_slice %40 {offsets = [56, 0], sizes = [56, 64], strides = [1, 1]} : vector<224x64xf32> to vector<56x64xf32>
    %43 = arith.maximumf %41, %42 : vector<56x64xf32>
    %44 = vector.extract_strided_slice %40 {offsets = [112, 0], sizes = [56, 64], strides = [1, 1]} : vector<224x64xf32> to vector<56x64xf32>
    %45 = vector.extract_strided_slice %40 {offsets = [168, 0], sizes = [56, 64], strides = [1, 1]} : vector<224x64xf32> to vector<56x64xf32>
    %46 = arith.maximumf %44, %45 : vector<56x64xf32>
    %47 = arith.maximumf %43, %46 : vector<56x64xf32>
    %c0_36 = arith.constant 0 : index
    %c0_37 = arith.constant 0 : index
    %48 = vector.load %arg5[%c0_36, %c0_37] : memref<1x64xf32, #tpu.memory_space<vmem>>, vector<1x64xf32>
    %49 = vector.broadcast %48 : vector<1x64xf32> to vector<56x64xf32>
    %50 = arith.addf %47, %49 : vector<56x64xf32>
    %cst_38 = arith.constant 0.000000e+00 : f32
    %51 = vector.broadcast %cst_38 : f32 to vector<56x64xf32>
    %52 = arith.maximumf %50, %51 : vector<56x64xf32>
    %53 = arith.truncf %52 : vector<56x64xf32> to vector<56x64xbf16>
    %c0_39 = arith.constant 0 : index
    %c0_40 = arith.constant 0 : index
    %54 = vector.load %arg14[%c0_39, %c0_40] : memref<56x64xbf16, #tpu.memory_space<vmem>>, vector<56x64xbf16>
    tpu.vector_store %arg14[%c0_39, %c0_40], %53 {strides = array<i32>} : memref<56x64xbf16, #tpu.memory_space<vmem>>, vector<56x64xbf16>,
    %c0_41 = arith.constant 0 : index
    %c0_42 = arith.constant 0 : index
    %55 = vector.load %arg14[%c0_41, %c0_42] : memref<56x64xbf16, #tpu.memory_space<vmem>>, vector<2x64xbf16>
    %c0_43 = arith.constant 0 : index
    %c0_44 = arith.constant 0 : index
    %56 = vector.load %arg15[%c0_43, %c0_44] : memref<2x1600xbf16, #tpu.memory_space<vmem>>, vector<2x64xbf16>
    tpu.vector_store %arg15[%c0_43, %c0_44], %55 {strides = array<i32>} : memref<2x1600xbf16, #tpu.memory_space<vmem>>, vector<2x64xbf16>,
    %c2_45 = arith.constant 2 : index
    %c0_46 = arith.constant 0 : index
    %57 = vector.load %arg14[%c2_45, %c0_46] : memref<56x64xbf16, #tpu.memory_space<vmem>>, vector<2x64xbf16>
    %c0_47 = arith.constant 0 : index
    %c64_48 = arith.constant 64 : index
    %58 = vector.load %arg15[%c0_47, %c64_48] : memref<2x1600xbf16, #tpu.memory_space<vmem>>, vector<2x64xbf16>
    tpu.vector_store %arg15[%c0_47, %c64_48], %57 {strides = array<i32>} : memref<2x1600xbf16, #tpu.memory_space<vmem>>, vector<2x64xbf16>,
    %c4 = arith.constant 4 : index
    %c0_49 = arith.constant 0 : index
    %59 = vector.load %arg14[%c4, %c0_49] : memref<56x64xbf16, #tpu.memory_space<vmem>>, vector<2x64xbf16>
    %c0_50 = arith.constant 0 : index
    %c128_51 = arith.constant 128 : index
    %60 = vector.load %arg15[%c0_50, %c128_51] : memref<2x1600xbf16, #tpu.memory_space<vmem>>, vector<2x64xbf16>
    tpu.vector_store %arg15[%c0_50, %c128_51], %59 {strides = array<i32>} : memref<2x1600xbf16, #tpu.memory_space<vmem>>, vector<2x64xbf16>,
    %c6 = arith.constant 6 : index
    %c0_52 = arith.constant 0 : index
    %61 = vector.load %arg14[%c6, %c0_52] : memref<56x64xbf16, #tpu.memory_space<vmem>>, vector<2x64xbf16>
    %c0_53 = arith.constant 0 : index
    %c192_54 = arith.constant 192 : index
    %62 = vector.load %arg15[%c0_53, %c192_54] : memref<2x1600xbf16, #tpu.memory_space<vmem>>, vector<2x64xbf16>
    tpu.vector_store %arg15[%c0_53, %c192_54], %61 {strides = array<i32>} : memref<2x1600xbf16, #tpu.memory_space<vmem>>, vector<2x64xbf16>,
    %c8 = arith.constant 8 : index
    %c0_55 = arith.constant 0 : index
    %63 = vector.load %arg14[%c8, %c0_55] : memref<56x64xbf16, #tpu.memory_space<vmem>>, vector<2x64xbf16>
    %c0_56 = arith.constant 0 : index
    %c256_57 = arith.constant 256 : index
    %64 = vector.load %arg15[%c0_56, %c256_57] : memref<2x1600xbf16, #tpu.memory_space<vmem>>, vector<2x64xbf16>
    tpu.vector_store %arg15[%c0_56, %c256_57], %63 {strides = array<i32>} : memref<2x1600xbf16, #tpu.memory_space<vmem>>, vector<2x64xbf16>,
    %c10 = arith.constant 10 : index
    %c0_58 = arith.constant 0 : index
    %65 = vector.load %arg14[%c10, %c0_58] : memref<56x64xbf16, #tpu.memory_space<vmem>>, vector<2x64xbf16>
    %c0_59 = arith.constant 0 : index
    %c320 = arith.constant 320 : index
    %66 = vector.load %arg15[%c0_59, %c320] : memref<2x1600xbf16, #tpu.memory_space<vmem>>, vector<2x64xbf16>
    tpu.vector_store %arg15[%c0_59, %c320], %65 {strides = array<i32>} : memref<2x1600xbf16, #tpu.memory_space<vmem>>, vector<2x64xbf16>,
    %c12 = arith.constant 12 : index
    %c0_60 = arith.constant 0 : index
    %67 = vector.load %arg14[%c12, %c0_60] : memref<56x64xbf16, #tpu.memory_space<vmem>>, vector<2x64xbf16>
    %c0_61 = arith.constant 0 : index
    %c384 = arith.constant 384 : index
    %68 = vector.load %arg15[%c0_61, %c384] : memref<2x1600xbf16, #tpu.memory_space<vmem>>, vector<2x64xbf16>
    tpu.vector_store %arg15[%c0_61, %c384], %67 {strides = array<i32>} : memref<2x1600xbf16, #tpu.memory_space<vmem>>, vector<2x64xbf16>,
    %c14_62 = arith.constant 14 : index
    %c0_63 = arith.constant 0 : index
    %69 = vector.load %arg14[%c14_62, %c0_63] : memref<56x64xbf16, #tpu.memory_space<vmem>>, vector<2x64xbf16>
    %c0_64 = arith.constant 0 : index
    %c448 = arith.constant 448 : index
    %70 = vector.load %arg15[%c0_64, %c448] : memref<2x1600xbf16, #tpu.memory_space<vmem>>, vector<2x64xbf16>
    tpu.vector_store %arg15[%c0_64, %c448], %69 {strides = array<i32>} : memref<2x1600xbf16, #tpu.memory_space<vmem>>, vector<2x64xbf16>,
    %c16 = arith.constant 16 : index
    %c0_65 = arith.constant 0 : index
    %71 = vector.load %arg14[%c16, %c0_65] : memref<56x64xbf16, #tpu.memory_space<vmem>>, vector<2x64xbf16>
    %c0_66 = arith.constant 0 : index
    %c512 = arith.constant 512 : index
    %72 = vector.load %arg15[%c0_66, %c512] : memref<2x1600xbf16, #tpu.memory_space<vmem>>, vector<2x64xbf16>
    tpu.vector_store %arg15[%c0_66, %c512], %71 {strides = array<i32>} : memref<2x1600xbf16, #tpu.memory_space<vmem>>, vector<2x64xbf16>,
    %c18 = arith.constant 18 : index
    %c0_67 = arith.constant 0 : index
    %73 = vector.load %arg14[%c18, %c0_67] : memref<56x64xbf16, #tpu.memory_space<vmem>>, vector<2x64xbf16>
    %c0_68 = arith.constant 0 : index
    %c576 = arith.constant 576 : index
    %74 = vector.load %arg15[%c0_68, %c576] : memref<2x1600xbf16, #tpu.memory_space<vmem>>, vector<2x64xbf16>
    tpu.vector_store %arg15[%c0_68, %c576], %73 {strides = array<i32>} : memref<2x1600xbf16, #tpu.memory_space<vmem>>, vector<2x64xbf16>,
    %c20 = arith.constant 20 : index
    %c0_69 = arith.constant 0 : index
    %75 = vector.load %arg14[%c20, %c0_69] : memref<56x64xbf16, #tpu.memory_space<vmem>>, vector<2x64xbf16>
    %c0_70 = arith.constant 0 : index
    %c640 = arith.constant 640 : index
    %76 = vector.load %arg15[%c0_70, %c640] : memref<2x1600xbf16, #tpu.memory_space<vmem>>, vector<2x64xbf16>
    tpu.vector_store %arg15[%c0_70, %c640], %75 {strides = array<i32>} : memref<2x1600xbf16, #tpu.memory_space<vmem>>, vector<2x64xbf16>,
    %c22 = arith.constant 22 : index
    %c0_71 = arith.constant 0 : index
    %77 = vector.load %arg14[%c22, %c0_71] : memref<56x64xbf16, #tpu.memory_space<vmem>>, vector<2x64xbf16>
    %c0_72 = arith.constant 0 : index
    %c704 = arith.constant 704 : index
    %78 = vector.load %arg15[%c0_72, %c704] : memref<2x1600xbf16, #tpu.memory_space<vmem>>, vector<2x64xbf16>
    tpu.vector_store %arg15[%c0_72, %c704], %77 {strides = array<i32>} : memref<2x1600xbf16, #tpu.memory_space<vmem>>, vector<2x64xbf16>,
    %c24 = arith.constant 24 : index
    %c0_73 = arith.constant 0 : index
    %79 = vector.load %arg14[%c24, %c0_73] : memref<56x64xbf16, #tpu.memory_space<vmem>>, vector<2x64xbf16>
    %c0_74 = arith.constant 0 : index
    %c768 = arith.constant 768 : index
    %80 = vector.load %arg15[%c0_74, %c768] : memref<2x1600xbf16, #tpu.memory_space<vmem>>, vector<2x64xbf16>
    tpu.vector_store %arg15[%c0_74, %c768], %79 {strides = array<i32>} : memref<2x1600xbf16, #tpu.memory_space<vmem>>, vector<2x64xbf16>,
    %c26_75 = arith.constant 26 : index
    %c0_76 = arith.constant 0 : index
    %81 = vector.load %arg14[%c26_75, %c0_76] : memref<56x64xbf16, #tpu.memory_space<vmem>>, vector<2x64xbf16>
    %c0_77 = arith.constant 0 : index
    %c832 = arith.constant 832 : index
    %82 = vector.load %arg15[%c0_77, %c832] : memref<2x1600xbf16, #tpu.memory_space<vmem>>, vector<2x64xbf16>
    tpu.vector_store %arg15[%c0_77, %c832], %81 {strides = array<i32>} : memref<2x1600xbf16, #tpu.memory_space<vmem>>, vector<2x64xbf16>,
    %c28_78 = arith.constant 28 : index
    %c0_79 = arith.constant 0 : index
    %83 = vector.load %arg14[%c28_78, %c0_79] : memref<56x64xbf16, #tpu.memory_space<vmem>>, vector<2x64xbf16>
    %c0_80 = arith.constant 0 : index
    %c896 = arith.constant 896 : index
    %84 = vector.load %arg15[%c0_80, %c896] : memref<2x1600xbf16, #tpu.memory_space<vmem>>, vector<2x64xbf16>
    tpu.vector_store %arg15[%c0_80, %c896], %83 {strides = array<i32>} : memref<2x1600xbf16, #tpu.memory_space<vmem>>, vector<2x64xbf16>,
    %c30 = arith.constant 30 : index
    %c0_81 = arith.constant 0 : index
    %85 = vector.load %arg14[%c30, %c0_81] : memref<56x64xbf16, #tpu.memory_space<vmem>>, vector<2x64xbf16>
    %c0_82 = arith.constant 0 : index
    %c960 = arith.constant 960 : index
    %86 = vector.load %arg15[%c0_82, %c960] : memref<2x1600xbf16, #tpu.memory_space<vmem>>, vector<2x64xbf16>
    tpu.vector_store %arg15[%c0_82, %c960], %85 {strides = array<i32>} : memref<2x1600xbf16, #tpu.memory_space<vmem>>, vector<2x64xbf16>,
    %c32_83 = arith.constant 32 : index
    %c0_84 = arith.constant 0 : index
    %87 = vector.load %arg14[%c32_83, %c0_84] : memref<56x64xbf16, #tpu.memory_space<vmem>>, vector<2x64xbf16>
    %c0_85 = arith.constant 0 : index
    %c1024 = arith.constant 1024 : index
    %88 = vector.load %arg15[%c0_85, %c1024] : memref<2x1600xbf16, #tpu.memory_space<vmem>>, vector<2x64xbf16>
    tpu.vector_store %arg15[%c0_85, %c1024], %87 {strides = array<i32>} : memref<2x1600xbf16, #tpu.memory_space<vmem>>, vector<2x64xbf16>,
    %c34 = arith.constant 34 : index
    %c0_86 = arith.constant 0 : index
    %89 = vector.load %arg14[%c34, %c0_86] : memref<56x64xbf16, #tpu.memory_space<vmem>>, vector<2x64xbf16>
    %c0_87 = arith.constant 0 : index
    %c1088 = arith.constant 1088 : index
    %90 = vector.load %arg15[%c0_87, %c1088] : memref<2x1600xbf16, #tpu.memory_space<vmem>>, vector<2x64xbf16>
    tpu.vector_store %arg15[%c0_87, %c1088], %89 {strides = array<i32>} : memref<2x1600xbf16, #tpu.memory_space<vmem>>, vector<2x64xbf16>,
    %c36 = arith.constant 36 : index
    %c0_88 = arith.constant 0 : index
    %91 = vector.load %arg14[%c36, %c0_88] : memref<56x64xbf16, #tpu.memory_space<vmem>>, vector<2x64xbf16>
    %c0_89 = arith.constant 0 : index
    %c1152 = arith.constant 1152 : index
    %92 = vector.load %arg15[%c0_89, %c1152] : memref<2x1600xbf16, #tpu.memory_space<vmem>>, vector<2x64xbf16>
    tpu.vector_store %arg15[%c0_89, %c1152], %91 {strides = array<i32>} : memref<2x1600xbf16, #tpu.memory_space<vmem>>, vector<2x64xbf16>,
    %c38 = arith.constant 38 : index
    %c0_90 = arith.constant 0 : index
    %93 = vector.load %arg14[%c38, %c0_90] : memref<56x64xbf16, #tpu.memory_space<vmem>>, vector<2x64xbf16>
    %c0_91 = arith.constant 0 : index
    %c1216 = arith.constant 1216 : index
    %94 = vector.load %arg15[%c0_91, %c1216] : memref<2x1600xbf16, #tpu.memory_space<vmem>>, vector<2x64xbf16>
    tpu.vector_store %arg15[%c0_91, %c1216], %93 {strides = array<i32>} : memref<2x1600xbf16, #tpu.memory_space<vmem>>, vector<2x64xbf16>,
    %c40 = arith.constant 40 : index
    %c0_92 = arith.constant 0 : index
    %95 = vector.load %arg14[%c40, %c0_92] : memref<56x64xbf16, #tpu.memory_space<vmem>>, vector<2x64xbf16>
    %c0_93 = arith.constant 0 : index
    %c1280 = arith.constant 1280 : index
    %96 = vector.load %arg15[%c0_93, %c1280] : memref<2x1600xbf16, #tpu.memory_space<vmem>>, vector<2x64xbf16>
    tpu.vector_store %arg15[%c0_93, %c1280], %95 {strides = array<i32>} : memref<2x1600xbf16, #tpu.memory_space<vmem>>, vector<2x64xbf16>,
    %c42 = arith.constant 42 : index
    %c0_94 = arith.constant 0 : index
    %97 = vector.load %arg14[%c42, %c0_94] : memref<56x64xbf16, #tpu.memory_space<vmem>>, vector<2x64xbf16>
    %c0_95 = arith.constant 0 : index
    %c1344 = arith.constant 1344 : index
    %98 = vector.load %arg15[%c0_95, %c1344] : memref<2x1600xbf16, #tpu.memory_space<vmem>>, vector<2x64xbf16>
    tpu.vector_store %arg15[%c0_95, %c1344], %97 {strides = array<i32>} : memref<2x1600xbf16, #tpu.memory_space<vmem>>, vector<2x64xbf16>,
    %c44 = arith.constant 44 : index
    %c0_96 = arith.constant 0 : index
    %99 = vector.load %arg14[%c44, %c0_96] : memref<56x64xbf16, #tpu.memory_space<vmem>>, vector<2x64xbf16>
    %c0_97 = arith.constant 0 : index
    %c1408 = arith.constant 1408 : index
    %100 = vector.load %arg15[%c0_97, %c1408] : memref<2x1600xbf16, #tpu.memory_space<vmem>>, vector<2x64xbf16>
    tpu.vector_store %arg15[%c0_97, %c1408], %99 {strides = array<i32>} : memref<2x1600xbf16, #tpu.memory_space<vmem>>, vector<2x64xbf16>,
    %c46 = arith.constant 46 : index
    %c0_98 = arith.constant 0 : index
    %101 = vector.load %arg14[%c46, %c0_98] : memref<56x64xbf16, #tpu.memory_space<vmem>>, vector<2x64xbf16>
    %c0_99 = arith.constant 0 : index
    %c1472 = arith.constant 1472 : index
    %102 = vector.load %arg15[%c0_99, %c1472] : memref<2x1600xbf16, #tpu.memory_space<vmem>>, vector<2x64xbf16>
    tpu.vector_store %arg15[%c0_99, %c1472], %101 {strides = array<i32>} : memref<2x1600xbf16, #tpu.memory_space<vmem>>, vector<2x64xbf16>,
    %c48 = arith.constant 48 : index
    %c0_100 = arith.constant 0 : index
    %103 = vector.load %arg14[%c48, %c0_100] : memref<56x64xbf16, #tpu.memory_space<vmem>>, vector<2x64xbf16>
    %c0_101 = arith.constant 0 : index
    %c1536 = arith.constant 1536 : index
    %104 = vector.load %arg15[%c0_101, %c1536] : memref<2x1600xbf16, #tpu.memory_space<vmem>>, vector<2x64xbf16>
    tpu.vector_store %arg15[%c0_101, %c1536], %103 {strides = array<i32>} : memref<2x1600xbf16, #tpu.memory_space<vmem>>, vector<2x64xbf16>,
    %c0_102 = arith.constant 0 : index
    %c0_103 = arith.constant 0 : index
    %105 = vector.load %arg15[%c0_102, %c0_103] : memref<2x1600xbf16, #tpu.memory_space<vmem>>, vector<2x1600xbf16>
    %c0_104 = arith.constant 0 : index
    %c0_105 = arith.constant 0 : index
    %106 = vector.load %arg7[%c0_104, %c0_105] : memref<1600x128xbf16, #tpu.memory_space<vmem>>, vector<1600x128xbf16>
    %cst_106 = arith.constant dense<0.000000e+00> : vector<2x128xf32>
    %107 = tpu.matmul %105, %106, %cst_106 {dimension_numbers = #tpu.dot_dimension_numbers<[1], [0], [0], [1], [0, 0, 1, 1], [], []>} : vector<2x1600xbf16>, vector<1600x128xbf16>, vector<2x128xf32> -> vector<2x128xf32>
    %c0_107 = arith.constant 0 : index
    %c0_108 = arith.constant 0 : index
    %108 = vector.load %arg8[%c0_107, %c0_108] : memref<1x128xf32, #tpu.memory_space<vmem>>, vector<1x128xf32>
    %109 = vector.broadcast %108 : vector<1x128xf32> to vector<2x128xf32>
    %110 = arith.addf %107, %109 : vector<2x128xf32>
    %cst_109 = arith.constant 0.000000e+00 : f32
    %111 = vector.broadcast %cst_109 : f32 to vector<2x128xf32>
    %112 = arith.maximumf %110, %111 : vector<2x128xf32>
    %113 = arith.truncf %112 : vector<2x128xf32> to vector<2x128xbf16>
    %c0_110 = arith.constant 0 : index
    %c0_111 = arith.constant 0 : index
    %114 = vector.load %arg9[%c0_110, %c0_111] : memref<128x10xbf16, #tpu.memory_space<vmem>>, vector<128x10xbf16>
    %cst_112 = arith.constant dense<0.000000e+00> : vector<2x10xf32>
    %115 = tpu.matmul %113, %114, %cst_112 {dimension_numbers = #tpu.dot_dimension_numbers<[1], [0], [0], [1], [0, 0, 1, 1], [], []>} : vector<2x128xbf16>, vector<128x10xbf16>, vector<2x10xf32> -> vector<2x10xf32>
    %c0_113 = arith.constant 0 : index
    %c0_114 = arith.constant 0 : index
    %116 = vector.load %arg10[%c0_113, %c0_114] : memref<1x10xf32, #tpu.memory_space<vmem>>, vector<1x10xf32>
    %117 = vector.broadcast %116 : vector<1x10xf32> to vector<2x10xf32>
    %118 = arith.addf %115, %117 : vector<2x10xf32>
    %c0_115 = arith.constant 0 : index
    %c0_116 = arith.constant 0 : index
    %119 = vector.load %arg11[%c0_115, %c0_116] : memref<2x10xf32, #tpu.memory_space<vmem>>, vector<2x10xf32>
    tpu.vector_store %arg11[%c0_115, %c0_116], %118 {strides = array<i32>} : memref<2x10xf32, #tpu.memory_space<vmem>>, vector<2x10xf32>,
    return
  }
  func.func @transform_0(%arg0: i32) -> (i32, i32) {
    %c0_i32 = arith.constant 0 : i32
    %c0_i32_0 = arith.constant 0 : i32
    %c0_i32_1 = arith.constant 0 : i32
    return %c0_i32, %c0_i32_0 : i32, i32
  }
  func.func @transform_1(%arg0: i32) -> (i32, i32) {
    %c0_i32 = arith.constant 0 : i32
    %c0_i32_0 = arith.constant 0 : i32
    %c0_i32_1 = arith.constant 0 : i32
    return %c0_i32, %c0_i32_0 : i32, i32
  }
  func.func @transform_2(%arg0: i32) -> (i32, i32) {
    %c0_i32 = arith.constant 0 : i32
    %c0_i32_0 = arith.constant 0 : i32
    %c0_i32_1 = arith.constant 0 : i32
    return %c0_i32, %c0_i32_0 : i32, i32
  }
  func.func @transform_3(%arg0: i32) -> (i32, i32) {
    %c0_i32 = arith.constant 0 : i32
    %c0_i32_0 = arith.constant 0 : i32
    %c0_i32_1 = arith.constant 0 : i32
    return %c0_i32, %c0_i32_0 : i32, i32
  }
  func.func @transform_4(%arg0: i32) -> (i32, i32) {
    %c0_i32 = arith.constant 0 : i32
    %c0_i32_0 = arith.constant 0 : i32
    %c0_i32_1 = arith.constant 0 : i32
    return %c0_i32, %c0_i32_0 : i32, i32
  }
  func.func @transform_5(%arg0: i32) -> (i32, i32) {
    %c0_i32 = arith.constant 0 : i32
    %c0_i32_0 = arith.constant 0 : i32
    %c0_i32_1 = arith.constant 0 : i32
    return %c0_i32, %c0_i32_0 : i32, i32
  }
  func.func @transform_6(%arg0: i32) -> (i32, i32) {
    %c0_i32 = arith.constant 0 : i32
    %c0_i32_0 = arith.constant 0 : i32
    %c0_i32_1 = arith.constant 0 : i32
    return %c0_i32, %c0_i32_0 : i32, i32
  }
  func.func @transform_7(%arg0: i32) -> (i32, i32) {
    %c0_i32 = arith.constant 0 : i32
    %c0_i32_0 = arith.constant 0 : i32
    %c0_i32_1 = arith.constant 0 : i32
    return %c0_i32, %c0_i32_0 : i32, i32
  }
  func.func @transform_8(%arg0: i32) -> (i32, i32) {
    %c0_i32 = arith.constant 0 : i32
    %c0_i32_0 = arith.constant 0 : i32
    %c0_i32_1 = arith.constant 0 : i32
    return %c0_i32, %c0_i32_0 : i32, i32
  }
  func.func @transform_9(%arg0: i32) -> (i32, i32) {
    %c0_i32 = arith.constant 0 : i32
    %c0_i32_0 = arith.constant 0 : i32
    %c0_i32_1 = arith.constant 0 : i32
    return %c0_i32, %c0_i32_0 : i32, i32
  }
  func.func @transform_10(%arg0: i32) -> (i32, i32) {
    %c0_i32 = arith.constant 0 : i32
    %c0_i32_0 = arith.constant 0 : i32
    %c0_i32_1 = arith.constant 0 : i32
    return %c0_i32, %c0_i32_0 : i32, i32
  }
}

</mosaic_0001>

<bundles_post_ra>
// kernel: mnist_cnn_forward.1
= control target key start
LH: loop header
LB: loop body
LE: loop exit
PB: predicated region body
PF: predicated region fallthrough
CT: control target
= control target key end

     0   :  { %vm199_vm0 = vcmask 130048   ;;  %s9522_s0 = inlined_call_operand.vmem [shape: bf16[352,16], index: 0, kind: input, shape index: {}]   ;;  %s9523_s1 = inlined_call_operand.vmem [shape: bf16[16,128], index: 1, kind: input, shape index: {}]   ;;  %s9524_s2 = inlined_call_operand.vmem [shape: f32[1,32], index: 2, kind: input, shape index: {}]   ;;  %s9525_s3 = inlined_call_operand.vmem [shape: bf16[288,64], index: 3, kind: input, shape index: {}]   ;;  %s9526_s4 = inlined_call_operand.vmem [shape: f32[1,64], index: 4, kind: input, shape index: {}]   ;;  %s9527_s5 = inlined_call_operand.vmem [shape: bf16[224,320], index: 5, kind: input, shape index: {}]   ;;  %s9528_s6 = inlined_call_operand.vmem [shape: bf16[1600,128], index: 6, kind: input, shape index: {}]   ;;  %s9529_s7 = inlined_call_operand.vmem [shape: f32[1,128], index: 7, kind: input, shape index: {}]   ;;  %s9530_s8 = inlined_call_operand.vmem [shape: bf16[128,10], index: 8, kind: input, shape index: {}]   ;;  %s9531_s9 = inlined_call_operand.vmem [shape: f32[1,10], index: 9, kind: input, shape index: {}]   ;;  %s9532_s10 = inlined_call_operand.hbm [shape: f32[2,10], index: 10, kind: output, shape index: {}]  }
   0x1   :  { %v6604_v0 = vld [vmem:[%s9523_s1] sm:$0xff]   ;;  %v6606_v2 = vld [vmem:[%s9522_s0 + $0x8] sm:$0xff]   ;;  %v6607_v3 = vld [vmem:[%s9522_s0 + $0x10] sm:$0xff]  }
   0x2   :  { %v6605_v1 = vld [vmem:[%s9522_s0] sm:$0xff]   ;;  %6438 = vmatprep.subr.bf16.mxu0 %v6604_v0  ;;  %v6608_v4 = vld [vmem:[%s9522_s0 + $0x18] sm:$0xff]   ;;  %v6610_v6 = vld [vmem:[%s9522_s0 + $0x28] sm:$0xff]  }
   0x3   :  { %6439 = vmatpush3.bf16.msra.mxu0 %v6604_v0  ;;  %6440 = vmatprep.mubr.msk.bf16.mxu0 %vm199_vm0, %v6605_v1  ;;  %v6609_v5 = vld [vmem:[%s9522_s0 + $0x20] sm:$0xff]   ;;  %v6611_v7 = vld [vmem:[%s9522_s0 + $0x30] sm:$0xff]   ;;  %v6612_v8 = vld [vmem:[%s9522_s0 + $0x38] sm:$0xff]  }
   0x4   :  { %v6613_v9 = vld [vmem:[%s9522_s0 + $0x40] sm:$0xff]   ;;  %v6614_v10 = vld [vmem:[%s9522_s0 + $0x48] sm:$0xff]   ;;  %v6615_v11 = vld [vmem:[%s9522_s0 + $0x50] sm:$0xff]  }
   0x5   :  { %v6616_v12 = vld [vmem:[%s9522_s0 + $0x58] sm:$0xff]   ;;  %v6617_v13 = vld [vmem:[%s9522_s0 + $0x60] sm:$0xff]   ;;  %v6618_v14 = vld [vmem:[%s9522_s0 + $0x68] sm:$0xff]  }
   0x6   :  { %6441 = vmatmul.mubr.msk.bf16.vlgmr.msra.gmra.mrb[0].mxu0 %vm199_vm0, %v6606_v2  ;;  %v6619_v15 = vld [vmem:[%s9522_s0 + $0x70] sm:$0xff]   ;;  %v6620_v16 = vld [vmem:[%s9522_s0 + $0x78] sm:$0xff]   ;;  %v6621_v17 = vld [vmem:[%s9522_s0 + $0x80] sm:$0xff]  }
   0x7   :  { %6444 = vmatprep.mubr.msk.bf16.mxu0 %vm199_vm0, %v6607_v3  ;;  %v6622_v18 = vld [vmem:[%s9522_s0 + $0x88] sm:$0xff]   ;;  %v6623_v19 = vld [vmem:[%s9522_s0 + $0x90] sm:$0xff]   ;;  %v6624_v20 = vld [vmem:[%s9522_s0 + $0x98] sm:$0xff]  }
   0x8   :  { %v6625_v21 = vld [vmem:[%s9522_s0 + $0xa0] sm:$0xff]   ;;  %v6626_v22 = vld [vmem:[%s9522_s0 + $0xa8] sm:$0xff]  }
   0xe   :  { %6445 = vmatmul.mubr.msk.bf16.gmra.mrb[4].mxu0 %vm199_vm0, %v6608_v4 }
   0xf   :  { %6448 = vmatprep.mubr.msk.bf16.mxu0 %vm199_vm0, %v6609_v5 }
  0x16   :  { %6449 = vmatmul.mubr.msk.bf16.gmra.mrb[8].mxu0 %vm199_vm0, %v6610_v6 }
  0x17   :  { %6452 = vmatprep.mubr.msk.bf16.mxu0 %vm199_vm0, %v6611_v7 }
  0x1e   :  { %6453 = vmatmul.mubr.msk.bf16.gmra.mrb[12].mxu0 %vm199_vm0, %v6612_v8 }
  0x1f   :  { %6456 = vmatprep.mubr.msk.bf16.mxu0 %vm199_vm0, %v6613_v9 }
  0x26   :  { %6457 = vmatmul.mubr.msk.bf16.gmra.mrb[16].mxu0 %vm199_vm0, %v6614_v10 }
  0x27   :  { %6460 = vmatprep.mubr.msk.bf16.mxu0 %vm199_vm0, %v6615_v11 }
  0x2e   :  { %6461 = vmatmul.mubr.msk.bf16.gmra.mrb[20].mxu0 %vm199_vm0, %v6616_v12 }
  0x2f   :  { %6464 = vmatprep.mubr.msk.bf16.mxu0 %vm199_vm0, %v6617_v13 }
  0x36   :  { %6465 = vmatmul.mubr.msk.bf16.gmra.mrb[24].mxu0 %vm199_vm0, %v6618_v14 }
  0x37   :  { %6468 = vmatprep.mubr.msk.bf16.mxu0 %vm199_vm0, %v6619_v15 }
  0x3e   :  { %6469 = vmatmul.mubr.msk.bf16.gmra.mrb[28].mxu0 %vm199_vm0, %v6620_v16 }
  0x3f   :  { %6472 = vmatprep.mubr.msk.bf16.mxu0 %vm199_vm0, %v6621_v17 }
  0x46   :  { %6473 = vmatmul.mubr.msk.bf16.gmra.mrb[32].mxu0 %vm199_vm0, %v6622_v18 }
  0x47   :  { %6476 = vmatprep.mubr.msk.bf16.mxu0 %vm199_vm0, %v6623_v19 }
  0x4e   :  { %6477 = vmatmul.mubr.msk.bf16.gmra.mrb[36].mxu0 %vm199_vm0, %v6624_v20 }
  0x4f   :  { %6480 = vmatprep.mubr.msk.bf16.mxu0 %vm199_vm0, %v6625_v21 }
  0x56   :  { %6481 = vmatmul.mubr.msk.bf16.gmra.mrb[40].mxu0 %vm199_vm0, %v6626_v22 }
  0x57   :  { %15 = vsyncpa [#allocation7], 0  ;;  %s6836_s17 = smov 96   ;;  %s6837_s0 = smov 64   ;;  %vm1032_vm1 = vcmask 261120   ;;  %vm1404_vm2 = vcmask 1046528  }
  0x58   :  { %vm1963_vm3 = vsmask.f32 256  ;;  %vm1116_vm4 = vsmask.f32 7424  ;;  %vm2704_vm5 = vcmask 1041408   ;;  %vm2250_vm6 = vcmask 1042432  }
  0x59   :  { %vm1548_vm7 = vsmask.f32 1280  ;;  %s6839_s27 = smov 32   ;;  %vm2393_vm8 = vsmask.f32 2304  ;;  %vm1860_vm9 = vcmask 1040384  }
  0x5a   :  { %vm1341_vm10 = vcmask 523520   ;;  %vm1506_vm11 = vcmask 785920   ;;  %vm1797_vm12 = vcmask 1048320   ;;  %vm3722_vm13 = vcmask 523264   ;;  %s6843_s20 = smov [#allocation6]  }
  0x5b   :  { %vm4126_vm14 = vcmask 519168   ;;  %vm4135_vm15 = vcmask 516096   ;;  %vm4157_vm0 = vcmask 1040896  }
  0xd9   :  { %v6990_v23 = vpop.f32.mrb[0].mxu0 }
  0xda   :  { %523 = vrot.lane.b32.xlu0 %v6990_v23, %s6836_s17  ;;  %v6994_v24 = vpop.f32.mrb[1].mxu0 }
  0xdb   :  { %519 = vrot.lane.b32.xlu1 %v6994_v24, %s6836_s17  ;;  %v6998_v25 = vpop.f32.mrb[2].mxu0 }
  0xdc   :  { %v7000_v26 = vpop.f32.mrb[3].mxu0 }
  0xde   :  { %525 = vrot.lane.b32.xlu0 %v6998_v25, %s6836_s17 }
  0xdf   :  { %521 = vrot.lane.b32.xlu1 %v7000_v26, %s6836_s17 }
  0xe1   :  { %v7006_v27 = vpop.f32.mrb[4].mxu0 }
  0xe2   :  { %531 = vrot.lane.b32.xlu0 %v7006_v27, %s6836_s17  ;;  %v7010_v28 = vpop.f32.mrb[5].mxu0 }
  0xe3   :  { %v7012_v29 = vpop.f32.mrb[6].mxu0 }
  0xe4   :  { %533 = vrot.lane.b32.xlu1 %v7012_v29, %s6836_s17  ;;  %v7016_v30 = vpop.f32.mrb[7].mxu0 }
  0xe6   :  { %527 = vrot.lane.b32.xlu0 %v7010_v28, %s6836_s17 }
  0xe8   :  { %529 = vrot.lane.b32.xlu1 %v7016_v30, %s6836_s17 }
  0xe9   :  { %v7022_v31 = vpop.f32.mrb[8].mxu0 }
  0xea   :  { %539 = vrot.lane.b32.xlu0 %v7022_v31, %s6836_s17  ;;  %v7026_v32 = vpop.f32.mrb[9].mxu0 }
  0xeb   :  { %v7028_v33 = vpop.f32.mrb[10].mxu0 }
  0xec   :  { %541 = vrot.lane.b32.xlu1 %v7028_v33, %s6836_s17  ;;  %v7032_v34 = vpop.f32.mrb[11].mxu0 }
  0xee   :  { %535 = vrot.lane.b32.xlu0 %v7026_v32, %s6836_s17 }
  0xf0   :  { %537 = vrot.lane.b32.xlu1 %v7032_v34, %s6836_s17 }
  0xf1   :  { %v7038_v35 = vpop.f32.mrb[12].mxu0 }
  0xf2   :  { %547 = vrot.lane.b32.xlu0 %v7038_v35, %s6836_s17  ;;  %v7042_v36 = vpop.f32.mrb[13].mxu0 }
  0xf3   :  { %v7044_v37 = vpop.f32.mrb[14].mxu0 }
  0xf4   :  { %549 = vrot.lane.b32.xlu1 %v7044_v37, %s6836_s17  ;;  %v7048_v38 = vpop.f32.mrb[15].mxu0 }
  0xf6   :  { %543 = vrot.lane.b32.xlu0 %v7042_v36, %s6836_s17 }
  0xf8   :  { %545 = vrot.lane.b32.xlu1 %v7048_v38, %s6836_s17 }
  0xf9   :  { %v7054_v39 = vpop.f32.mrb[16].mxu0 }
  0xfa   :  { %555 = vrot.lane.b32.xlu0 %v7054_v39, %s6836_s17  ;;  %v7058_v40 = vpop.f32.mrb[17].mxu0 }
  0xfb   :  { %v7060_v41 = vpop.f32.mrb[18].mxu0 }
  0xfc   :  { %557 = vrot.lane.b32.xlu1 %v7060_v41, %s6836_s17  ;;  %v7064_v42 = vpop.f32.mrb[19].mxu0 }
  0xfe   :  { %551 = vrot.lane.b32.xlu0 %v7058_v40, %s6836_s17 }
 0x100   :  { %553 = vrot.lane.b32.xlu1 %v7064_v42, %s6836_s17 }
 0x101   :  { %v7070_v43 = vpop.f32.mrb[20].mxu0 }
 0x102   :  { %563 = vrot.lane.b32.xlu0 %v7070_v43, %s6836_s17  ;;  %v7074_v44 = vpop.f32.mrb[21].mxu0 }
 0x103   :  { %v7076_v45 = vpop.f32.mrb[22].mxu0 }
 0x104   :  { %565 = vrot.lane.b32.xlu1 %v7076_v45, %s6836_s17  ;;  %v7080_v46 = vpop.f32.mrb[23].mxu0 }
 0x106   :  { %559 = vrot.lane.b32.xlu0 %v7074_v44, %s6836_s17 }
 0x108   :  { %561 = vrot.lane.b32.xlu1 %v7080_v46, %s6836_s17 }
 0x109   :  { %v7086_v47 = vpop.f32.mrb[24].mxu0 }
 0x10a   :  { %571 = vrot.lane.b32.xlu0 %v7086_v47, %s6836_s17  ;;  %v7090_v48 = vpop.f32.mrb[25].mxu0 }
 0x10b   :  { %v7092_v49 = vpop.f32.mrb[26].mxu0 }
 0x10c   :  { %573 = vrot.lane.b32.xlu1 %v7092_v49, %s6836_s17  ;;  %v7096_v50 = vpop.f32.mrb[27].mxu0 }
 0x10e   :  { %567 = vrot.lane.b32.xlu0 %v7090_v48, %s6836_s17 }
 0x110   :  { %569 = vrot.lane.b32.xlu1 %v7096_v50, %s6836_s17 }
 0x111   :  { %v7102_v51 = vpop.f32.mrb[28].mxu0 }
 0x112   :  { %579 = vrot.lane.b32.xlu0 %v7102_v51, %s6836_s17  ;;  %v7106_v52 = vpop.f32.mrb[29].mxu0 }
 0x113   :  { %v7108_v53 = vpop.f32.mrb[30].mxu0 }
 0x114   :  { %581 = vrot.lane.b32.xlu1 %v7108_v53, %s6836_s17  ;;  %v7112_v54 = vpop.f32.mrb[31].mxu0 }
 0x116   :  { %575 = vrot.lane.b32.xlu0 %v7106_v52, %s6836_s17 }
 0x118   :  { %577 = vrot.lane.b32.xlu1 %v7112_v54, %s6836_s17 }
 0x119   :  { %v7118_v55 = vpop.f32.mrb[32].mxu0 }
 0x11a   :  { %587 = vrot.lane.b32.xlu0 %v7118_v55, %s6836_s17  ;;  %v7122_v56 = vpop.f32.mrb[33].mxu0 }
 0x11b   :  { %v7124_v57 = vpop.f32.mrb[34].mxu0 }
 0x11c   :  { %589 = vrot.lane.b32.xlu1 %v7124_v57, %s6836_s17  ;;  %v7128_v58 = vpop.f32.mrb[35].mxu0 }
 0x11e   :  { %583 = vrot.lane.b32.xlu0 %v7122_v56, %s6836_s17 }
 0x120   :  { %585 = vrot.lane.b32.xlu1 %v7128_v58, %s6836_s17 }
 0x121   :  { %v7134_v59 = vpop.f32.mrb[36].mxu0 }
 0x122   :  { %595 = vrot.lane.b32.xlu0 %v7134_v59, %s6836_s17  ;;  %v7138_v60 = vpop.f32.mrb[37].mxu0 }
 0x123   :  { %v7140_v61 = vpop.f32.mrb[38].mxu0 }
 0x124   :  { %597 = vrot.lane.b32.xlu1 %v7140_v61, %s6836_s17  ;;  %v7144_v62 = vpop.f32.mrb[39].mxu0 }
 0x126   :  { %591 = vrot.lane.b32.xlu0 %v7138_v60, %s6836_s17 }
 0x128   :  { %593 = vrot.lane.b32.xlu1 %v7144_v62, %s6836_s17 }
 0x129   :  { %v7150_v63 = vpop.f32.mrb[40].mxu0 }
 0x12a   :  { %603 = vrot.lane.b32.xlu0 %v7150_v63, %s6836_s17  ;;  %v7154_v0 = vpop.f32.mrb[41].mxu0 }
 0x12b   :  { %v7156_v1 = vpop.f32.mrb[42].mxu0 }
 0x12c   :  { %605 = vrot.lane.b32.xlu1 %v7156_v1, %s6836_s17  ;;  %v7160_v2 = vpop.f32.mrb[43].mxu0 }
 0x12e   :  { %599 = vrot.lane.b32.xlu0 %v7154_v0, %s6836_s17 }
 0x130   :  { %601 = vrot.lane.b32.xlu1 %v7160_v2, %s6836_s17 }
 0x14c   :  { %v524_v3 = vpop.permute.xlu0 %523 }
 0x14d   :  { %v7167_v4 = vmax.f32 %v6990_v23, %v524_v3  ;;  %v520_v5 = vpop.permute.xlu1 %519 }
 0x14e   :  { %v7172_v7 = vmax.f32 %v6994_v24, %v520_v5 }
 0x14f   :  { %743 = vrot.lane.b32.xlu0 %v7167_v4, %s6837_s0 }
 0x150   :  { %v526_v6 = vpop.permute.xlu0 %525 }
 0x151   :  { %v7175_v8 = vmax.f32 %v6998_v25, %v526_v6  ;;  %v522_v9 = vpop.permute.xlu1 %521 }
 0x152   :  { %v7182_v11 = vmax.f32 %v7000_v26, %v522_v9 }
 0x153   :  { %739 = vrot.lane.b32.xlu0 %v7172_v7, %s6837_s0  ;;  %745 = vrot.lane.b32.xlu1 %v7175_v8, %s6837_s0 }
 0x154   :  { %v532_v10 = vpop.permute.xlu0 %531 }
 0x155   :  { %v7185_v12 = vmax.f32 %v7006_v27, %v532_v10 }
 0x156   :  { %v534_v13 = vpop.permute.xlu1 %533 }
 0x157   :  { %751 = vrot.lane.b32.xlu0 %v7185_v12, %s6837_s0  ;;  %741 = vrot.lane.b32.xlu1 %v7182_v11, %s6837_s0  ;;  %v7192_v15 = vmax.f32 %v7012_v29, %v534_v13 }
 0x158   :  { %v528_v14 = vpop.permute.xlu0 %527 }
 0x159   :  { %v7195_v16 = vmax.f32 %v7010_v28, %v528_v14 }
 0x15a   :  { %v530_v17 = vpop.permute.xlu1 %529 }
 0x15b   :  { %747 = vrot.lane.b32.xlu0 %v7195_v16, %s6837_s0  ;;  %753 = vrot.lane.b32.xlu1 %v7192_v15, %s6837_s0  ;;  %v7202_v19 = vmax.f32 %v7016_v30, %v530_v17 }
 0x15c   :  { %v540_v18 = vpop.permute.xlu0 %539 }
 0x15d   :  { %v7205_v20 = vmax.f32 %v7022_v31, %v540_v18 }
 0x15e   :  { %v542_v21 = vpop.permute.xlu1 %541 }
 0x15f   :  { %759 = vrot.lane.b32.xlu0 %v7205_v20, %s6837_s0  ;;  %749 = vrot.lane.b32.xlu1 %v7202_v19, %s6837_s0  ;;  %v7212_v23 = vmax.f32 %v7028_v33, %v542_v21 }
 0x160   :  { %v536_v22 = vpop.permute.xlu0 %535 }
 0x161   :  { %v7215_v24 = vmax.f32 %v7026_v32, %v536_v22 }
 0x162   :  { %v538_v25 = vpop.permute.xlu1 %537 }
 0x163   :  { %755 = vrot.lane.b32.xlu0 %v7215_v24, %s6837_s0  ;;  %761 = vrot.lane.b32.xlu1 %v7212_v23, %s6837_s0  ;;  %v7222_v27 = vmax.f32 %v7032_v34, %v538_v25 }
 0x164   :  { %v548_v26 = vpop.permute.xlu0 %547 }
 0x165   :  { %v7225_v28 = vmax.f32 %v7038_v35, %v548_v26 }
 0x166   :  { %v550_v29 = vpop.permute.xlu1 %549 }
 0x167   :  { %767 = vrot.lane.b32.xlu0 %v7225_v28, %s6837_s0  ;;  %757 = vrot.lane.b32.xlu1 %v7222_v27, %s6837_s0  ;;  %v7232_v31 = vmax.f32 %v7044_v37, %v550_v29  ;;  %v6627_v37 = vld [vmem:[%s9525_s3 + $0x80] sm:$0xff]  }
 0x168   :  { %v544_v30 = vpop.permute.xlu0 %543  ;;  %6484 = vmatprep.subr.bf16.mxu0 %v6627_v37 }
 0x169   :  { %v7235_v32 = vmax.f32 %v7042_v36, %v544_v30  ;;  %6485 = vmatpush3.bf16.msra.mxu0 %v6627_v37 }
 0x16a   :  { %v546_v33 = vpop.permute.xlu1 %545 }
 0x16b   :  { %763 = vrot.lane.b32.xlu0 %v7235_v32, %s6837_s0  ;;  %769 = vrot.lane.b32.xlu1 %v7232_v31, %s6837_s0  ;;  %v7242_v35 = vmax.f32 %v7048_v38, %v546_v33 }
 0x16c   :  { %v556_v34 = vpop.permute.xlu0 %555 }
 0x16d   :  { %v7245_v3 = vmax.f32 %v7054_v39, %v556_v34  ;;  %v6628_v39 = vld [vmem:[%s9525_s3 + $0x88] sm:$0xff]  }
 0x16e   :  { %v558_v36 = vpop.permute.xlu1 %557  ;;  %6486 = vmatprep.subr.bf16.mxu0 %v6628_v39 }
 0x16f   :  { %775 = vrot.lane.b32.xlu0 %v7245_v3, %s6837_s0  ;;  %765 = vrot.lane.b32.xlu1 %v7242_v35, %s6837_s0  ;;  %v7255_v6 = vmax.f32 %v7060_v41, %v558_v36 }
 0x170   :  { %v552_v5 = vpop.permute.xlu0 %551  ;;  %6487 = vmatpush3.bf16.msra.mxu0 %v6628_v39 }
 0x171   :  { %v7258_v38 = vmax.f32 %v7058_v40, %v552_v5 }
 0x172   :  { %v554_v9 = vpop.permute.xlu1 %553 }
 0x173   :  { %771 = vrot.lane.b32.xlu0 %v7258_v38, %s6837_s0  ;;  %777 = vrot.lane.b32.xlu1 %v7255_v6, %s6837_s0  ;;  %v7268_v41 = vmax.f32 %v7064_v42, %v554_v9 }
 0x174   :  { %v564_v10 = vpop.permute.xlu0 %563 }
 0x175   :  { %v7271_v40 = vmax.f32 %v7070_v43, %v564_v10 }
 0x176   :  { %v566_v13 = vpop.permute.xlu1 %565 }
 0x177   :  { %783 = vrot.lane.b32.xlu0 %v7271_v40, %s6837_s0  ;;  %773 = vrot.lane.b32.xlu1 %v7268_v41, %s6837_s0  ;;  %v7278_v17 = vmax.f32 %v7076_v45, %v566_v13 }
 0x178   :  { %v560_v14 = vpop.permute.xlu0 %559 }
 0x179   :  { %v7281_v18 = vmax.f32 %v7074_v44, %v560_v14 }
 0x17a   :  { %v562_v42 = vpop.permute.xlu1 %561 }
 0x17b   :  { %779 = vrot.lane.b32.xlu0 %v7281_v18, %s6837_s0  ;;  %785 = vrot.lane.b32.xlu1 %v7278_v17, %s6837_s0  ;;  %v7288_v21 = vmax.f32 %v7080_v46, %v562_v42 }
 0x17c   :  { %v572_v43 = vpop.permute.xlu0 %571 }
 0x17d   :  { %v7296_v45 = vmax.f32 %v7086_v47, %v572_v43 }
 0x17e   :  { %v574_v22 = vpop.permute.xlu1 %573 }
 0x17f   :  { %v7291_v25 = vmax.f32 %v7092_v49, %v574_v22  ;;  %781 = vrot.lane.b32.xlu1 %v7288_v21, %s6837_s0 }
 0x180   :  { %v568_v44 = vpop.permute.xlu0 %567 }
 0x181   :  { %793 = vrot.lane.b32.xlu0 %v7291_v25, %s6837_s0  ;;  %v7306_v49 = vmax.f32 %v7090_v48, %v568_v44 }
 0x182   :  { %v570_v26 = vpop.permute.xlu1 %569 }
 0x183   :  { %v7301_v29 = vmax.f32 %v7096_v50, %v570_v26  ;;  %791 = vrot.lane.b32.xlu1 %v7296_v45, %s6837_s0  ;;  %v6631_v26 = vld [vmem:[%s9525_s3 + $0x10] sm:$0xff]  }
 0x184   :  { %v580_v46 = vpop.permute.xlu0 %579 }
 0x185   :  { %789 = vrot.lane.b32.xlu0 %v7301_v29, %s6837_s0  ;;  %v7316_v50 = vmax.f32 %v7102_v51, %v580_v46  ;;  %v6632_v46 = vld [vmem:[%s9525_s3 + $0x18] sm:$0xff]  }
 0x186   :  { %v582_v30 = vpop.permute.xlu1 %581 }
 0x187   :  { %v7311_v47 = vmax.f32 %v7108_v53, %v582_v30  ;;  %787 = vrot.lane.b32.xlu1 %v7306_v49, %s6837_s0 }
 0x188   :  { %v576_v33 = vpop.permute.xlu0 %575 }
 0x189   :  { %801 = vrot.lane.b32.xlu0 %v7311_v47, %s6837_s0  ;;  %v7326_v53 = vmax.f32 %v7106_v52, %v576_v33  ;;  %v6633_v33 = vld [vmem:[%s9525_s3 + $0x20] sm:$0xff]  }
 0x18a   :  { %v578_v34 = vpop.permute.xlu1 %577 }
 0x18b   :  { %v7321_v48 = vmax.f32 %v7112_v54, %v578_v34  ;;  %799 = vrot.lane.b32.xlu1 %v7316_v50, %s6837_s0  ;;  %v7414_v34 = vld [vmem:[%s9524_s2] ss:$0 sm:$0xff] }
 0x18c   :  { %v588_v37 = vpop.permute.xlu0 %587 }
 0x18d   :  { %797 = vrot.lane.b32.xlu0 %v7321_v48, %s6837_s0  ;;  %v7336_v54 = vmax.f32 %v7118_v55, %v588_v37 }
 0x18e   :  { %v590_v36 = vpop.permute.xlu1 %589 }
 0x18f   :  { %v7331_v51 = vmax.f32 %v7124_v57, %v590_v36  ;;  %795 = vrot.lane.b32.xlu1 %v7326_v53, %s6837_s0 }
 0x190   :  { %v584_v5 = vpop.permute.xlu0 %583 }
 0x191   :  { %809 = vrot.lane.b32.xlu0 %v7331_v51, %s6837_s0  ;;  %v7346_v57 = vmax.f32 %v7122_v56, %v584_v5 }
 0x192   :  { %v586_v39 = vpop.permute.xlu1 %585 }
 0x193   :  { %v7341_v52 = vmax.f32 %v7128_v58, %v586_v39  ;;  %807 = vrot.lane.b32.xlu1 %v7336_v54, %s6837_s0 }
 0x194   :  { %v596_v9 = vpop.permute.xlu0 %595 }
 0x195   :  { %805 = vrot.lane.b32.xlu0 %v7341_v52, %s6837_s0  ;;  %v7356_v58 = vmax.f32 %v7134_v59, %v596_v9  ;;  %v6634_v9 = vld [vmem:[%s9525_s3 + $0x28] sm:$0xff]  }
 0x196   :  { %v598_v10 = vpop.permute.xlu1 %597 }
 0x197   :  { %v7351_v55 = vmax.f32 %v7140_v61, %v598_v10  ;;  %803 = vrot.lane.b32.xlu1 %v7346_v57, %s6837_s0 }
 0x198   :  { %v592_v13 = vpop.permute.xlu0 %591 }
 0x199   :  { %817 = vrot.lane.b32.xlu0 %v7351_v55, %s6837_s0  ;;  %v7366_v61 = vmax.f32 %v7138_v60, %v592_v13 }
 0x19a   :  { %v594_v14 = vpop.permute.xlu1 %593 }
 0x19b   :  { %v7361_v56 = vmax.f32 %v7144_v62, %v594_v14  ;;  %815 = vrot.lane.b32.xlu1 %v7356_v58, %s6837_s0 }
 0x19c   :  { %v604_v42 = vpop.permute.xlu0 %603 }
 0x19d   :  { %813 = vrot.lane.b32.xlu0 %v7361_v56, %s6837_s0  ;;  %v7376_v62 = vmax.f32 %v7150_v63, %v604_v42  ;;  %v9535_v63 = vmov 0  }
 0x19e   :  { %v606_v43 = vpop.permute.xlu1 %605  ;;  %3050 = vmatprep.subr.bf16.mxu1 %v9535_v63 }
 0x19f   :  { %v7371_v59 = vmax.f32 %v7156_v1, %v606_v43  ;;  %811 = vrot.lane.b32.xlu1 %v7366_v61, %s6837_s0 }
 0x1a0   :  { %v600_v22 = vpop.permute.xlu0 %599 }
 0x1a1   :  { %825 = vrot.lane.b32.xlu0 %v7371_v59, %s6837_s0  ;;  %v7386_v1 = vmax.f32 %v7154_v0, %v600_v22  ;;  %v6630_v0 = vld [vmem:[%s9525_s3 + $0x8] sm:$0xff]   ;;  %v6635_v22 = vld [vmem:[%s9525_s3 + $0x30] sm:$0xff]  }
 0x1a2   :  { %v602_v44 = vpop.permute.xlu1 %601 }
 0x1a3   :  { %v7381_v60 = vmax.f32 %v7160_v2, %v602_v44  ;;  %823 = vrot.lane.b32.xlu1 %v7376_v62, %s6837_s0  ;;  %v6629_v2 = vld [vmem:[%s9525_s3] sm:$0xff]  }
 0x1a4   :  { %3051 = vmatpush1.bf16.msra.mxu1 %v6629_v2 }
 0x1a5   :  { %821 = vrot.lane.b32.xlu0 %v7381_v60, %s6837_s0  ;;  %3052 = vmatprep.subr.bf16.mxu1 %v9535_v63 }
 0x1a7   :  { %819 = vrot.lane.b32.xlu1 %v7386_v1, %s6837_s0 }
 0x1a8   :  { %3053 = vmatpush1.bf16.msra.mxu1 %v6630_v0 }
 0x1a9   :  { %3054 = vmatprep.subr.bf16.mxu1 %v9535_v63 }
 0x1ac   :  { %3055 = vmatpush1.bf16.msra.mxu1 %v6631_v26 }
 0x1ad   :  { %3056 = vmatprep.subr.bf16.mxu1 %v9535_v63 }
 0x1b0   :  { %3057 = vmatpush1.bf16.msra.mxu1 %v6632_v46 }
 0x1b1   :  { %3058 = vmatprep.subr.bf16.mxu1 %v9535_v63 }
 0x1b4   :  { %3059 = vmatpush1.bf16.msra.mxu1 %v6633_v33 }
 0x1b5   :  { %3060 = vmatprep.subr.bf16.mxu1 %v9535_v63 }
 0x1b8   :  { %3061 = vmatpush1.bf16.msra.mxu1 %v6634_v9 }
 0x1b9   :  { %3062 = vmatprep.subr.bf16.mxu1 %v9535_v63 }
 0x1bc   :  { %3063 = vmatpush1.bf16.msra.mxu1 %v6635_v22 }
 0x1bd   :  { %3064 = vmatprep.subr.bf16.mxu1 %v9535_v63 }
 0x1c1   :  { %v744_v30 = vpop.permute.xlu0 %743 }
 0x1c2   :  { %v873_v37 = vmax.f32 %v7167_v4, %v744_v30 }
 0x1c4   :  { %v924_v36 = vadd.f32 %v7414_v34, %v873_v37  ;;  %v6636_v37 = vld [vmem:[%s9525_s3 + $0x38] sm:$0xff]  }
 0x1c5   :  { %v740_v5 = vpop.permute.xlu0 %739  ;;  %v746_v39 = vpop.permute.xlu1 %745  ;;  %3065 = vmatpush1.bf16.msra.mxu1 %v6636_v37 }
 0x1c6   :  { %v871_v10 = vmax.f32 %v7172_v7, %v740_v5  ;;  %v874_v13 = vmax.f32 %v7175_v8, %v746_v39  ;;  %v968_v4 = vmax.f32 %v924_v36, 0.0  ;;  %3066 = vmatprep.subr.bf16.mxu1 %v9535_v63 }
 0x1c8   :  { %v925_v14 = vadd.f32 %v7414_v34, %v874_v13  ;;  %v922_v44 = vadd.f32 %v7414_v34, %v871_v10 }
 0x1c9   :  { %v752_v42 = vpop.permute.xlu0 %751  ;;  %v742_v43 = vpop.permute.xlu1 %741 }
 0x1ca   :  { %v969_v2 = vmax.f32 %v925_v14, 0.0  ;;  %v877_v0 = vmax.f32 %v7185_v12, %v752_v42  ;;  %v872_v7 = vmax.f32 %v7182_v11, %v742_v43  ;;  %v966_v36 = vmax.f32 %v922_v44, 0.0 }
 0x1cc   :  { %v1011_v8 = vpack.c.bf16 %v969_v2, %v968_v4  ;;  %v923_v26 = vadd.f32 %v7414_v34, %v872_v7  ;;  %v928_v46 = vadd.f32 %v7414_v34, %v877_v0  ;;  %v6637_v4 = vld [vmem:[%s9525_s3 + $0x40] sm:$0xff]  }
 0x1cd   :  { %v748_v30 = vpop.permute.xlu0 %747  ;;  %v754_v33 = vpop.permute.xlu1 %753  ;;  %3067 = vmatpush1.bf16.msra.mxu1 %v6637_v4 }
 0x1ce   :  { %1034 = vst.msk [vmem:[#allocation2 + $0x8] sm:$0xff] %vm1032_vm1, %v1011_v8  ;;  %v967_v12 = vmax.f32 %v923_v26, 0.0  ;;  %v875_v11 = vmax.f32 %v7195_v16, %v748_v30  ;;  %v878_v5 = vmax.f32 %v7192_v15, %v754_v33  ;;  %v972_v10 = vmax.f32 %v928_v46, 0.0  ;;  %3068 = vmatprep.subr.bf16.mxu1 %v9535_v63 }
 0x1d0   :  { %v1010_v39 = vpack.c.bf16 %v967_v12, %v966_v36  ;;  %v929_v9 = vadd.f32 %v7414_v34, %v878_v5  ;;  %v926_v42 = vadd.f32 %v7414_v34, %v875_v11  ;;  %v6638_v12 = vld [vmem:[%s9525_s3 + $0x48] sm:$0xff]  }
 0x1d1   :  { %v760_v13 = vpop.permute.xlu0 %759  ;;  %v750_v14 = vpop.permute.xlu1 %749  ;;  %3069 = vmatpush1.bf16.msra.mxu1 %v6638_v12 }
 0x1d2   :  { %1033 = vst.msk [vmem:[#allocation2] sm:$0xff] %vm1032_vm1, %v1010_v39  ;;  %v973_v16 = vmax.f32 %v929_v9, 0.0  ;;  %v881_v15 = vmax.f32 %v7205_v20, %v760_v13  ;;  %v876_v43 = vmax.f32 %v7202_v19, %v750_v14  ;;  %v970_v46 = vmax.f32 %v926_v42, 0.0  ;;  %3070 = vmatprep.subr.bf16.mxu1 %v9535_v63 }
 0x1d4   :  { %v1013_v22 = vpack.c.bf16 %v973_v16, %v972_v10  ;;  %v932_v44 = vadd.f32 %v7414_v34, %v881_v15  ;;  %v927_v2 = vadd.f32 %v7414_v34, %v876_v43 }
 0x1d5   :  { %v7453_v0 = vld [vmem:[#allocation2 + $0x8] sm:$0xc0]  ;;  %v756_v7 = vpop.permute.xlu0 %755  ;;  %v762_v8 = vpop.permute.xlu1 %761 }
 0x1d6   :  { %v7455_v26 = vld [vmem:[#allocation2 + $0x8] sm:$0xff]  ;;  %1036 = vst.msk [vmem:[#allocation2 + $0x18] sm:$0xff] %vm1032_vm1, %v1013_v22  ;;  %v971_v20 = vmax.f32 %v927_v2, 0.0  ;;  %v879_v19 = vmax.f32 %v7215_v24, %v756_v7  ;;  %v2705_v33 = vrot.slane %v7453_v0, 6  ;;  %v882_v37 = vmax.f32 %v7212_v23, %v762_v8 }
 0x1d7   :  { %v7460_v30 = vld [vmem:[#allocation2 + $0x8] sm:$0xff]  ;;  %v7465_v36 = vshrl.u32 %v7455_v26, 16  ;;  %v976_v24 = vmax.f32 %v932_v44, 0.0  ;;  %v9534_v39 = vrot.slane %v7455_v26, 1  ;;  %v7484_v2 = vshll.u32 %v7455_v26, 16 }
 0x1d8   :  { %1076 = vst.msk [vmem:[#allocation3 + $0x18] sm:$0xff] %vm1032_vm1, %v7460_v30  ;;  %v1012_v11 = vpack.c.bf16 %v971_v20, %v970_v46  ;;  %v930_v5 = vadd.f32 %v7414_v34, %v879_v19  ;;  %v7474_v9 = vld [vmem:[#allocation2 + $0x8] sm:$0xe0]  ;;  %v933_v10 = vadd.f32 %v7414_v34, %v882_v37 }
 0x1d9   :  { %v7476_v23 = vld [vmem:[#allocation2 + $0x8] sm:$0xe0]  ;;  %v768_v13 = vpop.permute.xlu0 %767  ;;  %v758_v14 = vpop.permute.xlu1 %757  ;;  %v1362_v4 = vld [vmem:[#allocation2] sm:$0xfe]  ;;  %v9533_v16 = vrot.slane %v7465_v36, 7 }
 0x1da   :  { %v1942_v42 = vld [vmem:[#allocation2] sm:$0x80]  ;;  %1035 = vst.msk [vmem:[#allocation2 + $0x10] sm:$0xff] %vm1032_vm1, %v1012_v11  ;;  %v885_v43 = vmax.f32 %v7225_v28, %v768_v13  ;;  %v880_v22 = vmax.f32 %v7222_v27, %v758_v14  ;;  %v1405_v44 = vrot.slane %v1362_v4, 1  ;;  %v977_v8 = vmax.f32 %v933_v10, 0.0  ;;  %v6639_v27 = vld [vmem:[%s9525_s3 + $0x50] sm:$0xff]  }
 0x1db   :  { %v1095_v15 = vld [vmem:[#allocation2] sm:$0xff]  ;;  %v1965_v46 = vshrl.u32 %v1942_v42, 16  ;;  %v974_v28 = vmax.f32 %v930_v5, 0.0  ;;  %v1974_v5 = vor.u32 %v7484_v2, %v9533_v16  ;;  %3071 = vmatpush1.bf16.msra.mxu1 %v6639_v27 }
 0x1dc   :  { %v7486_v7 = vld [vmem:[#allocation2] sm:$0xc0]  ;;  %v931_v12 = vadd.f32 %v7414_v34, %v880_v22  ;;  %v1407_v11 = vsel %vm1404_vm2, %v1405_v44, %v9534_v39  ;;  %v1120_v13 = vshll.u32 %v1095_v15, 16  ;;  %v1015_v10 = vpack.c.bf16 %v977_v8, %v976_v24  ;;  %v6640_v44 = vld [vmem:[%s9525_s3 + $0x58] sm:$0xff]   ;;  %3072 = vmatprep.subr.bf16.mxu1 %v9535_v63 }
 0x1dd   :  { %v1055_v37 = vld [vmem:[#allocation2] sm:$0xff]  ;;  %v764_v14 = vpop.permute.xlu0 %763  ;;  %1446 = vrot.lane.b32.xlu1 %v1407_v11, %s6837_s0  ;;  %v770_v4 = vpop.permute.xlu1 %769  ;;  %v1967_v42 = vrot.slane %v1965_v46, 7  ;;  %v1550_v22 = vshrl.u32 %v7486_v7, 16  ;;  %v7507_v19 = vld [vmem:[#allocation2 + $0x18] sm:$0xff]  ;;  %v936_v24 = vadd.f32 %v7414_v34, %v885_v43  ;;  %v1118_v11 = vshrl.u32 %v1095_v15, 16 }
 0x1de   :  { %1075 = vst.msk [vmem:[#allocation3] sm:$0xff] %vm1032_vm1, %v1055_v37  ;;  %v975_v8 = vmax.f32 %v931_v12, 0.0  ;;  %v883_v37 = vmax.f32 %v7235_v32, %v764_v14  ;;  %1078 = vst.msk [vmem:[#allocation3 + $0x48] sm:$0xff] %vm1032_vm1, %v7507_v19  ;;  %v886_v46 = vmax.f32 %v7232_v31, %v770_v4  ;;  %v1122_v16 = vrot.slane %v1120_v13, 1 }
 0x1df   :  { %1038 = vst.msk [vmem:[#allocation2 + $0x28] sm:$0xff] %vm1032_vm1, %v1015_v10  ;;  %v1975_v27 = vsel %vm1963_vm3, %v1967_v42, %v1974_v5  ;;  %v1127_v39 = vrot.slane %v7484_v2, 1  ;;  %v1553_v32 = vshll.u32 %v7486_v7, 16  ;;  %v1560_v15 = vrot.slane %v7465_v36, 6  ;;  %3073 = vmatpush1.bf16.msra.mxu1 %v6640_v44 }
 0x1e0   :  { %v1014_v20 = vpack.c.bf16 %v975_v8, %v974_v28  ;;  %v934_v43 = vadd.f32 %v7414_v34, %v883_v37  ;;  %2128 = vrot.lane.b32.xlu0 %v1975_v27, %s6839_s27  ;;  %v937_v10 = vadd.f32 %v7414_v34, %v886_v46  ;;  %v1123_v14 = vor.u32 %v1122_v16, %v1118_v11  ;;  %v6641_v28 = vld [vmem:[%s9525_s3 + $0x60] sm:$0xff]   ;;  %v7541_v27 = vld [vmem:[#allocation2 + $0x18] sm:$0xff] }
 0x1e1   :  { %v7522_v12 = vld [vmem:[#allocation2 + $0x10] sm:$0xff]  ;;  %v776_v31 = vpop.permute.xlu0 %775  ;;  %v766_v4 = vpop.permute.xlu1 %765  ;;  %v1552_v13 = vrot.slane %v1550_v22, 6  ;;  %v1563_v42 = vrot.slane %v7484_v2, 7  ;;  %v980_v8 = vmax.f32 %v936_v24, 0.0  ;;  %3074 = vmatprep.subr.bf16.mxu1 %v9535_v63  ;;  %v1555_v46 = vrot.slane %v1553_v32, 7 }
 0x1e2   :  { %v7529_v5 = vld [vmem:[#allocation2 + $0x10] sm:$0xff]  ;;  %v2706_v7 = vrot.slane %v7522_v12, 6  ;;  %1037 = vst.msk [vmem:[#allocation2 + $0x20] sm:$0xff] %vm1032_vm1, %v1014_v20  ;;  %v889_v37 = vmax.f32 %v7245_v3, %v776_v31  ;;  %v884_v16 = vmax.f32 %v7242_v35, %v766_v4  ;;  %v978_v22 = vmax.f32 %v934_v43, 0.0 }
 0x1e3   :  { %1077 = vst.msk [vmem:[#allocation3 + $0x30] sm:$0xff] %vm1032_vm1, %v7529_v5  ;;  %v981_v44 = vmax.f32 %v937_v10, 0.0  ;;  %v1128_v11 = vsel %vm1116_vm4, %v1123_v14, %v1127_v39  ;;  %v7546_v3 = vor.u32 %v1563_v42, %v1560_v15  ;;  %v2252_v24 = vrot.slane %v7522_v12, 5  ;;  %3075 = vmatpush1.bf16.msra.mxu1 %v6641_v28  ;;  %v6642_v15 = vld [vmem:[%s9525_s3 + $0x68] sm:$0xff]  }
 0x1e4   :  { %v940_v20 = vadd.f32 %v7414_v34, %v889_v37  ;;  %1281 = vrot.lane.b32.xlu1 %v1128_v11, %s6839_s27  ;;  %v935_v35 = vadd.f32 %v7414_v34, %v884_v16  ;;  %v1556_v10 = vor.u32 %v1555_v46, %v1552_v13  ;;  %v1408_v63 = vrot.slane %v7522_v12, 1 }
 0x1e5   :  { %v1017_v31 = vpack.c.bf16 %v981_v44, %v980_v8  ;;  %v772_v43 = vpop.permute.xlu0 %771  ;;  %v778_v4 = vpop.permute.xlu1 %777  ;;  %v2707_v32 = vsel %vm2704_vm5, %v2705_v33, %v2706_v7  ;;  %v9540_v13 = vrot.slane %v7474_v9, 5  ;;  %v7566_v0 = vshrl.u32 %v7522_v12, 16 }
 0x1e6   :  { %v7558_v14 = vld [vmem:[#allocation2 + $0x28] sm:$0xff]  ;;  %v979_v42 = vmax.f32 %v935_v35, 0.0  ;;  %v887_v8 = vmax.f32 %v7258_v38, %v772_v43  ;;  %2766 = vst.msk [vmem:[#allocation3 + $0x10] sm:$0xff] %vm1032_vm1, %v2707_v32  ;;  %v9541_v33 = vmov 0   ;;  %v9538_v16 = vrot.slane %v7541_v27, 6 }
 0x1e7   :  { %v2253_v37 = vsel %vm2250_vm6, %v9540_v13, %v2252_v24  ;;  %3076 = vmatprep.subr.bf16.mxu1 %v9541_v33  ;;  %v7569_v28 = vld [vmem:[#allocation2 + $0x28] sm:$0xff]  ;;  %1040 = vst.msk [vmem:[#allocation2 + $0x38] sm:$0xff] %vm1032_vm1, %v1017_v31  ;;  %v1565_v38 = vsel %vm1548_vm7, %v1556_v10, %v7546_v3  ;;  %v890_v9 = vmax.f32 %v7255_v6, %v778_v4  ;;  %v9537_v44 = vrot.slane %v7541_v27, 5 }
 0x1e8   :  { %2292 = vrot.lane.b32.xlu0 %v2253_v37, %s6837_s0  ;;  %1080 = vst.msk [vmem:[#allocation3 + $0x78] sm:$0xff] %vm1032_vm1, %v7569_v28  ;;  %v984_v46 = vmax.f32 %v940_v20, 0.0  ;;  %v1016_v35 = vpack.c.bf16 %v979_v42, %v978_v22  ;;  %v938_v43 = vadd.f32 %v7414_v34, %v887_v8  ;;  %1737 = vrot.lane.b32.xlu1 %v1565_v38, %s6836_s17  ;;  %v9542_v4 = vrot.slane %v7455_v26, 1  ;;  %v6643_v42 = vld [vmem:[%s9525_s3 + $0x70] sm:$0xff]  }
 0x1e9   :  { %v941_v31 = vadd.f32 %v7414_v34, %v890_v9  ;;  %v784_v10 = vpop.permute.xlu0 %783  ;;  %v2255_v6 = vsel %vm2250_vm6, %v2252_v24, %v9537_v44  ;;  %v774_v20 = vpop.permute.xlu1 %773  ;;  %v7593_v22 = vshrl.u32 %v7541_v27, 16  ;;  %3077 = vmatpush1.bf16.msra.mxu1 %v6642_v15  ;;  %v7598_v8 = vld [vmem:[#allocation2 + $0x20] sm:$0xff]  ;;  %v1979_v26 = vrot.slane %v7566_v0, 7 }
 0x1ea   :  { %v1409_v32 = vsel %vm1404_vm2, %v9542_v4, %v1408_v63  ;;  %1039 = vst.msk [vmem:[#allocation2 + $0x30] sm:$0xff] %vm1032_vm1, %v1016_v35  ;;  %v893_v24 = vmax.f32 %v7271_v40, %v784_v10  ;;  %v888_v13 = vmax.f32 %v7268_v41, %v774_v20  ;;  %v7605_v37 = vshll.u32 %v7522_v12, 16  ;;  %3078 = vmatprep.subr.bf16.mxu1 %v9541_v33 }
 0x1eb   :  { %1079 = vst.msk [vmem:[#allocation3 + $0x60] sm:$0xff] %vm1032_vm1, %v7598_v8  ;;  %v985_v15 = vmax.f32 %v941_v31, 0.0  ;;  %v9539_v38 = vrot.slane %v7593_v22, 7  ;;  %v7613_v9 = vshll.u32 %v7541_v27, 16  ;;  %v2709_v41 = vsel %vm2704_vm5, %v2706_v7, %v9538_v16 }
 0x1ec   :  { %2294 = vrot.lane.b32.xlu0 %v2255_v6, %s6837_s0  ;;  %v982_v40 = vmax.f32 %v938_v43, 0.0  ;;  %1448 = vrot.lane.b32.xlu1 %v1409_v32, %s6837_s0  ;;  %v939_v35 = vadd.f32 %v7414_v34, %v888_v13  ;;  %v1410_v31 = vrot.slane %v7541_v27, 1  ;;  %2767 = vst.msk [vmem:[#allocation3 + $0x28] sm:$0xff] %vm1032_vm1, %v2709_v41  ;;  %v2398_v10 = vshll.u32 %v7476_v23, 16  ;;  %v6644_v13 = vld [vmem:[%s9525_s3 + $0x78] sm:$0xff]   ;;  %v7634_v41 = vld [vmem:[#allocation2 + $0x20] sm:$0xff] }
 0x1ed   :  { %v1019_v6 = vpack.c.bf16 %v985_v15, %v984_v46  ;;  %v780_v4 = vpop.permute.xlu0 %779  ;;  %v2788_v20 = vld [vmem:[#allocation3 + $0x10] sm:$0xff]  ;;  %v1990_v44 = vor.u32 %v7613_v9, %v9539_v38  ;;  %v786_v11 = vpop.permute.xlu1 %785  ;;  %v9543_v7 = vshrl.u32 %v7476_v23, 16  ;;  %v2405_v32 = vrot.slane %v7566_v0, 5  ;;  %3079 = vmatpush1.bf16.msra.mxu1 %v6643_v42 }
 0x1ee   :  { %v944_v46 = vadd.f32 %v7414_v34, %v893_v24  ;;  %v983_v15 = vmax.f32 %v939_v35, 0.0  ;;  %v891_v16 = vmax.f32 %v7281_v18, %v780_v4  ;;  %6488 = vmatprep.mubr.msk.bf16.mxu0 %vm1032_vm1, %v2788_v20  ;;  %v894_v38 = vmax.f32 %v7278_v17, %v786_v11  ;;  %3080 = vmatprep.subr.bf16.mxu1 %v9541_v33  ;;  %v7641_v23 = vld [vmem:[#allocation2 + $0x38] sm:$0xff] }
 0x1ef   :  { %v2397_v43 = vrot.slane %v9543_v7, 5  ;;  %1042 = vst.msk [vmem:[#allocation2 + $0x48] sm:$0xff] %vm1032_vm1, %v1019_v6  ;;  %v1991_v42 = vsel %vm1963_vm3, %v1979_v26, %v1990_v44  ;;  %v1411_v24 = vsel %vm1404_vm2, %v1408_v63, %v1410_v31  ;;  %v2400_v35 = vrot.slane %v2398_v10, 6  ;;  %1082 = vst.msk [vmem:[#allocation3 + $0xa8] sm:$0xff] %vm1032_vm1, %v7641_v23 }
 0x1f0   :  { %v2408_v18 = vrot.slane %v7605_v37, 6  ;;  %v1018_v17 = vpack.c.bf16 %v983_v15, %v982_v40  ;;  %v942_v33 = vadd.f32 %v7414_v34, %v891_v16  ;;  %2132 = vrot.lane.b32.xlu0 %v1991_v42, %s6839_s27  ;;  %1450 = vrot.lane.b32.xlu1 %v1411_v24, %s6837_s0  ;;  %v945_v44 = vadd.f32 %v7414_v34, %v894_v38 }
 0x1f1   :  { %v1135_v11 = vrot.slane %v7605_v37, 1  ;;  %v2710_v12 = vrot.slane %v7634_v41, 6  ;;  %v2401_v63 = vor.u32 %v2400_v35, %v2397_v43  ;;  %v1131_v6 = vor.u32 %v7465_v36, %v1127_v39  ;;  %v782_v4 = vpop.permute.xlu1 %781  ;;  %3081 = vmatpush1.bf16.msra.mxu1 %v6644_v13  ;;  %v7662_v40 = vld [vmem:[#allocation2 + $0x30] sm:$0xff] }
 0x1f2   :  { %v2409_v10 = vor.u32 %v2408_v18, %v2405_v32  ;;  %v988_v16 = vmax.f32 %v944_v46, 0.0  ;;  %1041 = vst.msk [vmem:[#allocation2 + $0x40] sm:$0xff] %vm1032_vm1, %v1018_v17  ;;  %v989_v20 = vmax.f32 %v945_v44, 0.0  ;;  %v892_v38 = vmax.f32 %v7288_v21, %v782_v4  ;;  %1081 = vst.msk [vmem:[#allocation3 + $0x90] sm:$0xff] %vm1032_vm1, %v7662_v40  ;;  %v7672_v46 = vld [vmem:[#allocation2 + $0x38] sm:$0xff]  ;;  %v7674_v42 = vld [vmem:[#allocation2 + $0x30] sm:$0xff] }
 0x1f3   :  { %v1982_v7 = vor.u32 %v7605_v37, %v1979_v26  ;;  %v986_v43 = vmax.f32 %v942_v33, 0.0  ;;  %v2791_v32 = vld [vmem:[#allocation3 + $0x28] sm:$0xff]  ;;  %v1136_v39 = vsel %vm1116_vm4, %v1131_v6, %v1135_v11  ;;  %v794_v13 = vpop.permute.xlu0 %793  ;;  %v1569_v15 = vrot.slane %v7566_v0, 6 }
 0x1f4   :  { %v2410_v2 = vsel %vm2393_vm8, %v2401_v63, %v2409_v10  ;;  %v1021_v24 = vpack.c.bf16 %v989_v20, %v988_v16  ;;  %6489 = vmatmul.mubr.msk.bf16.vlgmr.msra.gmra.mrb[44].mxu0 %vm1032_vm1, %v2791_v32  ;;  %v943_v21 = vadd.f32 %v7414_v34, %v892_v38  ;;  %v898_v26 = vmax.f32 %v7291_v25, %v794_v13 }
 0x1f5   :  { %2582 = vrot.lane.b32.xlu0 %v2410_v2, %s6836_s17  ;;  %v1572_v35 = vrot.slane %v7605_v37, 7  ;;  %1283 = vrot.lane.b32.xlu1 %v1136_v39, %s6839_s27  ;;  %v9544_v18 = vrot.slane %v7541_v27, 6  ;;  %v792_v33 = vpop.permute.xlu1 %791  ;;  %v9545_v44 = vrot.slane %v7558_v14, 6  ;;  %v2414_v6 = vrot.slane %v7593_v22, 5 }
 0x1f6   :  { %v2417_v4 = vrot.slane %v7613_v9, 6  ;;  %1044 = vst.msk [vmem:[#allocation2 + $0x58] sm:$0xff] %vm1032_vm1, %v1021_v24  ;;  %v987_v25 = vmax.f32 %v943_v21, 0.0  ;;  %v949_v37 = vadd.f32 %v7414_v34, %v898_v26  ;;  %v897_v20 = vmax.f32 %v7296_v45, %v792_v33  ;;  %v7697_v38 = vld [vmem:[#allocation2 + $0x48] sm:$0xff] }
 0x1f7   :  { %v2711_v17 = vsel %vm2704_vm5, %v9544_v18, %v2710_v12  ;;  %v2713_v63 = vsel %vm2704_vm5, %v2710_v12, %v9545_v44  ;;  %v7692_v16 = vor.u32 %v1572_v35, %v1569_v15  ;;  %v2716_v12 = vrot.slane %v7672_v46, 6  ;;  %v790_v13 = vpop.permute.xlu0 %789  ;;  %1084 = vst.msk [vmem:[#allocation3 + $0xd8] sm:$0xff] %vm1032_vm1, %v7697_v38  ;;  %v7720_v33 = vld [vmem:[#allocation2 + $0x48] sm:$0xff] }
 0x1f8   :  { %2768 = vst.msk [vmem:[#allocation3 + $0x40] sm:$0xff] %vm1032_vm1, %v2711_v17  ;;  %2769 = vst.msk [vmem:[#allocation3 + $0x58] sm:$0xff] %vm1032_vm1, %v2713_v63  ;;  %v2714_v32 = vrot.slane %v7674_v42, 6  ;;  %v9546_v2 = vrot.slane %v7465_v36, 7  ;;  %v7704_v24 = vor.u32 %v2417_v4, %v2414_v6  ;;  %v1020_v15 = vpack.c.bf16 %v987_v25, %v986_v43 }
 0x1f9   :  { %v1574_v45 = vsel %vm1548_vm7, %v7546_v3, %v7692_v16  ;;  %v948_v21 = vadd.f32 %v7414_v34, %v897_v20  ;;  %v1139_v26 = vor.u32 %v7566_v0, %v1135_v11  ;;  %v993_v36 = vmax.f32 %v949_v37, 0.0  ;;  %v788_v18 = vpop.permute.xlu1 %787  ;;  %v7718_v17 = vld [vmem:[#allocation2 + $0x40] sm:$0xff] }
 0x1fa   :  { %v1983_v39 = vsel %vm1963_vm3, %v9546_v2, %v1982_v7  ;;  %1739 = vrot.lane.b32.xlu1 %v1574_v45, %s6836_s17  ;;  %v896_v7 = vmax.f32 %v7301_v29, %v790_v13  ;;  %v1143_v35 = vrot.slane %v7613_v9, 1  ;;  %v1578_v43 = vrot.slane %v7593_v22, 6  ;;  %v7722_v44 = vld [vmem:[#allocation2 + $0x40] sm:$0xff]  ;;  %1043 = vst.msk [vmem:[#allocation2 + $0x50] sm:$0xff] %vm1032_vm1, %v1020_v15  ;;  %1083 = vst.msk [vmem:[#allocation3 + $0xc0] sm:$0xff] %vm1032_vm1, %v7718_v17 }
 0x1fb   :  { %2130 = vrot.lane.b32.xlu0 %v1983_v39, %s6839_s27  ;;  %v992_v3 = vmax.f32 %v948_v21, 0.0  ;;  %v2419_v0 = vsel %vm2393_vm8, %v2409_v10, %v7704_v24  ;;  %v895_v11 = vmax.f32 %v7306_v49, %v788_v18  ;;  %v1581_v29 = vrot.slane %v7613_v9, 7  ;;  %v802_v6 = vpop.permute.xlu0 %801 }
 0x1fc   :  { %v947_v63 = vadd.f32 %v7414_v34, %v896_v7  ;;  %v2256_v4 = vrot.slane %v7634_v41, 5  ;;  %v9547_v25 = vrot.slane %v7558_v14, 6  ;;  %v2717_v10 = vsel %vm2704_vm5, %v2714_v32, %v2716_v12 }
 0x1fd   :  { %v1023_v20 = vpack.c.bf16 %v993_v36, %v992_v3  ;;  %v1144_v49 = vsel %vm1116_vm4, %v1139_v26, %v1143_v35  ;;  %v946_v2 = vadd.f32 %v7414_v34, %v895_v11  ;;  %v902_v39 = vmax.f32 %v7311_v47, %v802_v6  ;;  %2771 = vst.msk [vmem:[#allocation3 + $0x88] sm:$0xff] %vm1032_vm1, %v2717_v10  ;;  %v800_v26 = vpop.permute.xlu1 %799  ;;  %v7761_v6 = vld [vmem:[#allocation2 + $0x58] sm:$0xff] }
 0x1fe   :  { %v2715_v37 = vsel %vm2704_vm5, %v9547_v25, %v2714_v32  ;;  %v2720_v13 = vrot.slane %v7720_v33, 6  ;;  %v2718_v15 = vrot.slane %v7722_v44, 6  ;;  %v7749_v32 = vld [vmem:[#allocation2 + $0x58] sm:$0xff]  ;;  %1285 = vrot.lane.b32.xlu1 %v1144_v49, %s6839_s27  ;;  %v7752_v36 = vor.u32 %v1581_v29, %v1578_v43  ;;  %1086 = vst.msk [vmem:[#allocation3 + $0x108] sm:$0xff] %vm1032_vm1, %v7761_v6 }
 0x1ff   :  { %2584 = vrot.lane.b32.xlu0 %v2419_v0, %s6836_s17  ;;  %2770 = vst.msk [vmem:[#allocation3 + $0x70] sm:$0xff] %vm1032_vm1, %v2715_v37  ;;  %v2794_v45 = vld [vmem:[#allocation3 + $0x40] sm:$0xff]  ;;  %v2797_v21 = vld [vmem:[#allocation3 + $0x58] sm:$0xff]  ;;  %v1412_v7 = vrot.slane %v7634_v41, 1  ;;  %1046 = vst.msk [vmem:[#allocation2 + $0x68] sm:$0xff] %vm1032_vm1, %v1023_v20  ;;  %v991_v47 = vmax.f32 %v947_v63, 0.0  ;;  %v953_v3 = vadd.f32 %v7414_v34, %v902_v39  ;;  %v901_v29 = vmax.f32 %v7316_v50, %v800_v26  ;;  %v798_v25 = vpop.permute.xlu0 %797 }
 0x200   :  { %6492 = vmatprep.mubr.msk.bf16.mxu0 %vm1032_vm1, %v2794_v45  ;;  %v990_v18 = vmax.f32 %v946_v2, 0.0  ;;  %v9548_v0 = vrot.slane %v7541_v27, 5  ;;  %v2724_v43 = vrot.slane %v7749_v32, 6  ;;  %v2258_v37 = vrot.slane %v7558_v14, 5 }
 0x201   :  { %6493 = vmatmul.mubr.msk.bf16.gmra.mrb[48].mxu0 %vm1032_vm1, %v2797_v21  ;;  %v7768_v63 = vshrl.u32 %v7634_v41, 16  ;;  %v1583_v20 = vsel %vm1548_vm7, %v7692_v16, %v7752_v36  ;;  %v900_v49 = vmax.f32 %v7321_v48, %v798_v25  ;;  %v7778_v50 = vshrl.u32 %v7558_v14, 16  ;;  %v7780_v2 = vld [vmem:[#allocation2 + $0x50] sm:$0xff]  ;;  %v796_v26 = vpop.permute.xlu1 %795 }
 0x202   :  { %v2257_v11 = vsel %vm2250_vm6, %v9548_v0, %v2256_v4  ;;  %v1022_v10 = vpack.c.bf16 %v991_v47, %v990_v18  ;;  %v997_v39 = vmax.f32 %v953_v3, 0.0  ;;  %1741 = vrot.lane.b32.xlu1 %v1583_v20, %s6836_s17  ;;  %v952_v45 = vadd.f32 %v7414_v34, %v901_v29  ;;  %v7790_v48 = vld [vmem:[#allocation2 + $0x50] sm:$0xff] }
 0x203   :  { %2296 = vrot.lane.b32.xlu0 %v2257_v11, %s6837_s0  ;;  %v2259_v21 = vsel %vm2250_vm6, %v2256_v4, %v2258_v37  ;;  %v1413_v16 = vsel %vm1404_vm2, %v1410_v31, %v1412_v7  ;;  %v951_v47 = vadd.f32 %v7414_v34, %v900_v49  ;;  %v899_v18 = vmax.f32 %v7326_v53, %v796_v26  ;;  %v810_v11 = vpop.permute.xlu0 %809 }
 0x204   :  { %1045 = vst.msk [vmem:[#allocation2 + $0x60] sm:$0xff] %vm1032_vm1, %v1022_v10  ;;  %v1995_v3 = vrot.slane %v7768_v63, 7  ;;  %v2003_v0 = vrot.slane %v7778_v50, 7  ;;  %1085 = vst.msk [vmem:[#allocation3 + $0xf0] sm:$0xff] %vm1032_vm1, %v7790_v48  ;;  %v996_v27 = vmax.f32 %v952_v45, 0.0  ;;  %v7800_v31 = vshll.u32 %v7558_v14, 16 }
 0x205   :  { %v2719_v29 = vsel %vm2704_vm5, %v2716_v12, %v2718_v15  ;;  %v2721_v53 = vsel %vm2704_vm5, %v2718_v15, %v2720_v13  ;;  %v2722_v25 = vrot.slane %v7780_v2, 6  ;;  %v2803_v10 = vld [vmem:[#allocation3 + $0x88] sm:$0xff]  ;;  %v950_v20 = vadd.f32 %v7414_v34, %v899_v18  ;;  %v808_v26 = vpop.permute.xlu1 %807 }
 0x206   :  { %v2800_v4 = vld [vmem:[#allocation3 + $0x70] sm:$0xff]  ;;  %v906_v49 = vmax.f32 %v7331_v51, %v810_v11  ;;  %v1414_v45 = vrot.slane %v7558_v14, 1  ;;  %2772 = vst.msk [vmem:[#allocation3 + $0xa0] sm:$0xff] %vm1032_vm1, %v2719_v29  ;;  %2773 = vst.msk [vmem:[#allocation3 + $0xb8] sm:$0xff] %vm1032_vm1, %v2721_v53  ;;  %v1025_v12 = vpack.c.bf16 %v997_v39, %v996_v27  ;;  %1452 = vrot.lane.b32.xlu1 %v1413_v16, %s6837_s0  ;;  %v7822_v18 = vshll.u32 %v7634_v41, 16  ;;  %v7824_v51 = vld [vmem:[#allocation2 + $0x68] sm:$0xff] }
 0x207   :  { %6496 = vmatprep.mubr.msk.bf16.mxu0 %vm1032_vm1, %v2800_v4  ;;  %2298 = vrot.lane.b32.xlu0 %v2259_v21, %s6837_s0  ;;  %v2006_v15 = vor.u32 %v7800_v31, %v2003_v0  ;;  %v2423_v21 = vrot.slane %v7768_v63, 5  ;;  %v995_v4 = vmax.f32 %v951_v47, 0.0  ;;  %v994_v11 = vmax.f32 %v950_v20, 0.0  ;;  %1088 = vst.msk [vmem:[#allocation3 + $0x138] sm:$0xff] %vm1032_vm1, %v7824_v51  ;;  %v806_v27 = vpop.permute.xlu0 %805 }
 0x208   :  { %v957_v29 = vadd.f32 %v7414_v34, %v906_v49  ;;  %v1415_v39 = vsel %vm1404_vm2, %v1412_v7, %v1414_v45  ;;  %1048 = vst.msk [vmem:[#allocation2 + $0x78] sm:$0xff] %vm1032_vm1, %v1025_v12  ;;  %v905_v16 = vmax.f32 %v7336_v54, %v808_v26  ;;  %v2426_v47 = vrot.slane %v7822_v18, 6 }
 0x209   :  { %6497 = vmatmul.mubr.msk.bf16.gmra.mrb[52].mxu0 %vm1032_vm1, %v2803_v10  ;;  %v2007_v41 = vsel %vm1963_vm3, %v1995_v3, %v2006_v15  ;;  %v1151_v53 = vrot.slane %v7822_v18, 1  ;;  %v1024_v20 = vpack.c.bf16 %v995_v4, %v994_v11  ;;  %v904_v7 = vmax.f32 %v7341_v52, %v806_v27  ;;  %v804_v26 = vpop.permute.xlu1 %803 }
 0x20a   :  { %v1147_v49 = vor.u32 %v7593_v22, %v1143_v35  ;;  %v1587_v10 = vrot.slane %v7768_v63, 6  ;;  %v1001_v12 = vmax.f32 %v957_v29, 0.0  ;;  %1454 = vrot.lane.b32.xlu1 %v1415_v39, %s6837_s0  ;;  %v956_v54 = vadd.f32 %v7414_v34, %v905_v16 }
 0x20b   :  { %2136 = vrot.lane.b32.xlu0 %v2007_v41, %s6839_s27  ;;  %v7846_v15 = vor.u32 %v2426_v47, %v2423_v21  ;;  %v1998_v4 = vor.u32 %v7822_v18, %v1995_v3  ;;  %v7849_v11 = vld [vmem:[#allocation2 + $0x60] sm:$0xff]  ;;  %v7851_v41 = vld [vmem:[#allocation2 + $0x68] sm:$0xff]  ;;  %1047 = vst.msk [vmem:[#allocation2 + $0x70] sm:$0xff] %vm1032_vm1, %v1024_v20  ;;  %v955_v52 = vadd.f32 %v7414_v34, %v904_v7  ;;  %v1590_v29 = vrot.slane %v7822_v18, 7  ;;  %v818_v16 = vpop.permute.xlu0 %817 }
 0x20c   :  { %v1152_v9 = vsel %vm1116_vm4, %v1147_v49, %v1151_v53  ;;  %v903_v35 = vmax.f32 %v7346_v57, %v804_v26  ;;  %1087 = vst.msk [vmem:[#allocation3 + $0x120] sm:$0xff] %vm1032_vm1, %v7849_v11  ;;  %v1000_v39 = vmax.f32 %v956_v54, 0.0  ;;  %v2723_v27 = vsel %vm2704_vm5, %v2720_v13, %v2722_v25  ;;  %v2673_v47 = vld [vmem:[#allocation2 + $0x60] sm:$0xff] }
 0x20d   :  { %v2806_v21 = vld [vmem:[#allocation3 + $0xa0] sm:$0xff]  ;;  %v2428_v3 = vsel %vm2393_vm8, %v7704_v24, %v7846_v15  ;;  %v2725_v57 = vsel %vm2704_vm5, %v2722_v25, %v2724_v43  ;;  %v2809_v18 = vld [vmem:[#allocation3 + $0xb8] sm:$0xff]  ;;  %v910_v7 = vmax.f32 %v7351_v55, %v818_v16  ;;  %v7873_v24 = vor.u32 %v1590_v29, %v1587_v10  ;;  %2774 = vst.msk [vmem:[#allocation3 + $0xd0] sm:$0xff] %vm1032_vm1, %v2723_v27  ;;  %v816_v25 = vpop.permute.xlu1 %815 }
 0x20e   :  { %6500 = vmatprep.mubr.msk.bf16.mxu0 %vm1032_vm1, %v2806_v21  ;;  %v954_v20 = vadd.f32 %v7414_v34, %v903_v35  ;;  %2775 = vst.msk [vmem:[#allocation3 + $0xe8] sm:$0xff] %vm1032_vm1, %v2725_v57  ;;  %v2728_v13 = vrot.slane %v7851_v41, 6  ;;  %v1027_v49 = vpack.c.bf16 %v1001_v12, %v1000_v39  ;;  %1287 = vrot.lane.b32.xlu1 %v1152_v9, %s6839_s27  ;;  %v2432_v54 = vrot.slane %v7778_v50, 5 }
 0x20f   :  { %2586 = vrot.lane.b32.xlu0 %v2428_v3, %s6836_s17  ;;  %v2435_v26 = vrot.slane %v7800_v31, 6  ;;  %v999_v21 = vmax.f32 %v955_v52, 0.0  ;;  %v961_v55 = vadd.f32 %v7414_v34, %v910_v7  ;;  %v909_v10 = vmax.f32 %v7356_v58, %v816_v25  ;;  %v1070_v29 = vld [vmem:[#allocation2 + $0x78] sm:$0xff]  ;;  %v814_v52 = vpop.permute.xlu0 %813 }
 0x210   :  { %v998_v35 = vmax.f32 %v954_v20, 0.0  ;;  %v2726_v3 = vrot.slane %v2673_v47, 6  ;;  %1050 = vst.msk [vmem:[#allocation2 + $0x88] sm:$0xff] %vm1032_vm1, %v1027_v49  ;;  %v9549_v12 = vrot.slane %v7593_v22, 7  ;;  %v1592_v39 = vsel %vm1548_vm7, %v7752_v36, %v7873_v24  ;;  %1090 = vst.msk [vmem:[#allocation3 + $0x168] sm:$0xff] %vm1032_vm1, %v1070_v29  ;;  %v7904_v20 = vld [vmem:[#allocation2 + $0x78] sm:$0xff] }
 0x211   :  { %6501 = vmatmul.mubr.msk.bf16.gmra.mrb[56].mxu0 %vm1032_vm1, %v2809_v18  ;;  %v1155_v16 = vor.u32 %v7768_v63, %v1151_v53  ;;  %v960_v27 = vadd.f32 %v7414_v34, %v909_v10  ;;  %v908_v57 = vmax.f32 %v7361_v56, %v814_v52  ;;  %v7896_v47 = vor.u32 %v2435_v26, %v2432_v54  ;;  %v812_v36 = vpop.permute.xlu1 %811 }
 0x212   :  { %v1999_v9 = vsel %vm1963_vm3, %v9549_v12, %v1998_v4  ;;  %v1026_v58 = vpack.c.bf16 %v999_v21, %v998_v35  ;;  %v1005_v22 = vmax.f32 %v961_v55, 0.0  ;;  %1743 = vrot.lane.b32.xlu1 %v1592_v39, %s6836_s17  ;;  %v1159_v4 = vrot.slane %v7800_v31, 1  ;;  %v7902_v53 = vld [vmem:[#allocation2 + $0x70] sm:$0xff] }
 0x213   :  { %2134 = vrot.lane.b32.xlu0 %v1999_v9, %s6839_s27  ;;  %v1596_v18 = vrot.slane %v7778_v50, 6  ;;  %v1599_v63 = vrot.slane %v7800_v31, 7  ;;  %v7906_v7 = vld [vmem:[#allocation2 + $0x70] sm:$0xff]  ;;  %v1004_v56 = vmax.f32 %v960_v27, 0.0  ;;  %v959_v49 = vadd.f32 %v7414_v34, %v908_v57  ;;  %1089 = vst.msk [vmem:[#allocation3 + $0x150] sm:$0xff] %vm1032_vm1, %v7902_v53  ;;  %v826_v35 = vpop.permute.xlu0 %825 }
 0x214   :  { %1049 = vst.msk [vmem:[#allocation2 + $0x80] sm:$0xff] %vm1032_vm1, %v1026_v58  ;;  %v2437_v25 = vsel %vm2393_vm8, %v7846_v15, %v7896_v47  ;;  %v907_v54 = vmax.f32 %v7366_v61, %v812_v36  ;;  %v2812_v26 = vld [vmem:[#allocation3 + $0xd0] sm:$0xff]  ;;  %v1160_v21 = vsel %vm1116_vm4, %v1155_v16, %v1159_v4  ;;  %v2260_v55 = vrot.slane %v7674_v42, 5 }
 0x215   :  { %v2727_v10 = vsel %vm2704_vm5, %v2724_v43, %v2726_v3  ;;  %v2729_v15 = vsel %vm2704_vm5, %v2726_v3, %v2728_v13  ;;  %6504 = vmatprep.mubr.msk.bf16.mxu0 %vm1032_vm1, %v2812_v26  ;;  %v1029_v61 = vpack.c.bf16 %v1005_v22, %v1004_v56  ;;  %v2815_v29 = vld [vmem:[#allocation3 + $0xe8] sm:$0xff]  ;;  %v914_v9 = vmax.f32 %v7371_v59, %v826_v35  ;;  %v824_v52 = vpop.permute.xlu1 %823 }
 0x216   :  { %v958_v12 = vadd.f32 %v7414_v34, %v907_v54  ;;  %2776 = vst.msk [vmem:[#allocation3 + $0x100] sm:$0xff] %vm1032_vm1, %v2727_v10  ;;  %2777 = vst.msk [vmem:[#allocation3 + $0x118] sm:$0xff] %vm1032_vm1, %v2729_v15  ;;  %v2732_v32 = vrot.slane %v7904_v20, 6  ;;  %v2730_v43 = vrot.slane %v7906_v7, 6  ;;  %v1003_v39 = vmax.f32 %v959_v49, 0.0  ;;  %1289 = vrot.lane.b32.xlu1 %v1160_v21, %s6839_s27 }
 0x217   :  { %2588 = vrot.lane.b32.xlu0 %v2437_v25, %s6836_s17  ;;  %v7935_v3 = vor.u32 %v1599_v63, %v1596_v18  ;;  %1052 = vst.msk [vmem:[#allocation2 + $0x98] sm:$0xff] %vm1032_vm1, %v1029_v61  ;;  %v965_v58 = vadd.f32 %v7414_v34, %v914_v9  ;;  %v913_v59 = vmax.f32 %v7376_v62, %v824_v52  ;;  %v2017_v27 = vshrl.u32 %v7672_v46, 16  ;;  %v7941_v57 = vld [vmem:[#allocation2 + $0x88] sm:$0xff]  ;;  %v822_v36 = vpop.permute.xlu0 %821 }
 0x218   :  { %v1002_v16 = vmax.f32 %v958_v12, 0.0  ;;  %v2261_v22 = vsel %vm2250_vm6, %v2258_v37, %v2260_v55  ;;  %v2262_v18 = vrot.slane %v7672_v46, 5  ;;  %v1416_v63 = vrot.slane %v7674_v42, 1  ;;  %1092 = vst.msk [vmem:[#allocation3 + $0x198] sm:$0xff] %vm1032_vm1, %v7941_v57 }
 0x219   :  { %6505 = vmatmul.mubr.msk.bf16.gmra.mrb[60].mxu0 %vm1032_vm1, %v2815_v29  ;;  %v7950_v20 = vshrl.u32 %v7674_v42, 16  ;;  %v1601_v7 = vsel %vm1548_vm7, %v7873_v24, %v7935_v3  ;;  %v964_v37 = vadd.f32 %v7414_v34, %v913_v59  ;;  %v912_v56 = vmax.f32 %v7381_v60, %v822_v36  ;;  %v820_v26 = vpop.permute.xlu1 %819  ;;  %v7973_v60 = vld [vmem:[#allocation2 + $0x88] sm:$0xff] }
 0x21a   :  { %v1028_v62 = vpack.c.bf16 %v1003_v39, %v1002_v16  ;;  %v1009_v25 = vmax.f32 %v965_v58, 0.0  ;;  %1745 = vrot.lane.b32.xlu1 %v1601_v7, %s6836_s17  ;;  %v2263_v54 = vsel %vm2250_vm6, %v2260_v55, %v2262_v18  ;;  %v7966_v21 = vrot.slane %v2017_v27, 7  ;;  %v6811_v55 = vld [vmem:[%s9524_s2] ss:$0 sm:$0xff] }
 0x21b   :  { %2300 = vrot.lane.b32.xlu0 %v2261_v22, %s6837_s0  ;;  %v2677_v49 = vld [vmem:[#allocation2 + $0x80] sm:$0xff]  ;;  %v2731_v24 = vsel %vm2704_vm5, %v2728_v13, %v2730_v43  ;;  %v1008_v10 = vmax.f32 %v964_v37, 0.0  ;;  %v963_v15 = vadd.f32 %v6811_v55, %v912_v56  ;;  %v911_v61 = vmax.f32 %v7386_v1, %v820_v26 }
 0x21c   :  { %v7971_v34 = vld [vmem:[#allocation2 + $0x80] sm:$0xff]  ;;  %v2734_v35 = vrot.slane %v2677_v49, 6  ;;  %1051 = vst.msk [vmem:[#allocation2 + $0x90] sm:$0xff] %vm1032_vm1, %v1028_v62  ;;  %2778 = vst.msk [vmem:[#allocation3 + $0x130] sm:$0xff] %vm1032_vm1, %v2731_v24  ;;  %v1417_v13 = vsel %vm1404_vm2, %v1414_v45, %v1416_v63  ;;  %v2011_v29 = vrot.slane %v7950_v20, 7  ;;  %v2020_v12 = vshll.u32 %v7672_v46, 16 }
 0x21d   :  { %1091 = vst.msk [vmem:[#allocation3 + $0x180] sm:$0xff] %vm1032_vm1, %v7971_v34  ;;  %v2818_v41 = vld [vmem:[#allocation3 + $0x100] sm:$0xff]  ;;  %v2733_v9 = vsel %vm2704_vm5, %v2730_v43, %v2732_v32  ;;  %v1031_v39 = vpack.c.bf16 %v1009_v25, %v1008_v10  ;;  %v2821_v1 = vld [vmem:[#allocation3 + $0x118] sm:$0xff]  ;;  %v962_v52 = vadd.f32 %v6811_v55, %v911_v61  ;;  %v2441_v16 = vrot.slane %v7950_v20, 5  ;;  %v8022_v61 = vld [vmem:[#allocation2 + $0x38] sm:$0xff] }
 0x21e   :  { %6508 = vmatprep.mubr.msk.bf16.mxu0 %vm1032_vm1, %v2818_v41  ;;  %2779 = vst.msk [vmem:[#allocation3 + $0x148] sm:$0xff] %vm1032_vm1, %v2733_v9  ;;  %v2442_v14 = vshll.u32 %v7674_v42, 16  ;;  %v2736_v45 = vrot.slane %v7973_v60, 6  ;;  %1456 = vrot.lane.b32.xlu1 %v1417_v13, %s6837_s0  ;;  %v2022_v58 = vor.u32 %v2020_v12, %v7966_v21  ;;  %v1418_v43 = vrot.slane %v7672_v46, 1  ;;  %v7999_v22 = vld [vmem:[#allocation2 + $0x98] sm:$0xff] }
 0x21f   :  { %2302 = vrot.lane.b32.xlu0 %v2263_v54, %s6837_s0  ;;  %v2735_v59 = vsel %vm2704_vm5, %v2732_v32, %v2734_v35  ;;  %1054 = vst.msk [vmem:[#allocation2 + $0xa8] sm:$0xff] %vm1032_vm1, %v1031_v39  ;;  %v1007_v36 = vmax.f32 %v963_v15, 0.0  ;;  %v1006_v62 = vmax.f32 %v962_v52, 0.0  ;;  %1094 = vst.msk [vmem:[#allocation3 + $0x1c8] sm:$0xff] %vm1032_vm1, %v7999_v22  ;;  %v2680_v42 = vld [vmem:[#allocation2 + $0x98] sm:$0xff]  ;;  %v1605_v56 = vrot.slane %v7950_v20, 6 }
 0x220   :  { %v2444_v7 = vrot.slane %v2442_v14, 6  ;;  %2780 = vst.msk [vmem:[#allocation3 + $0x160] sm:$0xff] %vm1032_vm1, %v2735_v59  ;;  %v2023_v37 = vsel %vm1963_vm3, %v2011_v29, %v2022_v58  ;;  %v1419_v32 = vsel %vm1404_vm2, %v1416_v63, %v1418_v43  ;;  %v2737_v49 = vsel %vm2704_vm5, %v2734_v35, %v2736_v45 }
 0x221   :  { %6509 = vmatmul.mubr.msk.bf16.gmra.mrb[64].mxu0 %vm1032_vm1, %v2821_v1  ;;  %v1030_v25 = vpack.c.bf16 %v1007_v36, %v1006_v62  ;;  %v1167_v26 = vrot.slane %v2442_v14, 1  ;;  %v1608_v24 = vrot.slane %v2442_v14, 7  ;;  %2781 = vst.msk [vmem:[#allocation3 + $0x178] sm:$0xff] %vm1032_vm1, %v2737_v49  ;;  %v2740_v15 = vrot.slane %v2680_v42, 6 }
 0x222   :  { %v2445_v54 = vor.u32 %v2444_v7, %v2441_v16  ;;  %1458 = vrot.lane.b32.xlu1 %v1419_v32, %s6837_s0  ;;  %v1163_v35 = vor.u32 %v7778_v50, %v1159_v4  ;;  %v2014_v13 = vor.u32 %v2442_v14, %v2011_v29  ;;  %v2450_v16 = vrot.slane %v2017_v27, 5 }
 0x223   :  { %2140 = vrot.lane.b32.xlu0 %v2023_v37, %s6839_s27  ;;  %v2679_v60 = vld [vmem:[#allocation2 + $0x90] sm:$0xff]  ;;  %v2824_v10 = vld [vmem:[#allocation3 + $0x130] sm:$0xff]  ;;  %1053 = vst.msk [vmem:[#allocation2 + $0xa0] sm:$0xff] %vm1032_vm1, %v1030_v25  ;;  %v1609_v1 = vor.u32 %v1608_v24, %v1605_v56  ;;  %v2453_v58 = vrot.slane %v2020_v12, 6  ;;  %v1612_v29 = vshrl.u32 %v8022_v61, 16  ;;  %v1171_v12 = vor.u32 %v7950_v20, %v1167_v26 }
 0x224   :  { %v8015_v55 = vld [vmem:[#allocation2 + $0x90] sm:$0xff]  ;;  %v2738_v63 = vrot.slane %v2679_v60, 6  ;;  %6512 = vmatprep.mubr.msk.bf16.mxu0 %vm1032_vm1, %v2824_v10  ;;  %v2446_v41 = vsel %vm2393_vm8, %v7896_v47, %v2445_v54  ;;  %v1168_v39 = vsel %vm1116_vm4, %v1163_v35, %v1167_v26  ;;  %v1173_v47 = vshll.u32 %v8022_v61, 16 }
 0x225   :  { %1093 = vst.msk [vmem:[#allocation3 + $0x1b0] sm:$0xff] %vm1032_vm1, %v8015_v55  ;;  %v2827_v9 = vld [vmem:[#allocation3 + $0x148] sm:$0xff]  ;;  %v1610_v27 = vsel %vm1548_vm7, %v7935_v3, %v1609_v1  ;;  %v8049_v36 = vor.u32 %v2453_v58, %v2450_v16  ;;  %v2264_v37 = vrot.slane %v7722_v44, 5  ;;  %v2033_v26 = vshrl.u32 %v7720_v33, 16 }
 0x226   :  { %v2739_v52 = vsel %vm2704_vm5, %v2736_v45, %v2738_v63  ;;  %v2741_v31 = vsel %vm2704_vm5, %v2738_v63, %v2740_v15  ;;  %1291 = vrot.lane.b32.xlu1 %v1168_v39, %s6839_s27  ;;  %v2682_v14 = vld [vmem:[#allocation2 + $0xa8] sm:$0x3f]  ;;  %v2015_v45 = vsel %vm1963_vm3, %v2003_v0, %v2014_v13  ;;  %v8051_v62 = vrot.slane %v1173_v47, 1  ;;  %v1535_v13 = vld [vmem:[#allocation2 + $0x40] sm:$0xff] }
 0x227   :  { %2590 = vrot.lane.b32.xlu0 %v2446_v41, %s6836_s17  ;;  %v2830_v4 = vld [vmem:[#allocation3 + $0x160] sm:$0xff]  ;;  %2782 = vst.msk [vmem:[#allocation3 + $0x190] sm:$0xff] %vm1032_vm1, %v2739_v52  ;;  %2783 = vst.msk [vmem:[#allocation3 + $0x1a8] sm:$0xff] %vm1032_vm1, %v2741_v31  ;;  %v2744_v7 = vrot.slane %v2682_v14, 6  ;;  %v1614_v0 = vrot.slane %v1612_v29, 6  ;;  %v1617_v42 = vrot.slane %v1173_v47, 7  ;;  %v2455_v3 = vsel %vm2393_vm8, %v2445_v54, %v8049_v36 }
 0x228   :  { %v2833_v32 = vld [vmem:[#allocation3 + $0x178] sm:$0xff]  ;;  %v1176_v20 = vsel %vm1116_vm4, %v1171_v12, %v8051_v62  ;;  %v1420_v24 = vrot.slane %v7722_v44, 1  ;;  %v2265_v60 = vsel %vm2250_vm6, %v2262_v18, %v2264_v37  ;;  %v2025_v10 = vshrl.u32 %v7722_v44, 16 }
 0x229   :  { %6513 = vmatmul.mubr.msk.bf16.gmra.mrb[68].mxu0 %vm1032_vm1, %v2827_v9  ;;  %v8067_v54 = vor.u32 %v1617_v42, %v1614_v0  ;;  %v2266_v35 = vrot.slane %v7720_v33, 5  ;;  %v8082_v41 = vrot.slane %v2033_v26, 7  ;;  %v1818_v9 = vld [vmem:[#allocation2] sm:$0x80]  ;;  %v1621_v16 = vshrl.u32 %v1535_v13, 16 }
 0x22a   :  { %6516 = vmatprep.mubr.msk.bf16.mxu0 %vm1032_vm1, %v2830_v4  ;;  %v2681_v59 = vld [vmem:[#allocation2 + $0xa0] sm:$0xff]  ;;  %1747 = vrot.lane.b32.xlu1 %v1610_v27, %s6836_s17  ;;  %v2027_v39 = vrot.slane %v2025_v10, 7  ;;  %v2459_v52 = vrot.slane %v2025_v10, 5  ;;  %v1624_v58 = vshll.u32 %v1535_v13, 16  ;;  %v1862_v47 = vrot.slane %v7460_v30, 7  ;;  %v2380_v27 = vld [vmem:[#allocation2 + $0x48] sm:$0xff] }
 0x22b   :  { %2138 = vrot.lane.b32.xlu0 %v2015_v45, %s6839_s27  ;;  %v2742_v50 = vrot.slane %v2681_v59, 6  ;;  %v1619_v63 = vsel %vm1548_vm7, %v1609_v1, %v8067_v54  ;;  %v2267_v18 = vsel %vm2250_vm6, %v2264_v37, %v2266_v35  ;;  %v2036_v1 = vshll.u32 %v7720_v33, 16 }
 0x22c   :  { %v1861_v14 = vrot.slane %v1818_v9, 7  ;;  %v1623_v0 = vrot.slane %v1621_v16, 6  ;;  %v1626_v42 = vrot.slane %v1624_v58, 7  ;;  %v8108_v37 = vshll.u32 %v2380_v27, 16 }
 0x22d   :  { %v2743_v56 = vsel %vm2704_vm5, %v2740_v15, %v2742_v50  ;;  %v2745_v49 = vsel %vm2704_vm5, %v2742_v50, %v2744_v7  ;;  %v2460_v15 = vshll.u32 %v7722_v44, 16  ;;  %v1421_v44 = vsel %vm1404_vm2, %v1418_v43, %v1420_v24 }
 0x22e   :  { %1293 = vrot.lane.b32.xlu1 %v1176_v20, %s6839_s27  ;;  %v2836_v25 = vld [vmem:[#allocation3 + $0x190] sm:$0xff]  ;;  %2784 = vst.msk [vmem:[#allocation3 + $0x1c0] sm:$0xff] %vm1032_vm1, %v2743_v56  ;;  %2785 = vst.msk [vmem:[#allocation3 + $0x1d8] sm:$0xff] %vm1032_vm1, %v2745_v49  ;;  %v2839_v4 = vld [vmem:[#allocation3 + $0x1a8] sm:$0xff]  ;;  %v2038_v46 = vor.u32 %v2036_v1, %v8082_v41  ;;  %v1422_v43 = vrot.slane %v7720_v33, 1  ;;  %v1863_v12 = vsel %vm1860_vm9, %v1861_v14, %v1862_v47  ;;  %v1864_v61 = vrot.slane %v7529_v5, 7 }
 0x22f   :  { %2592 = vrot.lane.b32.xlu0 %v2455_v3, %s6836_s17  ;;  %v2462_v31 = vrot.slane %v2460_v15, 6  ;;  %1922 = vst.msk [vmem:[#allocation3 + $0x8] sm:$0xff] %vm1032_vm1, %v1863_v12  ;;  %v1183_v50 = vrot.slane %v2460_v15, 1  ;;  %v8106_v3 = vshrl.u32 %v2380_v27, 16  ;;  %v2030_v56 = vor.u32 %v2460_v15, %v2027_v39 }
 0x230   :  { %v2039_v59 = vsel %vm1963_vm3, %v2027_v39, %v2038_v46  ;;  %v1423_v30 = vsel %vm1404_vm2, %v1420_v24, %v1422_v43  ;;  %v1627_v26 = vor.u32 %v1626_v42, %v1623_v0  ;;  %v1865_v5 = vsel %vm1860_vm9, %v1862_v47, %v1864_v61  ;;  %v2381_v39 = vld [vmem:[#allocation2 + $0x50] sm:$0xff] }
 0x231   :  { %6517 = vmatmul.mubr.msk.bf16.gmra.mrb[72].mxu0 %vm1032_vm1, %v2833_v32  ;;  %v2463_v7 = vor.u32 %v2462_v31, %v2459_v52  ;;  %v1179_v32 = vor.u32 %v1612_v29, %v8051_v62  ;;  %v2468_v24 = vrot.slane %v8106_v3, 5  ;;  %v2031_v29 = vsel %vm1963_vm3, %v7966_v21, %v2030_v56  ;;  %1923 = vst.msk [vmem:[#allocation3 + $0x20] sm:$0xff] %vm1032_vm1, %v1865_v5 }
 0x232   :  { %6520 = vmatprep.mubr.msk.bf16.mxu0 %vm1032_vm1, %v2836_v25  ;;  %1749 = vrot.lane.b32.xlu1 %v1619_v63, %s6836_s17  ;;  %v1866_v63 = vrot.slane %v7507_v19, 7  ;;  %v1628_v62 = vsel %vm1548_vm7, %v8067_v54, %v1627_v26  ;;  %v1187_v15 = vor.u32 %v2025_v10, %v1183_v50  ;;  %v1191_v13 = vrot.slane %v8108_v37, 1 }
 0x233   :  { %2304 = vrot.lane.b32.xlu0 %v2265_v60, %s6837_s0  ;;  %v2464_v20 = vsel %vm2393_vm8, %v8049_v36, %v2463_v7  ;;  %v1184_v25 = vsel %vm1116_vm4, %v1179_v32, %v1183_v50  ;;  %v2471_v60 = vrot.slane %v8108_v37, 6  ;;  %v1632_v9 = vrot.slane %v8106_v3, 6 }
 0x234   :  { %v1867_v36 = vsel %vm1860_vm9, %v1864_v61, %v1866_v63  ;;  %v1635_v21 = vrot.slane %v8108_v37, 7  ;;  %v1192_v10 = vsel %vm1116_vm4, %v1187_v15, %v1191_v13  ;;  %v2475_v16 = vshrl.u32 %v2381_v39, 16 }
 0x235   :  { %v2842_v45 = vld [vmem:[#allocation3 + $0x1c0] sm:$0xff]  ;;  %v2845_v49 = vld [vmem:[#allocation3 + $0x1d8] sm:$0xff]  ;;  %1924 = vst.msk [vmem:[#allocation3 + $0x38] sm:$0xff] %vm1032_vm1, %v1867_v36  ;;  %v2472_v19 = vor.u32 %v2471_v60, %v2468_v24  ;;  %v2478_v58 = vshll.u32 %v2381_v39, 16  ;;  %v1870_v47 = vrot.slane %v7569_v28, 7  ;;  %v1868_v14 = vrot.slane %v7598_v8, 7 }
 0x236   :  { %1460 = vrot.lane.b32.xlu1 %v1421_v44, %s6837_s0  ;;  %v8136_v44 = vld [vmem:[#allocation2 + $0x58] sm:$0xff]  ;;  %v1636_v52 = vor.u32 %v1635_v21, %v1632_v9  ;;  %v1424_v27 = vrot.slane %v7780_v2, 1  ;;  %v1195_v60 = vor.u32 %v8106_v3, %v1191_v13  ;;  %v1872_v36 = vrot.slane %v7662_v40, 7  ;;  %v2219_v21 = vld [vmem:[#allocation2 + $0x60] sm:$0xff] }
 0x237   :  { %2306 = vrot.lane.b32.xlu0 %v2267_v18, %s6837_s0  ;;  %v2268_v18 = vrot.slane %v7780_v2, 5  ;;  %v2473_v54 = vsel %vm2393_vm8, %v2463_v7, %v2472_v19  ;;  %v8144_v1 = vshrl.u32 %v8136_v44, 16  ;;  %v1871_v12 = vsel %vm1860_vm9, %v1868_v14, %v1870_v47 }
 0x238   :  { %v1637_v46 = vsel %vm1548_vm7, %v1627_v26, %v1636_v52  ;;  %1926 = vst.msk [vmem:[#allocation3 + $0x68] sm:$0xff] %vm1032_vm1, %v1871_v12  ;;  %v8164_v8 = vshll.u32 %v8136_v44, 16  ;;  %v2477_v7 = vrot.slane %v2475_v16, 5  ;;  %v1869_v50 = vsel %vm1860_vm9, %v1866_v63, %v1868_v14 }
 0x239   :  { %6521 = vmatmul.mubr.msk.bf16.gmra.mrb[76].mxu0 %vm1032_vm1, %v2839_v4  ;;  %v2269_v31 = vsel %vm2250_vm6, %v2266_v35, %v2268_v18  ;;  %v2041_v4 = vshrl.u32 %v7780_v2, 16  ;;  %v2051_v35 = vrot.slane %v8144_v1, 7  ;;  %v1425_v0 = vsel %vm1404_vm2, %v1422_v43, %v1424_v27  ;;  %1925 = vst.msk [vmem:[#allocation3 + $0x50] sm:$0xff] %vm1032_vm1, %v1869_v50 }
 0x23a   :  { %6524 = vmatprep.mubr.msk.bf16.mxu0 %vm1032_vm1, %v2842_v45  ;;  %1462 = vrot.lane.b32.xlu1 %v1423_v30, %s6837_s0  ;;  %v2270_v45 = vrot.slane %v8136_v44, 5  ;;  %v2480_v30 = vrot.slane %v2478_v58, 6  ;;  %v1426_v37 = vrot.slane %v8136_v44, 1  ;;  %v1199_v56 = vrot.slane %v2478_v58, 1 }
 0x23b   :  { %2144 = vrot.lane.b32.xlu0 %v2039_v59, %s6839_s27  ;;  %v2043_v59 = vrot.slane %v2041_v4, 7  ;;  %v2054_v42 = vor.u32 %v8164_v8, %v2051_v35  ;;  %v2044_v26 = vshll.u32 %v7780_v2, 16  ;;  %v2486_v2 = vrot.slane %v8144_v1, 5 }
 0x23c   :  { %v2271_v28 = vsel %vm2250_vm6, %v2268_v18, %v2270_v45  ;;  %v1427_v33 = vsel %vm1404_vm2, %v1424_v27, %v1426_v37  ;;  %v2489_v3 = vrot.slane %v8164_v8, 6  ;;  %v1203_v9 = vor.u32 %v2475_v16, %v1199_v56 }
 0x23d   :  { %v2055_v32 = vsel %vm1963_vm3, %v2043_v59, %v2054_v42  ;;  %v2046_v61 = vor.u32 %v2044_v26, %v2043_v59  ;;  %v1207_v39 = vrot.slane %v8164_v8, 1  ;;  %v1876_v27 = vrot.slane %v7718_v17, 7 }
 0x23e   :  { %1295 = vrot.lane.b32.xlu1 %v1184_v25, %s6839_s27  ;;  %v1644_v25 = vrot.slane %v2478_v58, 7  ;;  %v1428_v17 = vrot.slane %v2219_v21, 1 }
 0x23f   :  { %2594 = vrot.lane.b32.xlu0 %v2464_v20, %s6836_s17  ;;  %v2481_v20 = vor.u32 %v2480_v30, %v2477_v7  ;;  %v1208_v58 = vsel %vm1116_vm4, %v1203_v9, %v1207_v39  ;;  %v8231_v7 = vshll.u32 %v2219_v21, 16 }
 0x241   :  { %6525 = vmatmul.mubr.msk.bf16.gmra.mrb[80].mxu0 %vm1032_vm1, %v2845_v49  ;;  %v1641_v49 = vrot.slane %v2475_v16, 6  ;;  %v2482_v63 = vsel %vm2393_vm8, %v2472_v19, %v2481_v20  ;;  %v1873_v19 = vsel %vm1860_vm9, %v1870_v47, %v1872_v36  ;;  %v2272_v16 = vrot.slane %v2219_v21, 5 }
 0x242   :  { %1751 = vrot.lane.b32.xlu1 %v1628_v62, %s6836_s17  ;;  %v1200_v62 = vsel %vm1116_vm4, %v1195_v60, %v1199_v56  ;;  %1927 = vst.msk [vmem:[#allocation3 + $0x80] sm:$0xff] %vm1032_vm1, %v1873_v19 }
 0x243   :  { %2142 = vrot.lane.b32.xlu0 %v2031_v29, %s6839_s27  ;;  %v1874_v29 = vrot.slane %v7641_v23, 7  ;;  %v1645_v15 = vor.u32 %v1644_v25, %v1641_v49  ;;  %v2047_v23 = vsel %vm1963_vm3, %v8082_v41, %v2046_v61  ;;  %v1650_v41 = vrot.slane %v8144_v1, 6 }
 0x244   :  { %v2273_v59 = vsel %vm2250_vm6, %v2270_v45, %v2272_v16  ;;  %v2498_v49 = vrot.slane %v8231_v7, 6  ;;  %v1429_v25 = vsel %vm1404_vm2, %v1426_v37, %v1428_v17  ;;  %v1215_v37 = vrot.slane %v8231_v7, 1 }
 0x245   :  { %v1875_v5 = vsel %vm1860_vm9, %v1872_v36, %v1874_v29  ;;  %v1646_v40 = vsel %vm1548_vm7, %v1636_v52, %v1645_v15  ;;  %v8211_v52 = vld [vmem:[#allocation2 + $0x68] sm:$0xff] }
 0x246   :  { %1297 = vrot.lane.b32.xlu1 %v1192_v10, %s6839_s27  ;;  %1928 = vst.msk [vmem:[#allocation3 + $0x98] sm:$0xff] %vm1032_vm1, %v1875_v5  ;;  %v8220_v14 = vshrl.u32 %v8211_v52, 16  ;;  %v1430_v60 = vrot.slane %v8211_v52, 1  ;;  %v1211_v5 = vor.u32 %v8144_v1, %v1207_v39  ;;  %v8295_v39 = vld [vmem:[#allocation2 + $0x78] sm:$0xff] }
 0x247   :  { %2596 = vrot.lane.b32.xlu0 %v2473_v54, %s6836_s17  ;;  %v8205_v54 = vor.u32 %v2489_v3, %v2486_v2  ;;  %v1880_v2 = vrot.slane %v7790_v48, 7 }
 0x248   :  { %v2067_v45 = vrot.slane %v8220_v14, 7  ;;  %v1431_v44 = vsel %vm1404_vm2, %v1428_v17, %v1430_v60  ;;  %v2504_v9 = vrot.slane %v8220_v14, 5  ;;  %v1892_v17 = vrot.slane %v7971_v34, 7 }
 0x249   :  { %v2491_v4 = vsel %vm2393_vm8, %v2481_v20, %v8205_v54 }
 0x24a   :  { %1753 = vrot.lane.b32.xlu1 %v1637_v46, %s6836_s17  ;;  %v1878_v46 = vrot.slane %v7697_v38, 7  ;;  %v2274_v38 = vrot.slane %v8211_v52, 5 }
 0x24b   :  { %2308 = vrot.lane.b32.xlu0 %v2269_v31, %s6837_s0  ;;  %v1653_v31 = vrot.slane %v8164_v8, 7  ;;  %v8229_v8 = vshrl.u32 %v2219_v21, 16 }
 0x24c   :  { %v1879_v30 = vsel %vm1860_vm9, %v1876_v27, %v1878_v46  ;;  %v2275_v20 = vsel %vm2250_vm6, %v2272_v16, %v2274_v38 }
 0x24d   :  { %1930 = vst.msk [vmem:[#allocation3 + $0xc8] sm:$0xff] %vm1032_vm1, %v1879_v30  ;;  %v2495_v56 = vrot.slane %v8229_v8, 5  ;;  %v1659_v36 = vrot.slane %v8229_v8, 6  ;;  %v1219_v1 = vor.u32 %v8229_v8, %v1215_v37 }
 0x24e   :  { %1464 = vrot.lane.b32.xlu1 %v1425_v0, %s6837_s0  ;;  %v1877_v0 = vsel %vm1860_vm9, %v1874_v29, %v1876_v27 }
 0x24f   :  { %2310 = vrot.lane.b32.xlu0 %v2271_v28, %s6837_s0  ;;  %v1447_v43 = vpop.permute.xlu1 %1446  ;;  %v8224_v28 = vor.u32 %v1653_v31, %v1650_v41  ;;  %1929 = vst.msk [vmem:[#allocation3 + $0xb0] sm:$0xff] %vm1032_vm1, %v1877_v0  ;;  %v2499_v29 = vor.u32 %v2498_v49, %v2495_v56  ;;  %v1894_v0 = vrot.slane %v7941_v57, 7 }
 0x251   :  { %v1655_v50 = vsel %vm1548_vm7, %v1645_v15, %v8224_v28  ;;  %v1882_v15 = vrot.slane %v7761_v6, 7  ;;  %v1216_v6 = vsel %vm1116_vm4, %v1211_v5, %v1215_v37  ;;  %v1895_v49 = vsel %vm1860_vm9, %v1892_v17, %v1894_v0 }
 0x252   :  { %1466 = vrot.lane.b32.xlu1 %v1427_v33, %s6837_s0  ;;  %v2129_v24 = vpop.permute.xlu0 %2128  ;;  %v2059_v33 = vrot.slane %v8229_v8, 7  ;;  %1938 = vst.msk [vmem:[#allocation3 + $0x188] sm:$0xff] %vm1032_vm1, %v1895_v49 }
 0x253   :  { %2148 = vrot.lane.b32.xlu0 %v2055_v32, %s6839_s27  ;;  %2188 = vst.msk [vmem:[#allocation3 + $0x8] sm:$0xff] %vm1341_vm10, %v2129_v24 }
 0x256   :  { %1299 = vrot.lane.b32.xlu1 %v1200_v62, %s6839_s27  ;;  %v1282_v13 = vpop.permute.xlu1 %1281  ;;  %v1662_v62 = vrot.slane %v8231_v7, 7 }
 0x257   :  { %2598 = vrot.lane.b32.xlu0 %v2482_v63, %s6836_s17  ;;  %1342 = vst.msk [vmem:[#allocation3] sm:$0xff] %vm1341_vm10, %v1282_v13  ;;  %v2500_v13 = vsel %vm2393_vm8, %v8205_v54, %v2499_v29 }
 0x258   :  { %1507 = vst.msk [vmem:[#allocation3] sm:$0xff] %vm1506_vm11, %v1447_v43  ;;  %v8251_v43 = vshll.u32 %v8211_v52, 16  ;;  %v8288_v48 = vor.u32 %v1662_v62, %v1659_v36 }
 0x25a   :  { %1755 = vrot.lane.b32.xlu1 %v1646_v40, %s6836_s17  ;;  %v2293_v18 = vpop.permute.xlu0 %2292  ;;  %v1738_v10 = vpop.permute.xlu1 %1737  ;;  %v2070_v26 = vor.u32 %v8251_v43, %v2067_v45  ;;  %v1883_v40 = vsel %vm1860_vm9, %v1880_v2, %v1882_v15  ;;  %v2507_v21 = vrot.slane %v8251_v43, 6  ;;  %v1223_v16 = vrot.slane %v8251_v43, 1 }
 0x25b   :  { %2146 = vrot.lane.b32.xlu0 %v2047_v23, %s6839_s27  ;;  %2352 = vst.msk [vmem:[#allocation3 + $0x8] sm:$0xff] %vm1506_vm11, %v2293_v18  ;;  %v2062_v23 = vor.u32 %v8231_v7, %v2059_v33  ;;  %v1881_v18 = vsel %vm1860_vm9, %v1878_v46, %v1880_v2  ;;  %v1664_v46 = vsel %vm1548_vm7, %v8224_v28, %v8288_v48  ;;  %v1890_v7 = vrot.slane %v8295_v39, 7 }
 0x25c   :  { %1798 = vst.msk [vmem:[#allocation3] sm:$0xff] %vm1797_vm12, %v1738_v10  ;;  %v2071_v61 = vsel %vm1963_vm3, %v2059_v33, %v2070_v26  ;;  %v8311_v27 = vor.u32 %v2507_v21, %v2504_v9  ;;  %v1888_v28 = vrot.slane %v7902_v53, 7  ;;  %v1224_v33 = vsel %vm1116_vm4, %v1219_v1, %v1223_v16 }
 0x25d   :  { %1932 = vst.msk [vmem:[#allocation3 + $0xf8] sm:$0xff] %vm1032_vm1, %v1883_v40  ;;  %1931 = vst.msk [vmem:[#allocation3 + $0xe0] sm:$0xff] %vm1032_vm1, %v1881_v18  ;;  %v2063_v31 = vsel %vm1963_vm3, %v2051_v35, %v2062_v23  ;;  %v1671_v35 = vrot.slane %v8251_v43, 7  ;;  %v1893_v56 = vsel %vm1860_vm9, %v1890_v7, %v1892_v17  ;;  %v1898_v26 = vrot.slane %v7999_v22, 7 }
 0x25e   :  { %1301 = vrot.lane.b32.xlu1 %v1208_v58, %s6839_s27  ;;  %v2295_v47 = vpop.permute.xlu0 %2294  ;;  %v1449_v12 = vpop.permute.xlu1 %1448  ;;  %v1668_v58 = vrot.slane %v8220_v14, 6  ;;  %v1891_v53 = vsel %vm1860_vm9, %v1888_v28, %v1890_v7  ;;  %1937 = vst.msk [vmem:[#allocation3 + $0x170] sm:$0xff] %vm1032_vm1, %v1893_v56  ;;  %v2278_v23 = vrot.slane %v8295_v39, 5  ;;  %v1227_v7 = vor.u32 %v8220_v14, %v1223_v16 }
 0x25f   :  { %2600 = vrot.lane.b32.xlu0 %v2491_v4, %s6836_s17  ;;  %1936 = vst.msk [vmem:[#allocation3 + $0x158] sm:$0xff] %vm1032_vm1, %v1891_v53 }
 0x262   :  { %1757 = vrot.lane.b32.xlu1 %v1655_v50, %s6836_s17  ;;  %v2133_v42 = vpop.permute.xlu0 %2132  ;;  %v8242_v32 = vpop.permute.xlu1 %1450  ;;  %v2509_v50 = vsel %vm2393_vm8, %v2499_v29, %v8311_v27 }
 0x263   :  { %2312 = vrot.lane.b32.xlu0 %v2273_v59, %s6837_s0  ;;  %2190 = vst.msk [vmem:[#allocation3 + $0x38] sm:$0xff] %vm1341_vm10, %v2133_v42  ;;  %v2786_v4 = vld [vmem:[#allocation3] sm:$0xff]  ;;  %v1884_v59 = vrot.slane %v7849_v11, 7  ;;  %v1838_v42 = vld [vmem:[#allocation2 + $0xa0] sm:$0x7f] }
 0x266   :  { %1468 = vrot.lane.b32.xlu1 %v1429_v25, %s6837_s0  ;;  %v8345_v25 = vshrl.u32 %v8295_v39, 16 }
 0x267   :  { %2314 = vrot.lane.b32.xlu0 %v2275_v20, %s6837_s0  ;;  %v2583_v24 = vpop.permute.xlu0 %2582  ;;  %v1284_v63 = vpop.permute.xlu1 %1283 }
 0x268   :  { %2642 = vst.msk [vmem:[#allocation3 + $0x8] sm:$0xff] %vm1797_vm12, %v2583_v24  ;;  %v1896_v24 = vrot.slane %v8015_v55, 7  ;;  %v2083_v40 = vrot.slane %v8345_v25, 7  ;;  %v2522_v43 = vrot.slane %v8345_v25, 5 }
 0x269   :  { %1343 = vst.msk [vmem:[#allocation3 + $0x18] sm:$0xff] %vm1341_vm10, %v1284_v63  ;;  %v1900_v63 = vrot.slane %v1838_v42, 7 }
 0x26a   :  { %1508 = vst.msk [vmem:[#allocation3 + $0x18] sm:$0xff] %vm1506_vm11, %v1449_v12  ;;  %1470 = vrot.lane.b32.xlu1 %v1431_v44, %s6837_s0  ;;  %v1886_v12 = vrot.slane %v7824_v51, 7  ;;  %v8351_v44 = vor.u32 %v1671_v35, %v1668_v58  ;;  %v1897_v5 = vsel %vm1860_vm9, %v1894_v0, %v1896_v24  ;;  %v1434_v58 = vrot.slane %v8295_v39, 1 }
 0x26b   :  { %2152 = vrot.lane.b32.xlu0 %v2071_v61, %s6839_s27  ;;  %1939 = vst.msk [vmem:[#allocation3 + $0x1a0] sm:$0xff] %vm1032_vm1, %v1897_v5 }
 0x26c   :  { %v1740_v19 = vpop.permute.xlu1 %1739  ;;  %v1887_v11 = vsel %vm1860_vm9, %v1884_v59, %v1886_v12  ;;  %v1889_v20 = vsel %vm1860_vm9, %v1886_v12, %v1888_v28 }
 0x26d   :  { %v2131_v3 = vpop.permute.xlu0 %2130  ;;  %1799 = vst.msk [vmem:[#allocation3 + $0x18] sm:$0xff] %vm1797_vm12, %v1740_v19  ;;  %v1901_v19 = vsel %vm1860_vm9, %v1898_v26, %v1900_v63  ;;  %v8439_v63 = vshrl.u32 %v7971_v34, 16 }
 0x26e   :  { %2189 = vst.msk [vmem:[#allocation3 + $0x20] sm:$0xff] %vm1341_vm10, %v2131_v3  ;;  %1303 = vrot.lane.b32.xlu1 %v1216_v6, %s6839_s27  ;;  %v1899_v3 = vsel %vm1860_vm9, %v1896_v24, %v1898_v26  ;;  %v2280_v24 = vrot.slane %v7971_v34, 5 }
 0x26f   :  { %2353 = vst.msk [vmem:[#allocation3 + $0x20] sm:$0xff] %vm1506_vm11, %v2295_v47  ;;  %2602 = vrot.lane.b32.xlu0 %v2500_v13, %s6836_s17  ;;  %v2787_v10 = vld [vmem:[#allocation3 + $0x8] sm:$0xff]  ;;  %v8304_v47 = vld [vmem:[#allocation2 + $0x70] sm:$0xff]  ;;  %v1673_v13 = vsel %vm1548_vm7, %v8288_v48, %v8351_v44  ;;  %v8377_v48 = vshll.u32 %v8295_v39, 16 }
 0x270   :  { %v1286_v41 = vpop.permute.xlu1 %1285  ;;  %3082 = vmatprep.mubr.bf16.mxu1 %v2787_v10  ;;  %v2276_v8 = vrot.slane %v8304_v47, 5  ;;  %1934 = vst.msk [vmem:[#allocation3 + $0x128] sm:$0xff] %vm1032_vm1, %v1887_v11  ;;  %1935 = vst.msk [vmem:[#allocation3 + $0x140] sm:$0xff] %vm1032_vm1, %v1889_v20  ;;  %v8357_v36 = vshrl.u32 %v8304_v47, 16  ;;  %v8360_v2 = vshll.u32 %v8304_v47, 16 }
 0x271   :  { %v2585_v54 = vpop.permute.xlu0 %2584  ;;  %1344 = vst.msk [vmem:[#allocation3 + $0x30] sm:$0xff] %vm1341_vm10, %v1286_v41  ;;  %3083 = vmatmul.mubr.bf16.vlgmr.msra.gmra.mrb[0].mxu1 %v2786_v4  ;;  %v2525_v16 = vrot.slane %v8377_v48, 6  ;;  %v1239_v14 = vrot.slane %v8377_v48, 1  ;;  %v1689_v56 = vrot.slane %v8377_v48, 7 }
 0x272   :  { %2643 = vst.msk [vmem:[#allocation3 + $0x20] sm:$0xff] %vm1797_vm12, %v2585_v54  ;;  %1759 = vrot.lane.b32.xlu1 %v1664_v46, %s6836_s17  ;;  %v2277_v37 = vsel %vm2250_vm6, %v2274_v38, %v2276_v8  ;;  %v1432_v38 = vrot.slane %v8304_v47, 1  ;;  %v2279_v21 = vsel %vm2250_vm6, %v2276_v8, %v2278_v23  ;;  %v2075_v18 = vrot.slane %v8357_v36, 7 }
 0x273   :  { %2150 = vrot.lane.b32.xlu0 %v2063_v31, %s6839_s27  ;;  %1509 = vst.msk [vmem:[#allocation3 + $0x30] sm:$0xff] %vm1506_vm11, %v8242_v32  ;;  %v1885_v32 = vsel %vm1860_vm9, %v1882_v15, %v1884_v59  ;;  %v2513_v54 = vrot.slane %v8357_v36, 5  ;;  %v2516_v10 = vrot.slane %v8360_v2, 6  ;;  %v2086_v31 = vor.u32 %v8377_v48, %v2083_v40 }
 0x274   :  { %v1742_v51 = vpop.permute.xlu1 %1741  ;;  %1933 = vst.msk [vmem:[#allocation3 + $0x110] sm:$0xff] %vm1032_vm1, %v1885_v32  ;;  %v2789_v15 = vld [vmem:[#allocation3 + $0x18] sm:$0xff]  ;;  %1940 = vst.msk [vmem:[#allocation3 + $0x1b8] sm:$0xff] %vm1032_vm1, %v1899_v3  ;;  %v1433_v41 = vsel %vm1404_vm2, %v1430_v60, %v1432_v38  ;;  %v1435_v52 = vsel %vm1404_vm2, %v1432_v38, %v1434_v58  ;;  %v1231_v60 = vrot.slane %v8360_v2, 1  ;;  %v1677_v35 = vrot.slane %v8357_v36, 6 }
 0x275   :  { %v2297_v30 = vpop.permute.xlu0 %2296  ;;  %1800 = vst.msk [vmem:[#allocation3 + $0x30] sm:$0xff] %vm1797_vm12, %v1742_v51  ;;  %v2087_v46 = vsel %vm1963_vm3, %v2075_v18, %v2086_v31  ;;  %v2517_v1 = vor.u32 %v2516_v10, %v2513_v54  ;;  %v1680_v12 = vrot.slane %v8360_v2, 7  ;;  %v2526_v20 = vor.u32 %v2525_v16, %v2522_v43 }
 0x276   :  { %2354 = vst.msk [vmem:[#allocation3 + $0x38] sm:$0xff] %vm1506_vm11, %v2297_v30  ;;  %1305 = vrot.lane.b32.xlu1 %v1224_v33, %s6839_s27  ;;  %v1232_v8 = vsel %vm1116_vm4, %v1227_v7, %v1231_v60  ;;  %v1235_v53 = vor.u32 %v8357_v36, %v1231_v60  ;;  %v2531_v3 = vrot.slane %v8439_v63, 5  ;;  %v2282_v38 = vrot.slane %v7941_v57, 5 }
 0x277   :  { %2604 = vrot.lane.b32.xlu0 %v2509_v50, %s6836_s17  ;;  %1941 = vst.msk [vmem:[#allocation3 + $0x1d0] sm:$0xff] %vm1032_vm1, %v1901_v19  ;;  %v2518_v30 = vsel %vm2393_vm8, %v8311_v27, %v2517_v1  ;;  %v2078_v50 = vor.u32 %v8360_v2, %v2075_v18  ;;  %v1681_v17 = vor.u32 %v1680_v12, %v1677_v35  ;;  %v1695_v54 = vrot.slane %v8439_v63, 6 }
 0x278   :  { %v1453_v62 = vpop.permute.xlu1 %1452  ;;  %v2527_v26 = vsel %vm2393_vm8, %v2517_v1, %v2526_v20  ;;  %v2283_v48 = vsel %vm2250_vm6, %v2280_v24, %v2282_v38  ;;  %v8475_v31 = vshll.u32 %v7941_v57, 16  ;;  %vm6842_vm1 = vmmov 0  }
 0x279   :  { %v2299_v61 = vpop.permute.xlu0 %2298  ;;  %v2790_v29 = vld [vmem:[#allocation3 + $0x20] sm:$0xff]  ;;  %v2079_v51 = vsel %vm1963_vm3, %v2067_v45, %v2078_v50  ;;  %v1682_v32 = vsel %vm1548_vm7, %v8351_v44, %v1681_v17  ;;  %v1686_v45 = vrot.slane %v8345_v25, 6 }
 0x27a   :  { %3090 = vmatprep.mubr.bf16.mxu1 %v2790_v29  ;;  %1761 = vrot.lane.b32.xlu1 %v1673_v13, %s6836_s17  ;;  %v1240_v29 = vsel %vm1116_vm4, %v1235_v53, %v1239_v14  ;;  %v1436_v13 = vrot.slane %v7971_v34, 1  ;;  %v2543_v35 = vrot.slane %v8475_v31, 6  ;;  %v1707_v53 = vrot.slane %v8475_v31, 7 }
 0x27b   :  { %2316 = vrot.lane.b32.xlu0 %v2277_v37, %s6837_s0  ;;  %3091 = vmatmul.mubr.bf16.gmra.mrb[4].mxu1 %v2789_v15  ;;  %v1690_v36 = vor.u32 %v1689_v56, %v1686_v45  ;;  %v2281_v15 = vsel %vm2250_vm6, %v2278_v23, %v2280_v24  ;;  %v8524_v56 = vshrl.u32 %v7999_v22, 16 }
 0x27c   :  { %v1455_v9 = vpop.permute.xlu1 %1454  ;;  %v2792_v11 = vld [vmem:[#allocation3 + $0x30] sm:$0xff] }
 0x27d   :  { %v2137_v6 = vpop.permute.xlu0 %2136  ;;  %v1691_v19 = vsel %vm1548_vm7, %v1681_v17, %v1690_v36 }
 0x27e   :  { %2192 = vst.msk [vmem:[#allocation3 + $0x68] sm:$0xff] %vm1341_vm10, %v2137_v6  ;;  %1472 = vrot.lane.b32.xlu1 %v1433_v41, %s6837_s0  ;;  %v8472_v41 = vshrl.u32 %v7941_v57, 16 }
 0x27f   :  { %2318 = vrot.lane.b32.xlu0 %v2279_v21, %s6837_s0  ;;  %v2091_v21 = vrot.slane %v8439_v63, 7 }
 0x280   :  { %v1288_v47 = vpop.permute.xlu1 %1287  ;;  %v2540_v60 = vrot.slane %v8472_v41, 5  ;;  %v2099_v50 = vrot.slane %v8472_v41, 7 }
 0x281   :  { %v2587_v4 = vpop.permute.xlu0 %2586  ;;  %1345 = vst.msk [vmem:[#allocation3 + $0x48] sm:$0xff] %vm1341_vm10, %v1288_v47  ;;  %v1243_v47 = vor.u32 %v8345_v25, %v1239_v14  ;;  %v1438_v25 = vrot.slane %v7941_v57, 1  ;;  %v2284_v14 = vrot.slane %v8015_v55, 5  ;;  %v2115_v57 = vrot.slane %v8524_v56, 7 }
 0x282   :  { %2644 = vst.msk [vmem:[#allocation3 + $0x38] sm:$0xff] %vm1797_vm12, %v2587_v4  ;;  %1474 = vrot.lane.b32.xlu1 %v1435_v52, %s6837_s0 }
 0x283   :  { %2156 = vrot.lane.b32.xlu0 %v2087_v46, %s6839_s27  ;;  %1510 = vst.msk [vmem:[#allocation3 + $0x48] sm:$0xff] %vm1506_vm11, %v1453_v62 }
 0x284   :  { %v1744_v28 = vpop.permute.xlu1 %1743 }
 0x285   :  { %v2135_v59 = vpop.permute.xlu0 %2134  ;;  %1801 = vst.msk [vmem:[#allocation3 + $0x48] sm:$0xff] %vm1797_vm12, %v1744_v28 }
 0x286   :  { %2191 = vst.msk [vmem:[#allocation3 + $0x50] sm:$0xff] %vm1341_vm10, %v2135_v59  ;;  %1307 = vrot.lane.b32.xlu1 %v1232_v8, %s6839_s27 }
 0x287   :  { %2355 = vst.msk [vmem:[#allocation3 + $0x50] sm:$0xff] %vm1506_vm11, %v2299_v61  ;;  %2606 = vrot.lane.b32.xlu0 %v2518_v30, %s6836_s17  ;;  %v8442_v61 = vshll.u32 %v7971_v34, 16  ;;  %v1437_v34 = vsel %vm1404_vm2, %v1434_v58, %v1436_v13  ;;  %v8497_v30 = vor.u32 %v2543_v35, %v2540_v60  ;;  %v2558_v35 = vrot.slane %v8524_v56, 5 }
 0x288   :  { %v1290_v27 = vpop.permute.xlu1 %1289 }
 0x289   :  { %v2589_v0 = vpop.permute.xlu0 %2588  ;;  %v2793_v42 = vld [vmem:[#allocation3 + $0x38] sm:$0xff]  ;;  %1346 = vst.msk [vmem:[#allocation3 + $0x60] sm:$0xff] %vm1341_vm10, %v1290_v27  ;;  %v2534_v5 = vrot.slane %v8442_v61, 6  ;;  %v1247_v18 = vrot.slane %v8442_v61, 1  ;;  %v1698_v10 = vrot.slane %v8442_v61, 7  ;;  %v2094_v46 = vor.u32 %v8442_v61, %v2091_v21 }
 0x28a   :  { %2645 = vst.msk [vmem:[#allocation3 + $0x50] sm:$0xff] %vm1797_vm12, %v2589_v0  ;;  %3098 = vmatprep.mubr.bf16.mxu1 %v2793_v42  ;;  %1763 = vrot.lane.b32.xlu1 %v1682_v32, %s6836_s17  ;;  %v1439_v0 = vsel %vm1404_vm2, %v1436_v13, %v1438_v25  ;;  %v2102_v27 = vor.u32 %v8475_v31, %v2099_v50  ;;  %v1704_v32 = vrot.slane %v8472_v41, 6  ;;  %v8545_v13 = vshll.u32 %v7999_v22, 16 }
 0x28b   :  { %2154 = vrot.lane.b32.xlu0 %v2079_v51, %s6839_s27  ;;  %3099 = vmatmul.mubr.bf16.gmra.mrb[8].mxu1 %v2792_v11  ;;  %1511 = vst.msk [vmem:[#allocation3 + $0x60] sm:$0xff] %vm1506_vm11, %v1455_v9  ;;  %v2535_v9 = vor.u32 %v2534_v5, %v2531_v3  ;;  %v1248_v1 = vsel %vm1116_vm4, %v1243_v47, %v1247_v18  ;;  %v1255_v11 = vrot.slane %v8475_v31, 1 }
 0x28c   :  { %v1746_v49 = vpop.permute.xlu1 %1745  ;;  %v2795_v2 = vld [vmem:[#allocation3 + $0x48] sm:$0xff]  ;;  %v1699_v52 = vor.u32 %v1698_v10, %v1695_v54  ;;  %v2095_v7 = vsel %vm1963_vm3, %v2083_v40, %v2094_v46  ;;  %v1251_v42 = vor.u32 %v8439_v63, %v1247_v18  ;;  %v8526_v24 = vor.u32 %v1707_v53, %v1704_v32 }
 0x28d   :  { %v2301_v33 = vpop.permute.xlu0 %2300  ;;  %1802 = vst.msk [vmem:[#allocation3 + $0x60] sm:$0xff] %vm1797_vm12, %v1746_v49  ;;  %v2536_v58 = vsel %vm2393_vm8, %v2526_v20, %v2535_v9  ;;  %v2545_v43 = vsel %vm2393_vm8, %v2535_v9, %v8497_v30  ;;  %v2285_v61 = vsel %vm2250_vm6, %v2282_v38, %v2284_v14  ;;  %v1442_v9 = vrot.slane %v7999_v22, 1 }
 0x28e   :  { %2356 = vst.msk [vmem:[#allocation3 + $0x68] sm:$0xff] %vm1506_vm11, %v2301_v33  ;;  %1309 = vrot.lane.b32.xlu1 %v1240_v29, %s6839_s27  ;;  %v1700_v28 = vsel %vm1548_vm7, %v1690_v36, %v1699_v52  ;;  %v2103_v33 = vsel %vm1963_vm3, %v2091_v21, %v2102_v27  ;;  %v1256_v45 = vsel %vm1116_vm4, %v1251_v42, %v1255_v11 }
 0x28f   :  { %2608 = vrot.lane.b32.xlu0 %v2527_v26, %s6836_s17  ;;  %v1709_v36 = vsel %vm1548_vm7, %v1699_v52, %v8526_v24 }
 0x290   :  { %v1457_v62 = vpop.permute.xlu1 %1456 }
 0x291   :  { %v2303_v44 = vpop.permute.xlu0 %2302  ;;  %v2796_v37 = vld [vmem:[#allocation3 + $0x50] sm:$0xff] }
 0x292   :  { %3106 = vmatprep.mubr.bf16.mxu1 %v2796_v37  ;;  %1765 = vrot.lane.b32.xlu1 %v1691_v19, %s6836_s17  ;;  %v2550_v37 = vshll.u32 %v8015_v55, 16 }
 0x293   :  { %2320 = vrot.lane.b32.xlu0 %v2281_v15, %s6837_s0  ;;  %3107 = vmatmul.mubr.bf16.gmra.mrb[12].mxu1 %v2795_v2  ;;  %v1440_v15 = vrot.slane %v8015_v55, 1 }
 0x294   :  { %v1459_v23 = vpop.permute.xlu1 %1458  ;;  %v2798_v16 = vld [vmem:[#allocation3 + $0x60] sm:$0xff]  ;;  %v1263_v10 = vrot.slane %v2550_v37, 1 }
 0x295   :  { %v2141_v6 = vpop.permute.xlu0 %2140  ;;  %v1443_v54 = vsel %vm1404_vm2, %v1440_v15, %v1442_v9 }
 0x296   :  { %2194 = vst.msk [vmem:[#allocation3 + $0x98] sm:$0xff] %vm1341_vm10, %v2141_v6  ;;  %1476 = vrot.lane.b32.xlu1 %v1437_v34, %s6837_s0  ;;  %v2552_v6 = vrot.slane %v2550_v37, 6 }
 0x297   :  { %2322 = vrot.lane.b32.xlu0 %v2283_v48, %s6837_s0 }
 0x298   :  { %v1292_v39 = vpop.permute.xlu1 %1291 }
 0x299   :  { %v2591_v4 = vpop.permute.xlu0 %2590  ;;  %1347 = vst.msk [vmem:[#allocation3 + $0x78] sm:$0xff] %vm1341_vm10, %v1292_v39  ;;  %v1259_v39 = vor.u32 %v8472_v41, %v1255_v11  ;;  %v1271_v41 = vrot.slane %v8545_v13, 1 }
 0x29a   :  { %2646 = vst.msk [vmem:[#allocation3 + $0x68] sm:$0xff] %vm1797_vm12, %v2591_v4  ;;  %1311 = vrot.lane.b32.xlu1 %v1248_v1, %s6839_s27  ;;  %v1716_v4 = vrot.slane %v2550_v37, 7 }
 0x29b   :  { %2610 = vrot.lane.b32.xlu0 %v2536_v58, %s6836_s17  ;;  %1512 = vst.msk [vmem:[#allocation3 + $0x78] sm:$0xff] %vm1506_vm11, %v1457_v62  ;;  %v2286_v62 = vrot.slane %v7999_v22, 5  ;;  %v1264_v52 = vsel %vm1116_vm4, %v1259_v39, %v1263_v10 }
 0x29c   :  { %v1748_v59 = vpop.permute.xlu1 %1747 }
 0x29d   :  { %v2139_v12 = vpop.permute.xlu0 %2138  ;;  %1803 = vst.msk [vmem:[#allocation3 + $0x78] sm:$0xff] %vm1797_vm12, %v1748_v59  ;;  %v2287_v3 = vsel %vm2250_vm6, %v2284_v14, %v2286_v62  ;;  %v1547_v14 = vld [vmem:[#allocation2 + $0xa0] sm:$0x7f] }
 0x29e   :  { %2193 = vst.msk [vmem:[#allocation3 + $0x80] sm:$0xff] %vm1341_vm10, %v2139_v12  ;;  %1767 = vrot.lane.b32.xlu1 %v1700_v28, %s6836_s17  ;;  %v2561_v12 = vrot.slane %v8545_v13, 6 }
 0x29f   :  { %2357 = vst.msk [vmem:[#allocation3 + $0x80] sm:$0xff] %vm1506_vm11, %v2303_v44  ;;  %2158 = vrot.lane.b32.xlu0 %v2095_v7, %s6839_s27  ;;  %v2105_v44 = vshrl.u32 %v8015_v55, 16  ;;  %v1441_v55 = vsel %vm1404_vm2, %v1438_v25, %v1440_v15 }
 0x2a0   :  { %v1294_v40 = vpop.permute.xlu1 %1293 }
 0x2a1   :  { %v2593_v8 = vpop.permute.xlu0 %2592  ;;  %v2799_v17 = vld [vmem:[#allocation3 + $0x68] sm:$0xff]  ;;  %1348 = vst.msk [vmem:[#allocation3 + $0x90] sm:$0xff] %vm1341_vm10, %v1294_v40  ;;  %v2107_v19 = vrot.slane %v2105_v44, 7  ;;  %v2549_v38 = vrot.slane %v2105_v44, 5  ;;  %v1713_v31 = vrot.slane %v2105_v44, 6  ;;  %v1267_v25 = vor.u32 %v2105_v44, %v1263_v10  ;;  %v2227_v40 = vld [vmem:[#allocation2 + $0xa0] sm:$0xff] }
 0x2a2   :  { %2647 = vst.msk [vmem:[#allocation3 + $0x80] sm:$0xff] %vm1797_vm12, %v2593_v8  ;;  %3114 = vmatprep.mubr.bf16.mxu1 %v2799_v17  ;;  %1478 = vrot.lane.b32.xlu1 %v1439_v0, %s6837_s0  ;;  %v1725_v0 = vrot.slane %v8545_v13, 7  ;;  %v2565_v11 = vshrl.u32 %v2227_v40, 16  ;;  %v2568_v32 = vshll.u32 %v2227_v40, 16 }
 0x2a3   :  { %2612 = vrot.lane.b32.xlu0 %v2545_v43, %s6836_s17  ;;  %3115 = vmatmul.mubr.bf16.gmra.mrb[16].mxu1 %v2798_v16  ;;  %1513 = vst.msk [vmem:[#allocation3 + $0x90] sm:$0xff] %vm1506_vm11, %v1459_v23  ;;  %v2118_v23 = vor.u32 %v8545_v13, %v2115_v57  ;;  %v2553_v18 = vor.u32 %v2552_v6, %v2549_v38  ;;  %v2392_v38 = vld [vmem:[#allocation2 + $0xa8] sm:$0x3f] }
 0x2a4   :  { %v1750_v20 = vpop.permute.xlu1 %1749  ;;  %v2801_v29 = vld [vmem:[#allocation3 + $0x78] sm:$0xff]  ;;  %v2110_v1 = vor.u32 %v2550_v37, %v2107_v19  ;;  %v1717_v60 = vor.u32 %v1716_v4, %v1713_v31  ;;  %v2562_v43 = vor.u32 %v2561_v12, %v2558_v35  ;;  %v1272_v53 = vsel %vm1116_vm4, %v1267_v25, %v1271_v41 }
 0x2a5   :  { %v2305_v51 = vpop.permute.xlu0 %2304  ;;  %1804 = vst.msk [vmem:[#allocation3 + $0x90] sm:$0xff] %vm1797_vm12, %v1750_v20  ;;  %v2119_v34 = vsel %vm1963_vm3, %v2107_v19, %v2118_v23  ;;  %v2554_v46 = vsel %vm2393_vm8, %v8497_v30, %v2553_v18  ;;  %v1382_v20 = vld [vmem:[#allocation2 + $0xa0] sm:$0x1]  ;;  %v2567_v37 = vrot.slane %v2565_v11, 5  ;;  %v2123_v23 = vrot.slane %v2565_v11, 7 }
 0x2a6   :  { %2358 = vst.msk [vmem:[#allocation3 + $0x98] sm:$0xff] %vm1506_vm11, %v2305_v51  ;;  %1313 = vrot.lane.b32.xlu1 %v1256_v45, %s6839_s27  ;;  %v2111_v30 = vsel %vm1963_vm3, %v2099_v50, %v2110_v1  ;;  %v1718_v17 = vsel %vm1548_vm7, %v8526_v24, %v1717_v60  ;;  %v1722_v50 = vrot.slane %v8524_v56, 6  ;;  %v2563_v27 = vsel %vm2393_vm8, %v2553_v18, %v2562_v43  ;;  %v2228_v24 = vld [vmem:[#allocation2 + $0xa8] sm:$0x1f] }
 0x2a7   :  { %2160 = vrot.lane.b32.xlu0 %v2103_v33, %s6839_s27  ;;  %v2288_v51 = vrot.slane %v2227_v40, 5  ;;  %v1115_v33 = vld [vmem:[#allocation2 + $0xa0] sm:$0x1]  ;;  %v1444_v44 = vrot.slane %v1382_v20, 1  ;;  %v2290_v19 = vrot.slane %v2228_v24, 5  ;;  %v2577_v10 = vshll.u32 %v2392_v38, 16 }
 0x2a8   :  { %v1461_v63 = vpop.permute.xlu1 %1460  ;;  %v1275_v4 = vor.u32 %v8524_v56, %v1271_v41  ;;  %v2126_v22 = vor.u32 %v2568_v32, %v2123_v23 }
 0x2a9   :  { %v2307_v49 = vpop.permute.xlu0 %2306  ;;  %v2802_v26 = vld [vmem:[#allocation3 + $0x80] sm:$0xff]  ;;  %v2291_v6 = vsel %vm2250_vm6, %v2288_v51, %v2290_v19  ;;  %v2579_v35 = vrot.slane %v2577_v10, 6 }
 0x2aa   :  { %3122 = vmatprep.mubr.bf16.mxu1 %v2802_v26  ;;  %1769 = vrot.lane.b32.xlu1 %v1709_v36, %s6836_s17  ;;  %v1726_v26 = vor.u32 %v1725_v0, %v1722_v50  ;;  %v2570_v36 = vrot.slane %v2568_v32, 6 }
 0x2ab   :  { %2324 = vrot.lane.b32.xlu0 %v2285_v61, %s6837_s0  ;;  %3123 = vmatmul.mubr.bf16.gmra.mrb[20].mxu1 %v2801_v29  ;;  %v2289_v61 = vsel %vm2250_vm6, %v2286_v62, %v2288_v51 }
 0x2ac   :  { %v1463_v5 = vpop.permute.xlu1 %1462  ;;  %v2804_v8 = vld [vmem:[#allocation3 + $0x90] sm:$0xff]  ;;  %v1727_v15 = vsel %vm1548_vm7, %v1717_v60, %v1726_v26 }
 0x2ad   :  { %v2145_v2 = vpop.permute.xlu0 %2144 }
 0x2ae   :  { %2196 = vst.msk [vmem:[#allocation3 + $0xc8] sm:$0xff] %vm1341_vm10, %v2145_v2  ;;  %1480 = vrot.lane.b32.xlu1 %v1441_v55, %s6837_s0  ;;  %v1277_v2 = vshll.u32 %v1115_v33, 16  ;;  %v2571_v55 = vor.u32 %v2570_v36, %v2567_v37 }
 0x2af   :  { %2326 = vrot.lane.b32.xlu0 %v2287_v3, %s6837_s0  ;;  %v1729_v3 = vshrl.u32 %v1547_v14, 16 }
 0x2b0   :  { %v1296_v21 = vpop.permute.xlu1 %1295 }
 0x2b1   :  { %v2595_v48 = vpop.permute.xlu0 %2594  ;;  %1349 = vst.msk [vmem:[#allocation3 + $0xa8] sm:$0xff] %vm1341_vm10, %v1296_v21  ;;  %v1279_v21 = vrot.slane %v1277_v2, 1 }
 0x2b2   :  { %2648 = vst.msk [vmem:[#allocation3 + $0x98] sm:$0xff] %vm1797_vm12, %v2595_v48  ;;  %1482 = vrot.lane.b32.xlu1 %v1443_v54, %s6837_s0  ;;  %v1445_v48 = vsel %vm1404_vm2, %v1442_v9, %v1444_v44  ;;  %v2574_v54 = vshrl.u32 %v2392_v38, 16  ;;  %vm5829_vm2 = vcmask 74752  }
 0x2b3   :  { %2164 = vrot.lane.b32.xlu0 %v2119_v34, %s6839_s27  ;;  %1514 = vst.msk [vmem:[#allocation3 + $0xa8] sm:$0xff] %vm1506_vm11, %v1461_v63  ;;  %v1731_v34 = vrot.slane %v1729_v3, 6  ;;  %v1280_v9 = vsel %vm1116_vm4, %v1275_v4, %v1279_v21 }
 0x2b4   :  { %v1752_v58 = vpop.permute.xlu1 %1751  ;;  %v2576_v60 = vrot.slane %v2574_v54, 5 }
 0x2b5   :  { %v2143_v47 = vpop.permute.xlu0 %2142  ;;  %1805 = vst.msk [vmem:[#allocation3 + $0xa8] sm:$0xff] %vm1797_vm12, %v1752_v58  ;;  %v2572_v58 = vsel %vm2393_vm8, %v2562_v43, %v2571_v55 }
 0x2b6   :  { %2195 = vst.msk [vmem:[#allocation3 + $0xb0] sm:$0xff] %vm1341_vm10, %v2143_v47  ;;  %1315 = vrot.lane.b32.xlu1 %v1264_v52, %s6839_s27 }
 0x2b7   :  { %2359 = vst.msk [vmem:[#allocation3 + $0xb0] sm:$0xff] %vm1506_vm11, %v2307_v49  ;;  %2614 = vrot.lane.b32.xlu0 %v2554_v46, %s6836_s17 }
 0x2b8   :  { %v1298_v28 = vpop.permute.xlu1 %1297 }
 0x2b9   :  { %v2597_v59 = vpop.permute.xlu0 %2596  ;;  %v2805_v7 = vld [vmem:[#allocation3 + $0x98] sm:$0xff]  ;;  %1350 = vst.msk [vmem:[#allocation3 + $0xc0] sm:$0xff] %vm1341_vm10, %v1298_v28  ;;  %v2127_v28 = vsel %vm1963_vm3, %v2115_v57, %v2126_v22 }
 0x2ba   :  { %2649 = vst.msk [vmem:[#allocation3 + $0xb0] sm:$0xff] %vm1797_vm12, %v2597_v59  ;;  %3130 = vmatprep.mubr.bf16.mxu1 %v2805_v7  ;;  %1771 = vrot.lane.b32.xlu1 %v1718_v17, %s6836_s17 }
 0x2bb   :  { %2162 = vrot.lane.b32.xlu0 %v2111_v30, %s6839_s27  ;;  %3131 = vmatmul.mubr.bf16.gmra.mrb[24].mxu1 %v2804_v8  ;;  %1515 = vst.msk [vmem:[#allocation3 + $0xc0] sm:$0xff] %vm1506_vm11, %v1463_v5  ;;  %v1732_v5 = vshll.u32 %v1547_v14, 16  ;;  %v2580_v8 = vor.u32 %v2579_v35, %v2576_v60 }
 0x2bc   :  { %v1754_v42 = vpop.permute.xlu1 %1753  ;;  %v2807_v29 = vld [vmem:[#allocation3 + $0xa8] sm:$0xff] }
 0x2bd   :  { %v2309_v16 = vpop.permute.xlu0 %2308  ;;  %1806 = vst.msk [vmem:[#allocation3 + $0xc0] sm:$0xff] %vm1797_vm12, %v1754_v42  ;;  %v1734_v18 = vrot.slane %v1732_v5, 7  ;;  %v2581_v56 = vsel %vm2393_vm8, %v2571_v55, %v2580_v8 }
 0x2be   :  { %2360 = vst.msk [vmem:[#allocation3 + $0xc8] sm:$0xff] %vm1506_vm11, %v2309_v16  ;;  %1317 = vrot.lane.b32.xlu1 %v1272_v53, %s6839_s27 }
 0x2bf   :  { %2616 = vrot.lane.b32.xlu0 %v2563_v27, %s6836_s17  ;;  %v1735_v1 = vor.u32 %v1734_v18, %v1731_v34 }
 0x2c0   :  { %v1465_v63 = vpop.permute.xlu1 %1464 }
 0x2c1   :  { %v2311_v45 = vpop.permute.xlu0 %2310  ;;  %v2808_v49 = vld [vmem:[#allocation3 + $0xb0] sm:$0xff]  ;;  %v1736_v30 = vsel %vm1548_vm7, %v1726_v26, %v1735_v1 }
 0x2c2   :  { %3138 = vmatprep.mubr.bf16.mxu1 %v2808_v49  ;;  %1773 = vrot.lane.b32.xlu1 %v1727_v15, %s6836_s17 }
 0x2c3   :  { %2328 = vrot.lane.b32.xlu0 %v2289_v61, %s6837_s0  ;;  %3139 = vmatmul.mubr.bf16.gmra.mrb[28].mxu1 %v2807_v29 }
 0x2c4   :  { %v1467_v62 = vpop.permute.xlu1 %1466  ;;  %v2810_v57 = vld [vmem:[#allocation3 + $0xc0] sm:$0xff] }
 0x2c5   :  { %v2149_v13 = vpop.permute.xlu0 %2148 }
 0x2c6   :  { %2198 = vst.msk [vmem:[#allocation3 + $0xf8] sm:$0xff] %vm1341_vm10, %v2149_v13  ;;  %1484 = vrot.lane.b32.xlu1 %v1445_v48, %s6837_s0 }
 0x2c7   :  { %2330 = vrot.lane.b32.xlu0 %v2291_v6, %s6837_s0  ;;  %v8607_v47 = vpop.f32.mrb[44].mxu0 }
 0x2c8   :  { %v1300_v39 = vpop.permute.xlu1 %1299  ;;  %v8611_v46 = vpop.f32.mrb[45].mxu0 }
 0x2c9   :  { %v2599_v31 = vpop.permute.xlu0 %2598  ;;  %1351 = vst.msk [vmem:[#allocation3 + $0xd8] sm:$0xff] %vm1341_vm10, %v1300_v39  ;;  %v8616_v52 = vpop.f32.mrb[46].mxu0 }
 0x2ca   :  { %2650 = vst.msk [vmem:[#allocation3 + $0xc8] sm:$0xff] %vm1797_vm12, %v2599_v31  ;;  %1319 = vrot.lane.b32.xlu1 %v1280_v9, %s6839_s27  ;;  %v8620_v12 = vpop.f32.mrb[47].mxu0 }
 0x2cb   :  { %2618 = vrot.lane.b32.xlu0 %v2572_v58, %s6836_s17  ;;  %1516 = vst.msk [vmem:[#allocation3 + $0xd8] sm:$0xff] %vm1506_vm11, %v1465_v63 }
 0x2cc   :  { %v1756_v7 = vpop.permute.xlu1 %1755 }
 0x2cd   :  { %v2147_v59 = vpop.permute.xlu0 %2146  ;;  %1807 = vst.msk [vmem:[#allocation3 + $0xd8] sm:$0xff] %vm1797_vm12, %v1756_v7 }
 0x2ce   :  { %2197 = vst.msk [vmem:[#allocation3 + $0xe0] sm:$0xff] %vm1341_vm10, %v2147_v59  ;;  %1775 = vrot.lane.b32.xlu1 %v1736_v30, %s6836_s17 }
 0x2cf   :  { %2361 = vst.msk [vmem:[#allocation3 + $0xe0] sm:$0xff] %vm1506_vm11, %v2311_v45  ;;  %2166 = vrot.lane.b32.xlu0 %v2127_v28, %s6839_s27 }
 0x2d0   :  { %v1302_v40 = vpop.permute.xlu1 %1301 }
 0x2d1   :  { %v2601_v17 = vpop.permute.xlu0 %2600  ;;  %v2811_v25 = vld [vmem:[#allocation3 + $0xc8] sm:$0xff]  ;;  %1352 = vst.msk [vmem:[#allocation3 + $0xf0] sm:$0xff] %vm1341_vm10, %v1302_v40 }
 0x2d2   :  { %2651 = vst.msk [vmem:[#allocation3 + $0xe0] sm:$0xff] %vm1797_vm12, %v2601_v17  ;;  %3146 = vmatprep.mubr.bf16.mxu1 %v2811_v25 }
 0x2d3   :  { %2620 = vrot.lane.b32.xlu0 %v2581_v56, %s6836_s17  ;;  %3147 = vmatmul.mubr.bf16.gmra.mrb[32].mxu1 %v2810_v57  ;;  %1517 = vst.msk [vmem:[#allocation3 + $0xf0] sm:$0xff] %vm1506_vm11, %v1467_v62 }
 0x2d4   :  { %v8636_v43 = vpop.f32.mrb[48].mxu0  ;;  %v1758_v50 = vpop.permute.xlu1 %1757  ;;  %v2813_v32 = vld [vmem:[#allocation3 + $0xd8] sm:$0xff] }
 0x2d5   :  { %v2313_v16 = vpop.permute.xlu0 %2312  ;;  %v8638_v41 = vpop.f32.mrb[49].mxu0  ;;  %1808 = vst.msk [vmem:[#allocation3 + $0xf0] sm:$0xff] %vm1797_vm12, %v1758_v50 }
 0x2d6   :  { %2362 = vst.msk [vmem:[#allocation3 + $0xf8] sm:$0xff] %vm1506_vm11, %v2313_v16  ;;  %v8641_v0 = vpop.f32.mrb[50].mxu0 }
 0x2d7   :  { %v8644_v42 = vpop.f32.mrb[51].mxu0 }
 0x2d8   :  { %v1469_v11 = vpop.permute.xlu1 %1468 }
 0x2d9   :  { %v2315_v27 = vpop.permute.xlu0 %2314  ;;  %v2814_v51 = vld [vmem:[#allocation3 + $0xe0] sm:$0xff] }
 0x2da   :  { %3154 = vmatprep.mubr.bf16.mxu1 %v2814_v51 }
 0x2db   :  { %3155 = vmatmul.mubr.bf16.gmra.mrb[36].mxu1 %v2813_v32 }
 0x2dc   :  { %v8646_v53 = vpop.f32.mrb[52].mxu0  ;;  %v1471_v14 = vpop.permute.xlu1 %1470  ;;  %v2816_v5 = vld [vmem:[#allocation3 + $0xf0] sm:$0xff] }
 0x2dd   :  { %v2153_v20 = vpop.permute.xlu0 %2152  ;;  %v8648_v33 = vpop.f32.mrb[53].mxu0 }
 0x2de   :  { %2200 = vst.msk [vmem:[#allocation3 + $0x128] sm:$0xff] %vm1341_vm10, %v2153_v20  ;;  %v8651_v45 = vpop.f32.mrb[54].mxu0 }
 0x2df   :  { %v8653_v49 = vpop.f32.mrb[55].mxu0 }
 0x2e0   :  { %v1304_v24 = vpop.permute.xlu1 %1303 }
 0x2e1   :  { %v2603_v26 = vpop.permute.xlu0 %2602  ;;  %1353 = vst.msk [vmem:[#allocation3 + $0x108] sm:$0xff] %vm1341_vm10, %v1304_v24 }
 0x2e2   :  { %2652 = vst.msk [vmem:[#allocation3 + $0xf8] sm:$0xff] %vm1797_vm12, %v2603_v26 }
 0x2e3   :  { %1518 = vst.msk [vmem:[#allocation3 + $0x108] sm:$0xff] %vm1506_vm11, %v1469_v11 }
 0x2e4   :  { %v8658_v63 = vpop.f32.mrb[56].mxu0  ;;  %v1760_v44 = vpop.permute.xlu1 %1759 }
 0x2e5   :  { %v2151_v61 = vpop.permute.xlu0 %2150  ;;  %v8660_v29 = vpop.f32.mrb[57].mxu0  ;;  %1809 = vst.msk [vmem:[#allocation3 + $0x108] sm:$0xff] %vm1797_vm12, %v1760_v44 }
 0x2e6   :  { %2199 = vst.msk [vmem:[#allocation3 + $0x110] sm:$0xff] %vm1341_vm10, %v2151_v61  ;;  %v8663_v37 = vpop.f32.mrb[58].mxu0 }
 0x2e7   :  { %2363 = vst.msk [vmem:[#allocation3 + $0x110] sm:$0xff] %vm1506_vm11, %v2315_v27  ;;  %v8667_v36 = vpop.f32.mrb[59].mxu0 }
 0x2e8   :  { %v1306_v3 = vpop.permute.xlu1 %1305 }
 0x2e9   :  { %v2605_v15 = vpop.permute.xlu0 %2604  ;;  %v2817_v2 = vld [vmem:[#allocation3 + $0xf8] sm:$0xff]  ;;  %1354 = vst.msk [vmem:[#allocation3 + $0x120] sm:$0xff] %vm1341_vm10, %v1306_v3 }
 0x2ea   :  { %2653 = vst.msk [vmem:[#allocation3 + $0x110] sm:$0xff] %vm1797_vm12, %v2605_v15  ;;  %3162 = vmatprep.mubr.bf16.mxu1 %v2817_v2 }
 0x2eb   :  { %3163 = vmatmul.mubr.bf16.gmra.mrb[40].mxu1 %v2816_v5  ;;  %1519 = vst.msk [vmem:[#allocation3 + $0x120] sm:$0xff] %vm1506_vm11, %v1471_v14 }
 0x2ec   :  { %v8672_v19 = vpop.f32.mrb[60].mxu0  ;;  %v1762_v62 = vpop.permute.xlu1 %1761  ;;  %v2819_v34 = vld [vmem:[#allocation3 + $0x108] sm:$0xff] }
 0x2ed   :  { %v2317_v13 = vpop.permute.xlu0 %2316  ;;  %v8674_v38 = vpop.f32.mrb[61].mxu0  ;;  %1810 = vst.msk [vmem:[#allocation3 + $0x120] sm:$0xff] %vm1797_vm12, %v1762_v62 }
 0x2ee   :  { %2364 = vst.msk [vmem:[#allocation3 + $0x128] sm:$0xff] %vm1506_vm11, %v2317_v13  ;;  %v8677_v6 = vpop.f32.mrb[62].mxu0 }
 0x2ef   :  { %v8680_v55 = vpop.f32.mrb[63].mxu0 }
 0x2f0   :  { %v1473_v21 = vpop.permute.xlu1 %1472 }
 0x2f1   :  { %v2319_v23 = vpop.permute.xlu0 %2318  ;;  %v2820_v48 = vld [vmem:[#allocation3 + $0x110] sm:$0xff] }
 0x2f2   :  { %3170 = vmatprep.mubr.bf16.mxu1 %v2820_v48 }
 0x2f3   :  { %3171 = vmatmul.mubr.bf16.gmra.mrb[44].mxu1 %v2819_v34 }
 0x2f4   :  { %v8682_v18 = vpop.f32.mrb[64].mxu0  ;;  %v1475_v31 = vpop.permute.xlu1 %1474  ;;  %v2822_v17 = vld [vmem:[#allocation3 + $0x120] sm:$0xff] }
 0x2f5   :  { %v2157_v54 = vpop.permute.xlu0 %2156  ;;  %v8684_v10 = vpop.f32.mrb[65].mxu0 }
 0x2f6   :  { %2202 = vst.msk [vmem:[#allocation3 + $0x158] sm:$0xff] %vm1341_vm10, %v2157_v54  ;;  %v8687_v4 = vpop.f32.mrb[66].mxu0 }
 0x2f7   :  { %v8689_v39 = vpop.f32.mrb[67].mxu0 }
 0x2f8   :  { %v1308_v22 = vpop.permute.xlu1 %1307 }
 0x2f9   :  { %v2607_v58 = vpop.permute.xlu0 %2606  ;;  %1355 = vst.msk [vmem:[#allocation3 + $0x138] sm:$0xff] %vm1341_vm10, %v1308_v22 }
 0x2fa   :  { %2654 = vst.msk [vmem:[#allocation3 + $0x128] sm:$0xff] %vm1797_vm12, %v2607_v58 }
 0x2fb   :  { %1520 = vst.msk [vmem:[#allocation3 + $0x138] sm:$0xff] %vm1506_vm11, %v1473_v21 }
 0x2fc   :  { %v8694_v9 = vpop.f32.mrb[68].mxu0  ;;  %v1764_v35 = vpop.permute.xlu1 %1763 }
 0x2fd   :  { %v2155_v1 = vpop.permute.xlu0 %2154  ;;  %v8696_v60 = vpop.f32.mrb[69].mxu0  ;;  %1811 = vst.msk [vmem:[#allocation3 + $0x138] sm:$0xff] %vm1797_vm12, %v1764_v35 }
 0x2fe   :  { %2201 = vst.msk [vmem:[#allocation3 + $0x140] sm:$0xff] %vm1341_vm10, %v2155_v1  ;;  %v8699_v59 = vpop.f32.mrb[70].mxu0 }
 0x2ff   :  { %2365 = vst.msk [vmem:[#allocation3 + $0x140] sm:$0xff] %vm1506_vm11, %v2319_v23  ;;  %v8703_v7 = vpop.f32.mrb[71].mxu0 }
 0x300   :  { %v1310_v8 = vpop.permute.xlu1 %1309 }
 0x301   :  { %v2609_v28 = vpop.permute.xlu0 %2608  ;;  %v2823_v30 = vld [vmem:[#allocation3 + $0x128] sm:$0xff]  ;;  %1356 = vst.msk [vmem:[#allocation3 + $0x150] sm:$0xff] %vm1341_vm10, %v1310_v8 }
 0x302   :  { %2655 = vst.msk [vmem:[#allocation3 + $0x140] sm:$0xff] %vm1797_vm12, %v2609_v28  ;;  %3178 = vmatprep.mubr.bf16.mxu1 %v2823_v30 }
 0x303   :  { %3179 = vmatmul.mubr.bf16.gmra.mrb[48].mxu1 %v2822_v17  ;;  %1521 = vst.msk [vmem:[#allocation3 + $0x150] sm:$0xff] %vm1506_vm11, %v1475_v31 }
 0x304   :  { %v8708_v25 = vpop.f32.mrb[72].mxu0  ;;  %v1766_v57 = vpop.permute.xlu1 %1765  ;;  %v2825_v32 = vld [vmem:[#allocation3 + $0x138] sm:$0xff] }
 0x305   :  { %v2321_v40 = vpop.permute.xlu0 %2320  ;;  %v8710_v56 = vpop.f32.mrb[73].mxu0  ;;  %1812 = vst.msk [vmem:[#allocation3 + $0x150] sm:$0xff] %vm1797_vm12, %v1766_v57 }
 0x306   :  { %2366 = vst.msk [vmem:[#allocation3 + $0x158] sm:$0xff] %vm1506_vm11, %v2321_v40  ;;  %v8713_v16 = vpop.f32.mrb[74].mxu0 }
 0x307   :  { %v8716_v50 = vpop.f32.mrb[75].mxu0 }
 0x308   :  { %v1477_v11 = vpop.permute.xlu1 %1476 }
 0x309   :  { %v2323_v27 = vpop.permute.xlu0 %2322  ;;  %v2826_v51 = vld [vmem:[#allocation3 + $0x140] sm:$0xff] }
 0x30a   :  { %3186 = vmatprep.mubr.bf16.mxu1 %v2826_v51 }
 0x30b   :  { %3187 = vmatmul.mubr.bf16.gmra.mrb[52].mxu1 %v2825_v32 }
 0x30c   :  { %v8718_v20 = vpop.f32.mrb[76].mxu0  ;;  %v1312_v24 = vpop.permute.xlu1 %1311  ;;  %v2828_v48 = vld [vmem:[#allocation3 + $0x150] sm:$0xff] }
 0x30d   :  { %v2611_v14 = vpop.permute.xlu0 %2610  ;;  %v8720_v26 = vpop.f32.mrb[77].mxu0  ;;  %1357 = vst.msk [vmem:[#allocation3 + $0x168] sm:$0xff] %vm1341_vm10, %v1312_v24 }
 0x30e   :  { %2656 = vst.msk [vmem:[#allocation3 + $0x158] sm:$0xff] %vm1797_vm12, %v2611_v14  ;;  %v8723_v61 = vpop.f32.mrb[78].mxu0 }
 0x30f   :  { %v8726_v44 = vpop.f32.mrb[79].mxu0  ;;  %1522 = vst.msk [vmem:[#allocation3 + $0x168] sm:$0xff] %vm1506_vm11, %v1477_v11 }
 0x310   :  { %v1768_v2 = vpop.permute.xlu1 %1767 }
 0x311   :  { %v2159_v15 = vpop.permute.xlu0 %2158  ;;  %1813 = vst.msk [vmem:[#allocation3 + $0x168] sm:$0xff] %vm1797_vm12, %v1768_v2 }
 0x312   :  { %2203 = vst.msk [vmem:[#allocation3 + $0x170] sm:$0xff] %vm1341_vm10, %v2159_v15 }
 0x313   :  { %2367 = vst.msk [vmem:[#allocation3 + $0x170] sm:$0xff] %vm1506_vm11, %v2323_v27 }
 0x314   :  { %v8732_v3 = vpop.f32.mrb[80].mxu0  ;;  %v1479_v23 = vpop.permute.xlu1 %1478 }
 0x315   :  { %v2613_v5 = vpop.permute.xlu0 %2612  ;;  %v2829_v13 = vld [vmem:[#allocation3 + $0x158] sm:$0xff]  ;;  %v8734_v62 = vpop.f32.mrb[81].mxu0 }
 0x316   :  { %2657 = vst.msk [vmem:[#allocation3 + $0x170] sm:$0xff] %vm1797_vm12, %v2613_v5  ;;  %3194 = vmatprep.mubr.bf16.mxu1 %v2829_v13  ;;  %v8737_v21 = vpop.f32.mrb[82].mxu0 }
 0x317   :  { %3195 = vmatmul.mubr.bf16.gmra.mrb[56].mxu1 %v2828_v48  ;;  %v8739_v34 = vpop.f32.mrb[83].mxu0 }
 0x318   :  { %v1314_v31 = vpop.permute.xlu1 %1313  ;;  %v2831_v35 = vld [vmem:[#allocation3 + $0x168] sm:$0xff] }
 0x319   :  { %v2161_v54 = vpop.permute.xlu0 %2160  ;;  %1358 = vst.msk [vmem:[#allocation3 + $0x180] sm:$0xff] %vm1341_vm10, %v1314_v31 }
 0x31a   :  { %2204 = vst.msk [vmem:[#allocation3 + $0x188] sm:$0xff] %vm1341_vm10, %v2161_v54 }
 0x31b   :  { %1523 = vst.msk [vmem:[#allocation3 + $0x180] sm:$0xff] %vm1506_vm11, %v1479_v23 }
 0x31c   :  { %v1770_v1 = vpop.permute.xlu1 %1769 }
 0x31d   :  { %v2325_v58 = vpop.permute.xlu0 %2324  ;;  %v2832_v22 = vld [vmem:[#allocation3 + $0x170] sm:$0xff]  ;;  %1814 = vst.msk [vmem:[#allocation3 + $0x180] sm:$0xff] %vm1797_vm12, %v1770_v1 }
 0x31e   :  { %2368 = vst.msk [vmem:[#allocation3 + $0x188] sm:$0xff] %vm1506_vm11, %v2325_v58  ;;  %3202 = vmatprep.mubr.bf16.mxu1 %v2832_v22 }
 0x31f   :  { %3203 = vmatmul.mubr.bf16.gmra.mrb[60].mxu1 %v2831_v35 }
 0x320   :  { %v1481_v30 = vpop.permute.xlu1 %1480 }
 0x321   :  { %v2327_v28 = vpop.permute.xlu0 %2326 }
 0x324   :  { %v1483_v17 = vpop.permute.xlu1 %1482  ;;  %v2834_v24 = vld [vmem:[#allocation3 + $0x180] sm:$0xff] }
 0x325   :  { %v2165_v8 = vpop.permute.xlu0 %2164 }
 0x326   :  { %2206 = vst.msk [vmem:[#allocation3 + $0x1b8] sm:$0xff] %vm1341_vm10, %v2165_v8 }
 0x328   :  { %v1316_v57 = vpop.permute.xlu1 %1315 }
 0x329   :  { %v2615_v40 = vpop.permute.xlu0 %2614  ;;  %1359 = vst.msk [vmem:[#allocation3 + $0x198] sm:$0xff] %vm1341_vm10, %v1316_v57 }
 0x32a   :  { %2658 = vst.msk [vmem:[#allocation3 + $0x188] sm:$0xff] %vm1797_vm12, %v2615_v40 }
 0x32b   :  { %1524 = vst.msk [vmem:[#allocation3 + $0x198] sm:$0xff] %vm1506_vm11, %v1481_v30 }
 0x32c   :  { %v1772_v51 = vpop.permute.xlu1 %1771 }
 0x32d   :  { %v2163_v27 = vpop.permute.xlu0 %2162  ;;  %1815 = vst.msk [vmem:[#allocation3 + $0x198] sm:$0xff] %vm1797_vm12, %v1772_v51 }
 0x32e   :  { %2205 = vst.msk [vmem:[#allocation3 + $0x1a0] sm:$0xff] %vm1341_vm10, %v2163_v27 }
 0x32f   :  { %2369 = vst.msk [vmem:[#allocation3 + $0x1a0] sm:$0xff] %vm1506_vm11, %v2327_v28 }
 0x330   :  { %v1318_v14 = vpop.permute.xlu1 %1317 }
 0x331   :  { %v2617_v11 = vpop.permute.xlu0 %2616  ;;  %v2835_v32 = vld [vmem:[#allocation3 + $0x188] sm:$0xff]  ;;  %1360 = vst.msk [vmem:[#allocation3 + $0x1b0] sm:$0xff] %vm1341_vm10, %v1318_v14 }
 0x332   :  { %2659 = vst.msk [vmem:[#allocation3 + $0x1a0] sm:$0xff] %vm1797_vm12, %v2617_v11  ;;  %3210 = vmatprep.mubr.bf16.mxu1 %v2835_v32 }
 0x333   :  { %3211 = vmatmul.mubr.bf16.gmra.mrb[64].mxu1 %v2834_v24  ;;  %1525 = vst.msk [vmem:[#allocation3 + $0x1b0] sm:$0xff] %vm1506_vm11, %v1483_v17 }
 0x334   :  { %v1774_v2 = vpop.permute.xlu1 %1773  ;;  %v2837_v48 = vld [vmem:[#allocation3 + $0x198] sm:$0xff] }
 0x335   :  { %v2329_v15 = vpop.permute.xlu0 %2328  ;;  %1816 = vst.msk [vmem:[#allocation3 + $0x1b0] sm:$0xff] %vm1797_vm12, %v1774_v2 }
 0x336   :  { %2370 = vst.msk [vmem:[#allocation3 + $0x1b8] sm:$0xff] %vm1506_vm11, %v2329_v15 }
 0x338   :  { %v1485_v23 = vpop.permute.xlu1 %1484 }
 0x339   :  { %v2331_v5 = vpop.permute.xlu0 %2330  ;;  %v2838_v13 = vld [vmem:[#allocation3 + $0x1a0] sm:$0xff] }
 0x33a   :  { %3218 = vmatprep.mubr.bf16.mxu1 %v2838_v13 }
 0x33b   :  { %3219 = vmatmul.mubr.bf16.gmra.mrb[68].mxu1 %v2837_v48 }
 0x33c   :  { %v1320_v31 = vpop.permute.xlu1 %1319  ;;  %v2840_v30 = vld [vmem:[#allocation3 + $0x1b0] sm:$0xff] }
 0x33d   :  { %v2619_v54 = vpop.permute.xlu0 %2618  ;;  %1361 = vst.msk [vmem:[#allocation3 + $0x1c8] sm:$0xff] %vm1341_vm10, %v1320_v31 }
 0x33e   :  { %2660 = vst.msk [vmem:[#allocation3 + $0x1b8] sm:$0xff] %vm1797_vm12, %v2619_v54 }
 0x33f   :  { %1526 = vst.msk [vmem:[#allocation3 + $0x1c8] sm:$0xff] %vm1506_vm11, %v1485_v23 }
 0x340   :  { %v1776_v22 = vpop.permute.xlu1 %1775 }
 0x341   :  { %v2167_v58 = vpop.permute.xlu0 %2166  ;;  %1817 = vst.msk [vmem:[#allocation3 + $0x1c8] sm:$0xff] %vm1797_vm12, %v1776_v22 }
 0x342   :  { %2207 = vst.msk [vmem:[#allocation3 + $0x1d0] sm:$0xff] %vm1341_vm10, %v2167_v58 }
 0x343   :  { %2371 = vst.msk [vmem:[#allocation3 + $0x1d0] sm:$0xff] %vm1506_vm11, %v2331_v5 }
 0x344   :  { %v3084_v28 = vpop.f32.mrb[0].mxu1 }
 0x345   :  { %v2621_v1 = vpop.permute.xlu0 %2620  ;;  %v2841_v35 = vld [vmem:[#allocation3 + $0x1b8] sm:$0xff]  ;;  %v8766_v8 = vadd.f32 %v8611_v46, %v3084_v28  ;;  %v3086_v17 = vpop.f32.mrb[1].mxu1 }
 0x346   :  { %2661 = vst.msk [vmem:[#allocation3 + $0x1d0] sm:$0xff] %vm1797_vm12, %v2621_v1  ;;  %3226 = vmatprep.mubr.bf16.mxu1 %v2841_v35  ;;  %v3087_v40 = vpop.f32.mrb[2].mxu1 }
 0x347   :  { %3227 = vmatmul.mubr.bf16.gmra.mrb[72].mxu1 %v2840_v30  ;;  %v8769_v57 = vadd.f32 %v8620_v12, %v3087_v40  ;;  %v3089_v27 = vpop.f32.mrb[3].mxu1 }
 0x348   :  { %v2843_v14 = vld [vmem:[#allocation3 + $0x1c8] sm:$0xff] }
 0x349   :  { %v3492_v51 = vpack.c.bf16 %v8769_v57, %v8766_v8 }
 0x34d   :  { %v2844_v11 = vld [vmem:[#allocation3 + $0x1d0] sm:$0xff] }
 0x34e   :  { %v3092_v32 = vpop.f32.mrb[4].mxu1  ;;  %3234 = vmatprep.mubr.bf16.mxu1 %v2844_v11 }
 0x34f   :  { %v8774_v24 = vadd.f32 %v8607_v47, %v3092_v32  ;;  %v3094_v15 = vpop.f32.mrb[5].mxu1  ;;  %3235 = vmatmul.mubr.bf16.gmra.mrb[76].mxu1 %v2843_v14  ;;  %v6647_v32 = vld [vmem:[%s9527_s5 + $0x4] ss:$12 sps:$4 sm:$0xff]  }
 0x350   :  { %v3095_v46 = vpop.f32.mrb[6].mxu1  ;;  %3797 = vmatprep.mubr.bf16.mxu0 %v6647_v32 }
 0x351   :  { %v8777_v2 = vadd.f32 %v8616_v52, %v3095_v46  ;;  %v3097_v5 = vpop.f32.mrb[7].mxu1 }
 0x353   :  { %v3493_v12 = vpack.c.bf16 %v8777_v2, %v8774_v24 }
 0x35e   :  { %v3100_v13 = vpop.f32.mrb[8].mxu1 }
 0x35f   :  { %v8782_v23 = vadd.f32 %v8638_v41, %v3100_v13  ;;  %v3102_v48 = vpop.f32.mrb[9].mxu1 }
 0x360   :  { %v3103_v54 = vpop.f32.mrb[10].mxu1 }
 0x361   :  { %v8785_v31 = vadd.f32 %v8644_v42, %v3103_v54  ;;  %v3105_v47 = vpop.f32.mrb[11].mxu1 }
 0x363   :  { %v3494_v58 = vpack.c.bf16 %v8785_v31, %v8782_v23 }
 0x366   :  { %v3108_v22 = vpop.f32.mrb[12].mxu1 }
 0x367   :  { %v8790_v52 = vadd.f32 %v8636_v43, %v3108_v22  ;;  %v3110_v1 = vpop.f32.mrb[13].mxu1 }
 0x368   :  { %v3111_v35 = vpop.f32.mrb[14].mxu1 }
 0x369   :  { %v8793_v28 = vadd.f32 %v8641_v0, %v3111_v35  ;;  %v3113_v41 = vpop.f32.mrb[15].mxu1 }
 0x36b   :  { %v3495_v30 = vpack.c.bf16 %v8793_v28, %v8790_v52 }
 0x376   :  { %v3116_v17 = vpop.f32.mrb[16].mxu1 }
 0x377   :  { %v8798_v42 = vadd.f32 %v8648_v33, %v3116_v17  ;;  %v3118_v40 = vpop.f32.mrb[17].mxu1 }
 0x378   :  { %v3119_v27 = vpop.f32.mrb[18].mxu1 }
 0x379   :  { %v8801_v11 = vadd.f32 %v8653_v49, %v3119_v27  ;;  %v3121_v43 = vpop.f32.mrb[19].mxu1 }
 0x37b   :  { %v3496_v0 = vpack.c.bf16 %v8801_v11, %v8798_v42 }
 0x37e   :  { %v3124_v14 = vpop.f32.mrb[20].mxu1 }
 0x37f   :  { %v8809_v15 = vadd.f32 %v8646_v53, %v3124_v14  ;;  %v3126_v33 = vpop.f32.mrb[21].mxu1 }
 0x380   :  { %v3127_v46 = vpop.f32.mrb[22].mxu1 }
 0x381   :  { %v8812_v5 = vadd.f32 %v8651_v45, %v3127_v46  ;;  %v3129_v49 = vpop.f32.mrb[23].mxu1 }
 0x383   :  { %v3497_v13 = vpack.c.bf16 %v8812_v5, %v8809_v15 }
 0x38e   :  { %v3132_v48 = vpop.f32.mrb[24].mxu1 }
 0x38f   :  { %v8817_v54 = vadd.f32 %v8660_v29, %v3132_v48  ;;  %v3134_v47 = vpop.f32.mrb[25].mxu1 }
 0x390   :  { %v3135_v22 = vpop.f32.mrb[26].mxu1 }
 0x391   :  { %v8820_v1 = vadd.f32 %v8667_v36, %v3135_v22  ;;  %v3137_v53 = vpop.f32.mrb[27].mxu1 }
 0x393   :  { %v3498_v35 = vpack.c.bf16 %v8820_v1, %v8817_v54  ;;  %v6648_v54 = vld [vmem:[%s9527_s5 + $0x1c] ss:$12 sps:$4 sm:$0xff]  }
 0x396   :  { %v3140_v41 = vpop.f32.mrb[28].mxu1 }
 0x397   :  { %v8825_v45 = vadd.f32 %v8658_v63, %v3140_v41  ;;  %v3142_v17 = vpop.f32.mrb[29].mxu1  ;;  %v6663_v63 = vld [vmem:[%s9527_s5 + $0x8] ss:$12 sps:$4 sm:$0xff]  }
 0x398   :  { %v3143_v40 = vpop.f32.mrb[30].mxu1  ;;  %6536 = vmatprep.mubr.msk.bf16.mxu1 %vm3722_vm13, %v6663_v63 }
 0x399   :  { %v8828_v27 = vadd.f32 %v8663_v37, %v3143_v40  ;;  %v3145_v29 = vpop.f32.mrb[31].mxu1 }
 0x39b   :  { %v3499_v43 = vpack.c.bf16 %v8828_v27, %v8825_v45 }
 0x3a6   :  { %v3148_v32 = vpop.f32.mrb[32].mxu1 }
 0x3a7   :  { %v3342_v36 = vadd.f32 %v8674_v38, %v3148_v32  ;;  %v3150_v14 = vpop.f32.mrb[33].mxu1 }
 0x3a8   :  { %v3151_v33 = vpop.f32.mrb[34].mxu1 }
 0x3a9   :  { %v3345_v46 = vadd.f32 %v8680_v55, %v3151_v33  ;;  %v3153_v49 = vpop.f32.mrb[35].mxu1 }
 0x3ab   :  { %v3500_v48 = vpack.c.bf16 %v3345_v46, %v3342_v36 }
 0x3ad   :  { %6174 = vmatprep.subr.bf16.mxu0 %v3500_v48 }
 0x3ae   :  { %v3156_v37 = vpop.f32.mrb[36].mxu1  ;;  %6175 = vmatpush3.bf16.msra.mxu0 %v3492_v51 }
 0x3af   :  { %v3350_v38 = vadd.f32 %v8672_v19, %v3156_v37  ;;  %v3158_v47 = vpop.f32.mrb[37].mxu1 }
 0x3b0   :  { %v3159_v22 = vpop.f32.mrb[38].mxu1 }
 0x3b1   :  { %v3353_v55 = vadd.f32 %v8677_v6, %v3159_v22  ;;  %v3161_v53 = vpop.f32.mrb[39].mxu1  ;;  %v6653_v22 = vld [vmem:[%s9527_s5 + $0x30] ss:$12 sps:$4 sm:$0xff]  }
 0x3b3   :  { %v3501_v41 = vpack.c.bf16 %v3353_v55, %v3350_v38  ;;  %v6654_v55 = vld [vmem:[%s9527_s5 + $0x4c] ss:$12 sps:$4 sm:$0xff]  }
 0x3b5   :  { %6176 = vmatprep.subr.bf16.mxu0 %v3501_v41 }
 0x3b6   :  { %6177 = vmatpush3.bf16.msra.mxu0 %v3493_v12 }
 0x3be   :  { %v3164_v17 = vpop.f32.mrb[40].mxu1 }
 0x3bf   :  { %v3358_v40 = vadd.f32 %v8684_v10, %v3164_v17  ;;  %v3166_v29 = vpop.f32.mrb[41].mxu1 }
 0x3c0   :  { %v3167_v32 = vpop.f32.mrb[42].mxu1 }
 0x3c1   :  { %v3361_v8 = vadd.f32 %v8689_v39, %v3167_v32  ;;  %v3169_v57 = vpop.f32.mrb[43].mxu1  ;;  %v6656_v32 = vld [vmem:[%s9527_s5 + $0x48] ss:$12 sps:$4 sm:$0xff]  }
 0x3c3   :  { %v3502_v19 = vpack.c.bf16 %v3361_v8, %v3358_v40  ;;  %v6657_v8 = vld [vmem:[%s9527_s5 + $0x64] ss:$12 sps:$4 sm:$0xff]  }
 0x3c5   :  { %6178 = vmatprep.subr.bf16.mxu0 %v3502_v19 }
 0x3c6   :  { %v3172_v51 = vpop.f32.mrb[44].mxu1  ;;  %6179 = vmatpush3.bf16.msra.mxu0 %v3494_v58 }
 0x3c7   :  { %v3366_v6 = vadd.f32 %v8682_v18, %v3172_v51  ;;  %v3174_v36 = vpop.f32.mrb[45].mxu1 }
 0x3c8   :  { %v3175_v24 = vpop.f32.mrb[46].mxu1 }
 0x3c9   :  { %v3369_v2 = vadd.f32 %v8687_v4, %v3175_v24  ;;  %v3177_v12 = vpop.f32.mrb[47].mxu1 }
 0x3cb   :  { %v3503_v10 = vpack.c.bf16 %v3369_v2, %v3366_v6 }
 0x3cd   :  { %6180 = vmatprep.subr.bf16.mxu0 %v3503_v10  ;;  %v6662_v10 = vld [vmem:[%s9527_s5 + $0x78] ss:$12 sps:$4 sm:$0xff]  }
 0x3ce   :  { %6181 = vmatpush3.bf16.msra.mxu0 %v3495_v30 }
 0x3d6   :  { %v3180_v39 = vpop.f32.mrb[48].mxu1 }
 0x3d7   :  { %v3374_v14 = vadd.f32 %v8696_v60, %v3180_v39  ;;  %v3182_v33 = vpop.f32.mrb[49].mxu1 }
 0x3d8   :  { %v3183_v46 = vpop.f32.mrb[50].mxu1 }
 0x3d9   :  { %v3377_v23 = vadd.f32 %v8703_v7, %v3183_v46  ;;  %v3185_v31 = vpop.f32.mrb[51].mxu1 }
 0x3db   :  { %v3504_v18 = vpack.c.bf16 %v3377_v23, %v3374_v14  ;;  %v6665_v14 = vld [vmem:[%s9527_s5 + $0x94] ss:$12 sps:$4 sm:$0xff]  }
 0x3dd   :  { %6182 = vmatprep.subr.bf16.mxu0 %v3504_v18  ;;  %v6664_v18 = vld [vmem:[%s9527_s5 + $0x20] ss:$12 sps:$4 sm:$0xff]  }
 0x3de   :  { %v3188_v58 = vpop.f32.mrb[52].mxu1  ;;  %6183 = vmatpush3.bf16.msra.mxu0 %v3496_v0 }
 0x3df   :  { %v3382_v4 = vadd.f32 %v8694_v9, %v3188_v58  ;;  %v3190_v49 = vpop.f32.mrb[53].mxu1  ;;  %v6667_v58 = vld [vmem:[%s9527_s5 + $0x90] ss:$12 sps:$4 sm:$0xff]  }
 0x3e0   :  { %v3191_v52 = vpop.f32.mrb[54].mxu1  ;;  %v6672_v49 = vld [vmem:[%s9527_s5 + $0xa8] ss:$12 sps:$4 sm:$0xff]  }
 0x3e1   :  { %v3385_v28 = vadd.f32 %v8699_v59, %v3191_v52  ;;  %v3193_v30 = vpop.f32.mrb[55].mxu1  ;;  %v6673_v52 = vld [vmem:[%s9527_s5 + $0x68] ss:$12 sps:$4 sm:$0xff]  }
 0x3e2   :  { %v6674_v30 = vld [vmem:[%s9527_s5 + $0x80] ss:$12 sps:$4 sm:$0xff]  }
 0x3e3   :  { %v3505_v60 = vpack.c.bf16 %v3385_v28, %v3382_v4  ;;  %v6669_v4 = vld [vmem:[%s9527_s5 + $0x50] ss:$12 sps:$4 sm:$0xff]  }
 0x3e4   :  { %v6675_v28 = vld [vmem:[%s9527_s5 + $0xc4] ss:$12 sps:$4 sm:$0xff]  }
 0x3e5   :  { %6184 = vmatprep.subr.bf16.mxu0 %v3505_v60  ;;  %v6677_v60 = vld [vmem:[%s9527_s5 + $0xc0] ss:$12 sps:$4 sm:$0xff]  }
 0x3e6   :  { %6185 = vmatpush3.bf16.msra.mxu0 %v3497_v13 }
 0x3ea   :  { %v3196_v7 = vpop.f32.mrb[56].mxu1 }
 0x3eb   :  { %v3390_v63 = vadd.f32 %v8710_v56, %v3196_v7  ;;  %v3198_v48 = vpop.f32.mrb[57].mxu1  ;;  %v6678_v7 = vld [vmem:[%s9527_s5 + $0x98] ss:$12 sps:$4 sm:$0xff]  }
 0x3ec   :  { %v3199_v37 = vpop.f32.mrb[58].mxu1  ;;  %v6679_v48 = vld [vmem:[%s9527_s5 + $0xb0] ss:$12 sps:$4 sm:$0xff]  }
 0x3ed   :  { %v3393_v42 = vadd.f32 %v8716_v50, %v3199_v37  ;;  %v3201_v11 = vpop.f32.mrb[59].mxu1  ;;  %v6645_v50 = vld [vmem:[%s9527_s5] ss:$12 sps:$4 sm:$0xff]   ;;  %v6682_v37 = vld [vmem:[%s9527_s5 + $0xd8] ss:$12 sps:$4 sm:$0xff]  }
 0x3ee   :  { %v6685_v11 = vld [vmem:[%s9527_s5 + $0xf4] ss:$12 sps:$4 sm:$0xff]  }
 0x3ef   :  { %v3506_v9 = vpack.c.bf16 %v3393_v42, %v3390_v63  ;;  %v6680_v63 = vld [vmem:[%s9527_s5 + $0xdc] ss:$12 sps:$4 sm:$0xff]  }
 0x3f0   :  { %v6683_v42 = vld [vmem:[%s9527_s5 + $0xc8] ss:$12 sps:$4 sm:$0xff]  }
 0x3f1   :  { %6186 = vmatprep.subr.bf16.mxu0 %v3506_v9  ;;  %v6684_v9 = vld [vmem:[%s9527_s5 + $0xe0] ss:$12 sps:$4 sm:$0xff]  }
 0x3f2   :  { %v3204_v0 = vpop.f32.mrb[60].mxu1  ;;  %6187 = vmatpush3.bf16.msra.mxu0 %v3498_v35 }
 0x3f3   :  { %v3398_v59 = vadd.f32 %v8708_v25, %v3204_v0  ;;  %v3206_v38 = vpop.f32.mrb[61].mxu1  ;;  %v6650_v25 = vld [vmem:[%s9527_s5 + $0x18] ss:$12 sps:$4 sm:$0xff]   ;;  %v6687_v0 = vld [vmem:[%s9527_s5 + $0xf0] ss:$12 sps:$4 sm:$0xff]  }
 0x3f4   :  { %v3207_v15 = vpop.f32.mrb[62].mxu1  ;;  %v6690_v38 = vld [vmem:[%s9527_s5 + $0x10c] ss:$12 sps:$4 sm:$0xff]  }
 0x3f5   :  { %v3401_v5 = vadd.f32 %v8713_v16, %v3207_v15  ;;  %v3209_v13 = vpop.f32.mrb[63].mxu1  ;;  %v6651_v16 = vld [vmem:[%s9527_s5 + $0x34] ss:$12 sps:$4 sm:$0xff]   ;;  %v6689_v15 = vld [vmem:[%s9527_s5 + $0x110] ss:$12 sps:$4 sm:$0xff]  }
 0x3f6   :  { %v6693_v13 = vld [vmem:[%s9527_s5 + $0x124] ss:$12 sps:$4 sm:$0xff]  }
 0x3f7   :  { %v3507_v56 = vpack.c.bf16 %v3401_v5, %v3398_v59  ;;  %v6688_v59 = vld [vmem:[%s9527_s5 + $0xf8] ss:$12 sps:$4 sm:$0xff]   ;;  %v6692_v5 = vld [vmem:[%s9527_s5 + $0x108] ss:$12 sps:$4 sm:$0xff]  }
 0x3f9   :  { %6188 = vmatprep.subr.bf16.mxu0 %v3507_v56  ;;  %v6696_v56 = vld [vmem:[%s9527_s5 + $0x128] ss:$12 sps:$4 sm:$0xff]  }
 0x3fa   :  { %6189 = vmatpush3.bf16.msra.mxu0 %v3499_v43 }
 0x3fd   :  { %3798 = vmatmul.mubr.bf16.vlgmr.msra.gmra.mrb[84].mxu0 %v6645_v50  ;;  %v6695_v50 = vld [vmem:[%s9527_s5 + $0x120] ss:$12 sps:$4 sm:$0xff]  }
 0x3fe   :  { %3805 = vmatprep.mubr.bf16.mxu0 %v6648_v54  ;;  %v6697_v54 = vld [vmem:[%s9527_s5 + $0x140] ss:$12 sps:$4 sm:$0xff]  }
 0x405   :  { %3806 = vmatmul.mubr.bf16.gmra.mrb[88].mxu0 %v6650_v25  ;;  %v6698_v25 = vld [vmem:[%s9527_s5 + $0x13c] ss:$12 sps:$4 sm:$0xff]  }
 0x406   :  { %v3212_v1 = vpop.f32.mrb[64].mxu1  ;;  %3813 = vmatprep.mubr.bf16.mxu0 %v6651_v16  ;;  %v6700_v16 = vld [vmem:[%s9527_s5 + $0x138] ss:$12 sps:$4 sm:$0xff]  }
 0x407   :  { %v3406_v35 = vadd.f32 %v8720_v26, %v3212_v1  ;;  %v3214_v45 = vpop.f32.mrb[65].mxu1 }
 0x408   :  { %v3215_v27 = vpop.f32.mrb[66].mxu1 }
 0x409   :  { %v3409_v43 = vadd.f32 %v8726_v44, %v3215_v27  ;;  %v3217_v47 = vpop.f32.mrb[67].mxu1 }
 0x40b   :  { %v3508_v53 = vpack.c.bf16 %v3409_v43, %v3406_v35 }
 0x40d   :  { %6528 = vmatprep.subr.bf16.mxu1 %v3508_v53  ;;  %3814 = vmatmul.mubr.bf16.gmra.mrb[92].mxu0 %v6653_v22 }
 0x40e   :  { %v3220_v41 = vpop.f32.mrb[68].mxu1  ;;  %6529 = vmatpush3.bf16.msra.mxu1 %v3508_v53  ;;  %3821 = vmatprep.mubr.bf16.mxu0 %v6654_v55 }
 0x40f   :  { %v3414_v26 = vadd.f32 %v8718_v20, %v3220_v41  ;;  %v3222_v17 = vpop.f32.mrb[69].mxu1  ;;  %v6659_v20 = vld [vmem:[%s9527_s5 + $0x60] ss:$12 sps:$4 sm:$0xff]  }
 0x410   :  { %v3223_v40 = vpop.f32.mrb[70].mxu1  ;;  %v6702_v17 = vld [vmem:[%s9528_s6] sm:$0xff]  }
 0x411   :  { %v3417_v44 = vadd.f32 %v8723_v61, %v3223_v40  ;;  %v3225_v29 = vpop.f32.mrb[71].mxu1  ;;  %v6660_v61 = vld [vmem:[%s9527_s5 + $0x7c] ss:$12 sps:$4 sm:$0xff]   ;;  %v6703_v40 = vld [vmem:[%s9528_s6 + $0xc0] sm:$0xff]  }
 0x412   :  { %v6704_v29 = vld [vmem:[%s9528_s6 + $0x80] sm:$0xff]   ;;  %6314 = vmatprep.subr.bf16.mxu0 %v6703_v40 }
 0x413   :  { %v3509_v57 = vpack.c.bf16 %v3417_v44, %v3414_v26  ;;  %v6701_v26 = vld [vmem:[%s9528_s6 + $0x40] sm:$0xff]   ;;  %6315 = vmatpush3.bf16.msra.mxu0 %v6704_v29 }
 0x415   :  { %6530 = vmatprep.subr.bf16.mxu1 %v3509_v57  ;;  %3822 = vmatmul.mubr.bf16.gmra.mrb[96].mxu0 %v6656_v32  ;;  %v6705_v32 = vld [vmem:[%s9528_s6 + $0x48] sm:$0xff]  }
 0x416   :  { %6531 = vmatpush3.bf16.msra.mxu1 %v3509_v57  ;;  %3829 = vmatprep.mubr.bf16.mxu0 %v6657_v8  ;;  %v6706_v57 = vld [vmem:[%s9528_s6 + $0x8] sm:$0xff]  }
 0x41a   :  { %v3228_v19 = vpop.f32.mrb[72].mxu1 }
 0x41b   :  { %v3422_v51 = vadd.f32 %v8734_v62, %v3228_v19  ;;  %v3230_v6 = vpop.f32.mrb[73].mxu1 }
 0x41c   :  { %v3231_v36 = vpop.f32.mrb[74].mxu1 }
 0x41d   :  { %v3425_v24 = vadd.f32 %v8739_v34, %v3231_v36  ;;  %v3233_v2 = vpop.f32.mrb[75].mxu1  ;;  %3830 = vmatmul.mubr.bf16.gmra.mrb[100].mxu0 %v6659_v20 }
 0x41e   :  { %3837 = vmatprep.mubr.bf16.mxu0 %v6660_v61 }
 0x41f   :  { %v3510_v12 = vpack.c.bf16 %v3425_v24, %v3422_v51 }
 0x421   :  { %6532 = vmatprep.subr.bf16.mxu1 %v3510_v12 }
 0x422   :  { %v3236_v39 = vpop.f32.mrb[76].mxu1  ;;  %6533 = vmatpush3.bf16.msra.mxu1 %v3510_v12 }
 0x423   :  { %v3430_v62 = vadd.f32 %v8732_v3, %v3236_v39  ;;  %v3238_v33 = vpop.f32.mrb[77].mxu1  ;;  %v6668_v3 = vld [vmem:[%s9527_s5 + $0x38] ss:$12 sps:$4 sm:$0xff]  }
 0x424   :  { %v3239_v46 = vpop.f32.mrb[78].mxu1 }
 0x425   :  { %v3433_v34 = vadd.f32 %v8737_v21, %v3239_v46  ;;  %v3241_v23 = vpop.f32.mrb[79].mxu1  ;;  %3838 = vmatmul.mubr.bf16.gmra.mrb[104].mxu0 %v6662_v10  ;;  %v6670_v21 = vld [vmem:[%s9527_s5 + $0xac] ss:$12 sps:$4 sm:$0xff]  }
 0x426   :  { %3845 = vmatprep.mubr.bf16.mxu0 %v6665_v14 }
 0x427   :  { %v3511_v31 = vpack.c.bf16 %v3433_v34, %v3430_v62 }
 0x429   :  { %6534 = vmatprep.subr.bf16.mxu1 %v3511_v31 }
 0x42a   :  { %6535 = vmatpush3.bf16.msra.mxu1 %v3511_v31 }
 0x42b   :  { %6292 = vmatprep.subr.bf16.mxu1 %v6701_v26 }
 0x42d   :  { %6537 = vmatmul.mubr.msk.bf16.vlgmr.msra.gmra.mrb[80].mxu1 %vm3722_vm13, %v6664_v18  ;;  %3846 = vmatmul.mubr.bf16.gmra.mrb[108].mxu0 %v6667_v58 }
 0x42e   :  { %6540 = vmatprep.mubr.msk.bf16.mxu1 %vm3722_vm13, %v6668_v3  ;;  %3853 = vmatprep.mubr.bf16.mxu0 %v6670_v21 }
 0x42f   :  { %6293 = vmatpush3.bf16.msra.mxu1 %v6702_v17 }
 0x430   :  { %6294 = vmatprep.subr.bf16.mxu1 %v6705_v32 }
 0x433   :  { %6295 = vmatpush3.bf16.msra.mxu1 %v6706_v57 }
 0x435   :  { %6541 = vmatmul.mubr.msk.bf16.gmra.mrb[84].mxu1 %vm3722_vm13, %v6669_v4  ;;  %3854 = vmatmul.mubr.bf16.gmra.mrb[112].mxu0 %v6672_v49 }
 0x436   :  { %6544 = vmatprep.mubr.msk.bf16.mxu1 %vm3722_vm13, %v6673_v52  ;;  %3861 = vmatprep.mubr.bf16.mxu0 %v6675_v28 }
 0x43d   :  { %6545 = vmatmul.mubr.msk.bf16.gmra.mrb[88].mxu1 %vm3722_vm13, %v6674_v30  ;;  %3862 = vmatmul.mubr.bf16.gmra.mrb[116].mxu0 %v6677_v60 }
 0x43e   :  { %6548 = vmatprep.mubr.msk.bf16.mxu1 %vm3722_vm13, %v6678_v7  ;;  %3869 = vmatprep.mubr.bf16.mxu0 %v6680_v63 }
 0x445   :  { %6549 = vmatmul.mubr.msk.bf16.gmra.mrb[92].mxu1 %vm3722_vm13, %v6679_v48  ;;  %3870 = vmatmul.mubr.bf16.gmra.mrb[120].mxu0 %v6682_v37 }
 0x446   :  { %6552 = vmatprep.mubr.msk.bf16.mxu1 %vm3722_vm13, %v6683_v42  ;;  %3877 = vmatprep.mubr.bf16.mxu0 %v6685_v11 }
 0x44d   :  { %6553 = vmatmul.mubr.msk.bf16.gmra.mrb[96].mxu1 %vm3722_vm13, %v6684_v9  ;;  %3878 = vmatmul.mubr.bf16.gmra.mrb[124].mxu0 %v6687_v0 }
 0x44e   :  { %6556 = vmatprep.mubr.msk.bf16.mxu1 %vm3722_vm13, %v6688_v59  ;;  %3885 = vmatprep.mubr.bf16.mxu0 %v6690_v38 }
 0x455   :  { %6557 = vmatmul.mubr.msk.bf16.gmra.mrb[100].mxu1 %vm3722_vm13, %v6689_v15  ;;  %3886 = vmatmul.mubr.bf16.gmra.mrb[128].mxu0 %v6692_v5 }
 0x456   :  { %3893 = vmatprep.mubr.bf16.mxu0 %v6693_v13  ;;  %6560 = vmatprep.mubr.msk.bf16.mxu1 %vm3722_vm13, %v6696_v56 }
 0x45d   :  { %3894 = vmatmul.mubr.bf16.gmra.mrb[132].mxu0 %v6695_v50  ;;  %6561 = vmatmul.mubr.msk.bf16.gmra.mrb[104].mxu1 %vm3722_vm13, %v6697_v54 }
 0x45e   :  { %3901 = vmatprep.mubr.bf16.mxu0 %v6698_v25 }
 0x465   :  { %3902 = vmatmul.mubr.bf16.gmra.mrb[136].mxu0 %v6700_v16 }
 0x4d0   :  { %v6190_v1 = vpop.f32.mrb[84].mxu0 }
 0x4d1   :  { %v6191_v35 = vpop.f32.mrb[85].mxu0 }
 0x4d2   :  { %v6192_v45 = vadd.f32 %v6191_v35, %v6190_v1  ;;  %v6193_v27 = vpop.f32.mrb[86].mxu0 }
 0x4d3   :  { %v6194_v43 = vpop.f32.mrb[87].mxu0 }
 0x4d4   :  { %v6195_v47 = vadd.f32 %v6194_v43, %v6193_v27 }
 0x4d8   :  { %v6196_v22 = vpop.f32.mrb[88].mxu0 }
 0x4d9   :  { %v6197_v55 = vpop.f32.mrb[89].mxu0 }
 0x4da   :  { %v6198_v53 = vadd.f32 %v6197_v55, %v6196_v22  ;;  %v6199_v41 = vpop.f32.mrb[90].mxu0 }
 0x4db   :  { %v6200_v44 = vpop.f32.mrb[91].mxu0 }
 0x4dc   :  { %v6201_v8 = vadd.f32 %v6200_v44, %v6199_v41 }
 0x4e0   :  { %v6202_v20 = vpop.f32.mrb[92].mxu0 }
 0x4e1   :  { %v6203_v19 = vpop.f32.mrb[93].mxu0 }
 0x4e2   :  { %v6204_v61 = vadd.f32 %v6203_v19, %v6202_v20  ;;  %v6205_v51 = vpop.f32.mrb[94].mxu0 }
 0x4e3   :  { %v6206_v6 = vpop.f32.mrb[95].mxu0 }
 0x4e4   :  { %v6207_v36 = vadd.f32 %v6206_v6, %v6205_v51 }
 0x4e8   :  { %v6208_v24 = vpop.f32.mrb[96].mxu0 }
 0x4e9   :  { %v6209_v2 = vpop.f32.mrb[97].mxu0 }
 0x4ea   :  { %v6210_v12 = vadd.f32 %v6209_v2, %v6208_v24  ;;  %v6211_v10 = vpop.f32.mrb[98].mxu0 }
 0x4eb   :  { %v6212_v39 = vpop.f32.mrb[99].mxu0 }
 0x4ec   :  { %v6213_v14 = vadd.f32 %v6212_v39, %v6211_v10 }
 0x4f0   :  { %v6214_v62 = vpop.f32.mrb[100].mxu0 }
 0x4f1   :  { %v6215_v33 = vpop.f32.mrb[101].mxu0 }
 0x4f2   :  { %v6216_v46 = vadd.f32 %v6215_v33, %v6214_v62  ;;  %v6217_v34 = vpop.f32.mrb[102].mxu0 }
 0x4f3   :  { %v6218_v23 = vpop.f32.mrb[103].mxu0 }
 0x4f4   :  { %v6219_v31 = vadd.f32 %v6218_v23, %v6217_v34 }
 0x4f8   :  { %v6220_v18 = vpop.f32.mrb[104].mxu0 }
 0x4f9   :  { %v6221_v58 = vpop.f32.mrb[105].mxu0 }
 0x4fa   :  { %v6222_v3 = vadd.f32 %v6221_v58, %v6220_v18  ;;  %v6223_v21 = vpop.f32.mrb[106].mxu0 }
 0x4fb   :  { %v6224_v4 = vpop.f32.mrb[107].mxu0 }
 0x4fc   :  { %v6225_v49 = vadd.f32 %v6224_v4, %v6223_v21 }
 0x500   :  { %v6538_v52 = vpop.f32.mrb[80].mxu1  ;;  %v6226_v28 = vpop.f32.mrb[108].mxu0 }
 0x501   :  { %v9035_v30 = vadd.f32 %v6538_v52, %v6198_v53  ;;  %v3944_v60 = vpop.f32.mrb[81].mxu1  ;;  %v6227_v7 = vpop.f32.mrb[109].mxu0 }
 0x502   :  { %v9037_v63 = vadd.f32 %v6192_v45, %v3944_v60  ;;  %v6539_v48 = vpop.f32.mrb[82].mxu1  ;;  %v6228_v37 = vadd.f32 %v6227_v7, %v6226_v28  ;;  %v6229_v42 = vpop.f32.mrb[110].mxu0 }
 0x503   :  { %v9039_v11 = vadd.f32 %v6539_v48, %v6201_v8  ;;  %v3947_v9 = vpop.f32.mrb[83].mxu1  ;;  %v6230_v0 = vpop.f32.mrb[111].mxu0 }
 0x504   :  { %v9041_v59 = vadd.f32 %v6195_v47, %v3947_v9  ;;  %v6231_v38 = vadd.f32 %v6230_v0, %v6229_v42 }
 0x508   :  { %v6542_v15 = vpop.f32.mrb[84].mxu1  ;;  %v6232_v5 = vpop.f32.mrb[112].mxu0 }
 0x509   :  { %v9043_v13 = vadd.f32 %v6542_v15, %v6210_v12  ;;  %v3960_v56 = vpop.f32.mrb[85].mxu1  ;;  %v6233_v50 = vpop.f32.mrb[113].mxu0 }
 0x50a   :  { %v9045_v54 = vadd.f32 %v6204_v61, %v3960_v56  ;;  %v6543_v25 = vpop.f32.mrb[86].mxu1  ;;  %v6234_v16 = vadd.f32 %v6233_v50, %v6232_v5  ;;  %v6235_v1 = vpop.f32.mrb[114].mxu0 }
 0x50b   :  { %v9047_v35 = vadd.f32 %v6543_v25, %v6213_v14  ;;  %v3963_v45 = vpop.f32.mrb[87].mxu1  ;;  %v6236_v27 = vpop.f32.mrb[115].mxu0 }
 0x50c   :  { %v9049_v43 = vadd.f32 %v6207_v36, %v3963_v45  ;;  %v6237_v47 = vadd.f32 %v6236_v27, %v6235_v1 }
 0x50d   :  { %v4055_v22 = vmax.f32 %v9037_v63, %v9047_v35 }
 0x510   :  { %v6546_v55 = vpop.f32.mrb[88].mxu1  ;;  %v6238_v53 = vpop.f32.mrb[116].mxu0 }
 0x511   :  { %v9053_v41 = vadd.f32 %v6546_v55, %v6222_v3  ;;  %v3976_v26 = vpop.f32.mrb[89].mxu1  ;;  %v6239_v17 = vpop.f32.mrb[117].mxu0 }
 0x512   :  { %v3977_v40 = vadd.f32 %v6216_v46, %v3976_v26  ;;  %v6547_v44 = vpop.f32.mrb[90].mxu1  ;;  %v6240_v29 = vadd.f32 %v6239_v17, %v6238_v53  ;;  %v6241_v32 = vpop.f32.mrb[118].mxu0 }
 0x513   :  { %v4058_v8 = vmax.f32 %v9039_v11, %v9053_v41  ;;  %v9057_v57 = vadd.f32 %v6547_v44, %v6225_v49  ;;  %v3979_v20 = vpop.f32.mrb[91].mxu1  ;;  %v6242_v19 = vpop.f32.mrb[119].mxu0 }
 0x514   :  { %v4056_v61 = vmax.f32 %v9041_v59, %v3977_v40  ;;  %v3980_v51 = vadd.f32 %v6219_v31, %v3979_v20  ;;  %v6243_v6 = vadd.f32 %v6242_v19, %v6241_v32  ;;  %v9080_v32 = vld [vmem:[%s9526_s4] ss:$0 sm:$0xff]  ;;  %s5837_s4 = sshll.u32 %s6843_s20, 4  ;;  %s5838_s4 = int_to_ptr.vmem [resolvable:$true] %s5837_s4 }
 0x515   :  { %v4059_v36 = vmax.f32 %v9045_v54, %v9057_v57  ;;  %v6712_v54 = vld [vmem:[%s9528_s6 + $0x90] sm:$0xff]   ;;  %v6713_v57 = vld [vmem:[%s9528_s6 + $0x58] sm:$0xff]   ;;  %s6812_s1 = scalar_lea.vmem %s5838_s4, 32  ;;  %p6817_p1 = scmp.lt.s32.totalorder %s5838_s4, %s5838_s4 }
 0x516   :  { %v4057_v24 = vmax.f32 %v9035_v30, %v3980_v51  ;;  %p6813_p0 = scmp.ne.s32.totalorder %s5838_s4, %s6812_s1  ;;  %p6818_p2 = scmp.lt.s32.totalorder %s6812_s1, %s6812_s1 }
 0x518   :  { %v6550_v2 = vpop.f32.mrb[92].mxu1  ;;  %v6244_v12 = vpop.f32.mrb[120].mxu0  ;;  %p6819_p3 = por %p6818_p2, %p6817_p1 }
 0x519   :  { %v4001_v10 = vadd.f32 %v6550_v2, %v6234_v16  ;;  %v3992_v39 = vpop.f32.mrb[93].mxu1  ;;  %v6245_v14 = vpop.f32.mrb[121].mxu0 }
 0x51a   :  { %v9063_v62 = vadd.f32 %v6228_v37, %v3992_v39  ;;  %v6551_v33 = vpop.f32.mrb[94].mxu1  ;;  %v6246_v46 = vadd.f32 %v6245_v14, %v6244_v12  ;;  %v6247_v34 = vpop.f32.mrb[122].mxu0  ;;  %p6820_p4 = pnand %p6819_p3, %p6813_p0 }
 0x51b   :  { %v4004_v23 = vadd.f32 %v6551_v33, %v6237_v47  ;;  %v3995_v18 = vpop.f32.mrb[95].mxu1  ;;  %v6248_v58 = vpop.f32.mrb[123].mxu0 }
 0x51c   :  { %v4060_v31 = vmax.f32 %v9049_v43, %v9063_v62  ;;  %v9067_v3 = vadd.f32 %v6231_v38, %v3995_v18  ;;  %v6249_v21 = vadd.f32 %v6248_v58, %v6247_v34 }
 0x51e   :  { %v4061_v4 = vmax.f32 %v9043_v13, %v9067_v3  ;;  %v6716_v13 = vld [vmem:[%s9528_s6 + $0x98] sm:$0xff]  }
 0x520   :  { %v6554_v49 = vpop.f32.mrb[96].mxu1  ;;  %v6250_v52 = vpop.f32.mrb[124].mxu0 }
 0x521   :  { %v9071_v28 = vadd.f32 %v6554_v49, %v6246_v46  ;;  %v4008_v30 = vpop.f32.mrb[97].mxu1  ;;  %v6251_v60 = vpop.f32.mrb[125].mxu0 }
 0x522   :  { %v4009_v7 = vadd.f32 %v6240_v29, %v4008_v30  ;;  %v6555_v48 = vpop.f32.mrb[98].mxu1  ;;  %v6252_v37 = vadd.f32 %v6251_v60, %v6250_v52  ;;  %v6253_v42 = vpop.f32.mrb[126].mxu0 }
 0x523   :  { %v9073_v9 = vadd.f32 %v6555_v48, %v6249_v21  ;;  %v4011_v0 = vpop.f32.mrb[99].mxu1  ;;  %v6254_v59 = vpop.f32.mrb[127].mxu0  ;;  %v6840_v48 = vmov 1966171168  }
 0x524   :  { %v4012_v38 = vadd.f32 %v6243_v6, %v4011_v0  ;;  %v6255_v15 = vadd.f32 %v6254_v59, %v6253_v42 }
 0x528   :  { %v6558_v5 = vpop.f32.mrb[100].mxu1  ;;  %v6256_v56 = vpop.f32.mrb[128].mxu0 }
 0x529   :  { %v4024_v50 = vpop.f32.mrb[101].mxu1  ;;  %v6257_v25 = vpop.f32.mrb[129].mxu0 }
 0x52a   :  { %v9075_v16 = vadd.f32 %v6252_v37, %v4024_v50  ;;  %v6559_v1 = vpop.f32.mrb[102].mxu1  ;;  %v6258_v45 = vadd.f32 %v6257_v25, %v6256_v56  ;;  %v6259_v27 = vpop.f32.mrb[130].mxu0  ;;  %v4148_v37 = vunpack.c.l.s4 %v6840_v48  ;;  %v6708_v56 = vld [vmem:[%s9528_s6 + $0x88] sm:$0xff]   ;;  %v6709_v50 = vld [vmem:[%s9528_s6 + $0x50] sm:$0xff]  }
 0x52b   :  { %v4027_v47 = vpop.f32.mrb[103].mxu1  ;;  %v6260_v55 = vpop.f32.mrb[131].mxu0  ;;  %6296 = vmatprep.subr.bf16.mxu1 %v6709_v50  ;;  %v6722_v50 = vld [vmem:[%s9528_s6 + $0x28] sm:$0xff]  }
 0x52c   :  { %v4028_v53 = vadd.f32 %v6255_v15, %v4027_v47  ;;  %v4033_v26 = vadd.f32 %v6558_v5, %v6258_v45  ;;  %v6261_v17 = vadd.f32 %v6260_v55, %v6259_v27 }
 0x52e   :  { %v4062_v40 = vmax.f32 %v4001_v10, %v4028_v53  ;;  %v4063_v44 = vmax.f32 %v4004_v23, %v4033_v26  ;;  %v4036_v29 = vadd.f32 %v6559_v1, %v6261_v17  ;;  %v4149_v1 = vunpack.c.0.s8 %v4148_v37  ;;  %v6711_v17 = vld [vmem:[%s9528_s6 + $0xd0] sm:$0xff]  }
 0x530   :  { %v4069_v20 = vmax.f32 %v4055_v22, %v4062_v40  ;;  %v4070_v19 = vmax.f32 %v4056_v61, %v4063_v44  ;;  %v4064_v51 = vmax.f32 %v4009_v7, %v4036_v29  ;;  %v6262_v6 = vpop.f32.mrb[132].mxu0  ;;  %v6562_v2 = vpop.f32.mrb[104].mxu1  ;;  %v6714_v29 = vld [vmem:[%s9528_s6 + $0x18] sm:$0xff]  }
 0x531   :  { %v6263_v12 = vpop.f32.mrb[133].mxu0  ;;  %v4040_v39 = vpop.f32.mrb[105].mxu1 }
 0x532   :  { %v4083_v14 = vadd.f32 %v9080_v32, %v4069_v20  ;;  %v4084_v10 = vadd.f32 %v9080_v32, %v4070_v19  ;;  %v4071_v33 = vmax.f32 %v4057_v24, %v4064_v51  ;;  %v6264_v46 = vadd.f32 %v6263_v12, %v6262_v6  ;;  %v6265_v34 = vpop.f32.mrb[134].mxu0  ;;  %v6563_v23 = vpop.f32.mrb[106].mxu1 }
 0x533   :  { %v6266_v18 = vpop.f32.mrb[135].mxu0  ;;  %v4043_v58 = vpop.f32.mrb[107].mxu1  ;;  %v4150_v24 = vlaneseq }
 0x534   :  { %v4090_v21 = vmax.f32 %v4083_v14, 0.0  ;;  %v4091_v49 = vmax.f32 %v4084_v10, 0.0  ;;  %v4085_v63 = vadd.f32 %v9080_v32, %v4071_v33  ;;  %v4041_v35 = vadd.f32 %v6264_v46, %v4040_v39 }
 0x535   :  { %v6267_v22 = vadd.f32 %v6266_v18, %v6265_v34  ;;  %v4151_v45 = vshrl.u32 %v4150_v24, 7 }
 0x536   :  { %v6122_v61 = vpack.c.bf16 %v4090_v21, %v4090_v21  ;;  %v6123_v52 = vpack.c.bf16 %v4091_v49, %v4091_v49  ;;  %v4092_v30 = vmax.f32 %v4085_v63, 0.0  ;;  %v4065_v60 = vmax.f32 %v4012_v38, %v4041_v35  ;;  %v6707_v38 = vld [vmem:[%s9528_s6 + $0xc8] sm:$0xff]   ;;  %v6715_v49 = vld [vmem:[%s9528_s6 + $0xd8] sm:$0xff]  }
 0x537   :  { %v4044_v7 = vadd.f32 %v6267_v22, %v4043_v58  ;;  %6316 = vmatprep.subr.bf16.mxu0 %v6707_v38  ;;  %v9125_v19 = vsub.s32 %v4149_v1, %v4151_v45 }
 0x538   :  { %4127 = vst.msk [vmem:[#allocation4] sm:$0xf] %vm4126_vm14, %v6122_v61  ;;  %4128 = vst.msk [vmem:[#allocation4 + $0x4] sm:$0xf] %vm4126_vm14, %v6123_v52  ;;  %v6124_v42 = vpack.c.bf16 %v4092_v30, %v4092_v30  ;;  %v4072_v0 = vmax.f32 %v4058_v8, %v4065_v60  ;;  %v6268_v59 = vpop.f32.mrb[136].mxu0  ;;  %6317 = vmatpush3.bf16.msra.mxu0 %v6708_v56  ;;  %v6717_v61 = vld [vmem:[%s9528_s6 + $0x60] sm:$0xff]  }
 0x539   :  { %v4066_v15 = vmax.f32 %v9071_v28, %v4044_v7  ;;  %v6269_v5 = vpop.f32.mrb[137].mxu0  ;;  %v6710_v28 = vld [vmem:[%s9528_s6 + $0x10] sm:$0xff]   ;;  %6318 = vmatprep.subr.bf16.mxu0 %v6711_v17  ;;  %v6718_v60 = vld [vmem:[%s9528_s6 + $0x20] sm:$0xff]  }
 0x53a   :  { %4129 = vst.msk [vmem:[#allocation4 + $0x8] sm:$0xf] %vm4126_vm14, %v6124_v42  ;;  %v4086_v11 = vadd.f32 %v9080_v32, %v4072_v0  ;;  %v6270_v41 = vadd.f32 %v6269_v5, %v6268_v59  ;;  %v6271_v8 = vpop.f32.mrb[138].mxu0  ;;  %6297 = vmatpush3.bf16.msra.mxu1 %v6710_v28  ;;  %v6719_v7 = vld [vmem:[%s9528_s6 + $0xe0] sm:$0xff]   ;;  %v6721_v0 = vld [vmem:[%s9528_s6 + $0x68] sm:$0xff]  }
 0x53b   :  { %v4073_v25 = vmax.f32 %v4059_v36, %v4066_v15  ;;  %v6272_v27 = vpop.f32.mrb[139].mxu0  ;;  %6298 = vmatprep.subr.bf16.mxu1 %v6713_v57 }
 0x53c   :  { %v4093_v47 = vmax.f32 %v4086_v11, 0.0  ;;  %v4049_v55 = vadd.f32 %v6562_v2, %v6270_v41  ;;  %v6273_v53 = vadd.f32 %v6272_v27, %v6271_v8  ;;  %6319 = vmatpush3.bf16.msra.mxu0 %v6712_v54 }
 0x53d   :  { %v4087_v26 = vadd.f32 %v9080_v32, %v4073_v25  ;;  %6320 = vmatprep.subr.bf16.mxu0 %v6715_v49  ;;  %v6730_v49 = vld [vmem:[%s9528_s6 + $0x38] sm:$0xff]  }
 0x53e   :  { %v6125_v36 = vpack.c.bf16 %v4093_v47, %v4093_v47  ;;  %v4067_v40 = vmax.f32 %v9073_v9, %v4049_v55  ;;  %v4052_v44 = vadd.f32 %v6563_v23, %v6273_v53  ;;  %6299 = vmatpush3.bf16.msra.mxu1 %v6714_v29  ;;  %v6723_v47 = vld [vmem:[%s9528_s6 + $0xe8] sm:$0xff]  }
 0x53f   :  { %v4094_v20 = vmax.f32 %v4087_v26, 0.0  ;;  %v5995_v51 = vld.sshfl [vmem:[#allocation4] sm:$0x20 pattern:$0x75316420]  ;;  %6300 = vmatprep.subr.bf16.mxu1 %v6717_v61  ;;  %v6732_v61 = vld [vmem:[%s9528_s6 + $0xb8] sm:$0xff]  }
 0x540   :  { %4130 = vst.msk [vmem:[#allocation4 + $0xc] sm:$0xf] %vm4126_vm14, %v6125_v36  ;;  %v4074_v6 = vmax.f32 %v4060_v31, %v4067_v40  ;;  %v4187_v2 = vcombine.high %v5995_v51, %v5995_v51  ;;  %v5993_v9 = vld.sshfl [vmem:[#allocation4] sm:$0x10 pattern:$0x75316420]  ;;  %v4068_v12 = vmax.f32 %v9075_v16, %v4052_v44  ;;  %6321 = vmatpush3.bf16.msra.mxu0 %v6716_v13 }
 0x541   :  { %v4134_v39 = vld [vmem:[#allocation4] sm:$0x1]  ;;  %v6126_v14 = vpack.c.bf16 %v4094_v20, %v4094_v20  ;;  %v4146_v10 = vcombine.high %v5993_v9, %v5993_v9  ;;  %v5998_v33 = vld.sshfl [vmem:[#allocation4 + $0x4] sm:$0x20 pattern:$0x75316420]  ;;  %6322 = vmatprep.subr.bf16.mxu0 %v6719_v7 }
 0x542   :  { %4136 = vst.msk [vmem:[#allocation5] sm:$0x1] %vm4135_vm15, %v4134_v39  ;;  %v4200_v46 = vld [vmem:[#allocation4 + $0x4] sm:$0x1]  ;;  %v4088_v34 = vadd.f32 %v9080_v32, %v4074_v6  ;;  %v4194_v23 = vrot.slane %v4187_v2, %v9125_v19  ;;  %v4251_v18 = vcombine.high %v5998_v33, %v5998_v33  ;;  %v4075_v62 = vmax.f32 %v4061_v4, %v4068_v12  ;;  %v4264_v31 = vld [vmem:[#allocation4 + $0x8] sm:$0x1] }
 0x543   :  { %v5996_v43 = vld.sshfl [vmem:[#allocation4 + $0x4] sm:$0x10 pattern:$0x75316420]  ;;  %4201 = vst.msk [vmem:[#allocation5 + $0x2] sm:$0x1] %vm4135_vm15, %v4200_v46  ;;  %v4153_v16 = vrot.slane %v4146_v10, %v9125_v19  ;;  %6301 = vmatpush3.bf16.msra.mxu1 %v6718_v60 }
 0x544   :  { %4131 = vst.msk [vmem:[#allocation4 + $0x10] sm:$0xf] %vm4126_vm14, %v6126_v14  ;;  %v4211_v58 = vcombine.high %v5996_v43, %v5996_v43  ;;  %v6001_v21 = vld.sshfl [vmem:[#allocation4 + $0x8] sm:$0x20 pattern:$0x75316420]  ;;  %v4195_v4 = vcombine.high %v4194_v23, %v4194_v23  ;;  %v4258_v63 = vrot.slane %v4251_v18, %v9125_v19  ;;  %v4089_v52 = vadd.f32 %v9080_v32, %v4075_v62 }
 0x545   :  { %4265 = vst.msk [vmem:[#allocation5 + $0x4] sm:$0x1] %vm4135_vm15, %v4264_v31  ;;  %v4095_v3 = vmax.f32 %v4088_v34, 0.0  ;;  %v4315_v35 = vcombine.high %v6001_v21, %v6001_v21  ;;  %4154 = vrot.lane.b32.xlu0 %v4153_v16, %s6837_s0  ;;  %v6720_v32 = vld [vmem:[%s9528_s6 + $0xa0] sm:$0xff]   ;;  %6302 = vmatprep.subr.bf16.mxu1 %v6721_v0  ;;  %v6724_v40 = vld [vmem:[%s9528_s6 + $0xa8] sm:$0xff]   ;;  %v6725_v44 = vld [vmem:[%s9528_s6 + $0x70] sm:$0xff]  }
 0x546   :  { %v5999_v22 = vld.sshfl [vmem:[#allocation4 + $0x8] sm:$0x10 pattern:$0x75316420]  ;;  %4196 = vrot.lane.b32.xlu1 %v4195_v4, %s6837_s0  ;;  %v4218_v37 = vrot.slane %v4211_v58, %v9125_v19  ;;  %v4259_v59 = vcombine.high %v4258_v63, %v4258_v63  ;;  %v4096_v38 = vmax.f32 %v4089_v52, 0.0  ;;  %6323 = vmatpush3.bf16.msra.mxu0 %v6720_v32  ;;  %v6726_v2 = vld [vmem:[%s9528_s6 + $0x30] sm:$0xff]  }
 0x547   :  { %v5994_v30 = vld.sshfl [vmem:[#allocation4] sm:$0x2 pattern:$0x75316420]  ;;  %v6127_v48 = vpack.c.bf16 %v4095_v3, %v4095_v3  ;;  %v4275_v15 = vcombine.high %v5999_v22, %v5999_v22  ;;  %v4322_v11 = vrot.slane %v4315_v35, %v9125_v19  ;;  %v4328_v25 = vld [vmem:[#allocation4 + $0xc] sm:$0x1]  ;;  %6303 = vmatpush3.bf16.msra.mxu1 %v6722_v50  ;;  %6324 = vmatprep.subr.bf16.mxu0 %v6723_v47 }
 0x548   :  { %v4174_v24 = vrot.slane %v5994_v30, %v9125_v19  ;;  %v5997_v42 = vld.sshfl [vmem:[#allocation4 + $0x4] sm:$0x2 pattern:$0x75316420]  ;;  %v6128_v1 = vpack.c.bf16 %v4096_v38, %v4096_v38  ;;  %4329 = vst.msk [vmem:[#allocation5 + $0x6] sm:$0x1] %vm4135_vm15, %v4328_v25  ;;  %6304 = vmatprep.subr.bf16.mxu1 %v6725_v44 }
 0x549   :  { %v6004_v5 = vld.sshfl [vmem:[#allocation4 + $0xc] sm:$0x20 pattern:$0x75316420]  ;;  %v4238_v56 = vrot.slane %v5997_v42, %v9125_v19  ;;  %4132 = vst.msk [vmem:[#allocation4 + $0x14] sm:$0xf] %vm4126_vm14, %v6127_v48  ;;  %4219 = vrot.lane.b32.xlu0 %v4218_v37, %s6837_s0  ;;  %v4282_v17 = vrot.slane %v4275_v15, %v9125_v19  ;;  %v4323_v29 = vcombine.high %v4322_v11, %v4322_v11 }
 0x54a   :  { %v4379_v41 = vcombine.high %v6004_v5, %v6004_v5  ;;  %v6002_v8 = vld.sshfl [vmem:[#allocation4 + $0xc] sm:$0x10 pattern:$0x75316420]  ;;  %v4175_v28 = vcombine.high %v4174_v24, %v4174_v24  ;;  %4260 = vrot.lane.b32.xlu1 %v4259_v59, %s6837_s0  ;;  %4133 = vst.msk [vmem:[#allocation4 + $0x18] sm:$0xf] %vm4126_vm14, %v6128_v1  ;;  %6325 = vmatpush3.bf16.msra.mxu0 %v6724_v40 }
 0x54b   :  { %v4239_v45 = vcombine.high %v4238_v56, %v4238_v56  ;;  %v6000_v27 = vld.sshfl [vmem:[#allocation4 + $0x8] sm:$0x2 pattern:$0x75316420]  ;;  %v4392_v26 = vld [vmem:[#allocation4 + $0x10] sm:$0x1]  ;;  %v4339_v57 = vcombine.high %v6002_v8, %v6002_v8  ;;  %6305 = vmatpush3.bf16.msra.mxu1 %v6726_v2 }
 0x54c   :  { %v6007_v55 = vld.sshfl [vmem:[#allocation4 + $0x10] sm:$0x20 pattern:$0x75316420]  ;;  %4177 = vst.msk [vmem:[#allocation5 + $0x1] sm:$0x1] %vm4135_vm15, %v4175_v28  ;;  %v4302_v53 = vrot.slane %v6000_v27, %v9125_v19  ;;  %v4386_v54 = vrot.slane %v4379_v41, %v9125_v19 }
 0x54d   :  { %v6005_v36 = vld.sshfl [vmem:[#allocation4 + $0x10] sm:$0x10 pattern:$0x75316420]  ;;  %4241 = vst.msk [vmem:[#allocation5 + $0x3] sm:$0x1] %vm4135_vm15, %v4239_v45  ;;  %v4443_v20 = vcombine.high %v6007_v55, %v6007_v55  ;;  %4283 = vrot.lane.b32.xlu0 %v4282_v17, %s6837_s0  ;;  %v4346_v34 = vrot.slane %v4339_v57, %v9125_v19 }
 0x54e   :  { %4393 = vst.msk [vmem:[#allocation5 + $0x8] sm:$0x1] %vm4135_vm15, %v4392_v26  ;;  %v4303_v51 = vcombine.high %v4302_v53, %v4302_v53  ;;  %v6003_v6 = vld.sshfl [vmem:[#allocation4 + $0xc] sm:$0x2 pattern:$0x75316420]  ;;  %4324 = vrot.lane.b32.xlu1 %v4323_v29, %s6837_s0  ;;  %v4387_v46 = vcombine.high %v4386_v54, %v4386_v54  ;;  %v4403_v23 = vcombine.high %v6005_v36, %v6005_v36 }
 0x54f   :  { %v4366_v9 = vrot.slane %v6003_v6, %v9125_v19  ;;  %v6006_v12 = vld.sshfl [vmem:[#allocation4 + $0x10] sm:$0x2 pattern:$0x75316420]  ;;  %v6727_v39 = vld [vmem:[%s9528_s6 + $0xf0] sm:$0xff]   ;;  %v6729_v33 = vld [vmem:[%s9528_s6 + $0x78] sm:$0xff]   ;;  %v4450_v31 = vrot.slane %v4443_v20, %v9125_v19 }
 0x550   :  { %4305 = vst.msk [vmem:[#allocation5 + $0x5] sm:$0x1] %vm4135_vm15, %v4303_v51  ;;  %v4430_v14 = vrot.slane %v6006_v12, %v9125_v19  ;;  %v6728_v10 = vld [vmem:[%s9528_s6 + $0xb0] sm:$0xff]   ;;  %v4456_v62 = vld [vmem:[#allocation4 + $0x14] sm:$0x1]  ;;  %6326 = vmatprep.subr.bf16.mxu0 %v6727_v39  ;;  %v6731_v13 = vld [vmem:[%s9528_s6 + $0xf8] sm:$0xff]   ;;  %6306 = vmatprep.subr.bf16.mxu1 %v6729_v33  ;;  %v4410_v35 = vrot.slane %v4403_v23, %v9125_v19 }
 0x551   :  { %v6010_v18 = vld.sshfl [vmem:[#allocation4 + $0x14] sm:$0x20 pattern:$0x75316420]  ;;  %v4367_v43 = vcombine.high %v4366_v9, %v4366_v9  ;;  %4457 = vst.msk [vmem:[#allocation5 + $0xa] sm:$0x1] %vm4135_vm15, %v4456_v62  ;;  %4347 = vrot.lane.b32.xlu0 %v4346_v34, %s6837_s0  ;;  %6327 = vmatpush3.bf16.msra.mxu0 %v6728_v10  ;;  %v4451_v30 = vcombine.high %v4450_v31, %v4450_v31 }
 0x552   :  { %v4507_v16 = vcombine.high %v6010_v18, %v6010_v18  ;;  %v6008_v58 = vld.sshfl [vmem:[#allocation4 + $0x14] sm:$0x10 pattern:$0x75316420]  ;;  %v4431_v21 = vcombine.high %v4430_v14, %v4430_v14  ;;  %4388 = vrot.lane.b32.xlu1 %v4387_v46, %s6837_s0  ;;  %v4520_v63 = vld [vmem:[#allocation4 + $0x18] sm:$0x1]  ;;  %6307 = vmatpush3.bf16.msra.mxu1 %v6730_v49 }
 0x553   :  { %4369 = vst.msk [vmem:[#allocation5 + $0x7] sm:$0x1] %vm4135_vm15, %v4367_v43  ;;  %v6009_v3 = vld.sshfl [vmem:[#allocation4 + $0x14] sm:$0x2 pattern:$0x75316420]  ;;  %v4467_v22 = vcombine.high %v6008_v58, %v6008_v58  ;;  %6328 = vmatprep.subr.bf16.mxu0 %v6731_v13 }
 0x554   :  { %4433 = vst.msk [vmem:[#allocation5 + $0x9] sm:$0x1] %vm4135_vm15, %v4431_v21  ;;  %v4494_v4 = vrot.slane %v6009_v3, %v9125_v19  ;;  %v6733_v52 = vld [vmem:[%s9528_s6 + $0x140] sm:$0xff]   ;;  %4521 = vst.msk [vmem:[#allocation5 + $0xc] sm:$0x1] %vm4135_vm15, %v4520_v63  ;;  %v4514_v60 = vrot.slane %v4507_v16, %v9125_v19  ;;  %v6737_v17 = vld [vmem:[%s9528_s6 + $0x148] sm:$0xff]  }
 0x555   :  { %4411 = vrot.lane.b32.xlu0 %v4410_v35, %s6837_s0  ;;  %6336 = vmatprep.subr.bf16.mxu1 %v6733_v52  ;;  %v6735_v48 = vld [vmem:[%s9528_s6 + $0x1c0] sm:$0xff]   ;;  %v4474_v37 = vrot.slane %v4467_v22, %v9125_v19  ;;  %v6739_v44 = vld [vmem:[%s9528_s6 + $0x1c8] sm:$0xff]   ;;  %v6741_v51 = vld [vmem:[%s9528_s6 + $0x150] sm:$0xff]  }
 0x556   :  { %v4495_v7 = vcombine.high %v4494_v4, %v4494_v4  ;;  %4452 = vrot.lane.b32.xlu1 %v4451_v30, %s6837_s0  ;;  %6329 = vmatpush3.bf16.msra.mxu0 %v6732_v61  ;;  %v4515_v24 = vcombine.high %v4514_v60, %v4514_v60  ;;  %v6734_v53 = vld [vmem:[%s9528_s6 + $0x100] sm:$0xff]   ;;  %v6738_v29 = vld [vmem:[%s9528_s6 + $0x108] sm:$0xff]   ;;  %v6743_v2 = vld [vmem:[%s9528_s6 + $0x1d0] sm:$0xff]  }
 0x557   :  { %6358 = vmatprep.subr.bf16.mxu0 %v6735_v48  ;;  %v6736_v57 = vld [vmem:[%s9528_s6 + $0x180] sm:$0xff]   ;;  %v6740_v6 = vld [vmem:[%s9528_s6 + $0x188] sm:$0xff]   ;;  %v6742_v9 = vld [vmem:[%s9528_s6 + $0x110] sm:$0xff]  }
 0x558   :  { %4497 = vst.msk [vmem:[#allocation5 + $0xb] sm:$0x1] %vm4135_vm15, %v4495_v7  ;;  %v6745_v12 = vld [vmem:[%s9528_s6 + $0x158] sm:$0xff]   ;;  %v6744_v39 = vld [vmem:[%s9528_s6 + $0x190] sm:$0xff]   ;;  %v6749_v33 = vld [vmem:[%s9528_s6 + $0x160] sm:$0xff]  }
 0x559   :  { %4475 = vrot.lane.b32.xlu0 %v4474_v37, %s6837_s0  ;;  %v6747_v14 = vld [vmem:[%s9528_s6 + $0x1d8] sm:$0xff]   ;;  %v6751_v34 = vld [vmem:[%s9528_s6 + $0x1e0] sm:$0xff]   ;;  %v6753_v18 = vld [vmem:[%s9528_s6 + $0x168] sm:$0xff]  }
 0x55a   :  { %4516 = vrot.lane.b32.xlu1 %v4515_v24, %s6837_s0  ;;  %v6746_v10 = vld [vmem:[%s9528_s6 + $0x118] sm:$0xff]   ;;  %v6750_v23 = vld [vmem:[%s9528_s6 + $0x120] sm:$0xff]   ;;  %v6755_v62 = vld [vmem:[%s9528_s6 + $0x1e8] sm:$0xff]  }
 0x55b   :  { %v6748_v46 = vld [vmem:[%s9528_s6 + $0x198] sm:$0xff]   ;;  %v6752_v43 = vld [vmem:[%s9528_s6 + $0x1a0] sm:$0xff]   ;;  %v6754_v31 = vld [vmem:[%s9528_s6 + $0x128] sm:$0xff]  }
 0x55c   :  { %v6757_v16 = vld [vmem:[%s9528_s6 + $0x170] sm:$0xff]   ;;  %v6756_v21 = vld [vmem:[%s9528_s6 + $0x1a8] sm:$0xff]   ;;  %v6761_v4 = vld [vmem:[%s9528_s6 + $0x178] sm:$0xff]  }
 0x55d   :  { %v6759_v49 = vld [vmem:[%s9528_s6 + $0x1f0] sm:$0xff]   ;;  %v6763_v35 = vld [vmem:[%s9528_s6 + $0x1f8] sm:$0xff]   ;;  %v6766_v52 = vld [vmem:[%s9528_s6 + $0x240] sm:$0xff]  }
 0x55e   :  { %v6758_v13 = vld [vmem:[%s9528_s6 + $0x130] sm:$0xff]   ;;  %v6762_v22 = vld [vmem:[%s9528_s6 + $0x138] sm:$0xff]   ;;  %v6769_v7 = vld [vmem:[%s9528_s6 + $0x2c0] sm:$0xff]  }
 0x55f   :  { %v6760_v63 = vld [vmem:[%s9528_s6 + $0x1b0] sm:$0xff]   ;;  %v6765_v30 = vld [vmem:[%s9528_s6 + $0x1b8] sm:$0xff]   ;;  %v6767_v48 = vld [vmem:[%s9528_s6 + $0x200] sm:$0xff]  }
 0x560   :  { %v6771_v24 = vld [vmem:[%s9528_s6 + $0x248] sm:$0xff]  }
 0x5b7   :  { %v4155_v42 = vpop.permute.xlu0 %4154 }
 0x5b8   :  { %v4197_v32 = vpop.permute.xlu1 %4196  ;;  %4158 = vst.msk [vmem:[#allocation5] sm:$0x1] %vm4157_vm0, %v4155_v42  ;;  %v6770_v42 = vld [vmem:[%s9528_s6 + $0x280] sm:$0xff]  }
 0x5b9   :  { %4199 = vst.msk [vmem:[#allocation5 + $0x1] sm:$0x1] %vm4157_vm0, %v4197_v32 }
 0x5bb   :  { %v4220_v0 = vpop.permute.xlu0 %4219 }
 0x5bc   :  { %v4261_v59 = vpop.permute.xlu1 %4260  ;;  %4222 = vst.msk [vmem:[#allocation5 + $0x2] sm:$0x1] %vm4157_vm0, %v4220_v0  ;;  %v6773_v0 = vld [vmem:[%s9528_s6 + $0x2c8] sm:$0xff]  }
 0x5bd   :  { %4263 = vst.msk [vmem:[#allocation5 + $0x3] sm:$0x1] %vm4157_vm0, %v4261_v59 }
 0x5bf   :  { %v4284_v15 = vpop.permute.xlu0 %4283 }
 0x5c0   :  { %v4325_v5 = vpop.permute.xlu1 %4324  ;;  %4286 = vst.msk [vmem:[#allocation5 + $0x4] sm:$0x1] %vm4157_vm0, %v4284_v15  ;;  %v6772_v15 = vld [vmem:[%s9528_s6 + $0x208] sm:$0xff]  }
 0x5c1   :  { %4327 = vst.msk [vmem:[#allocation5 + $0x5] sm:$0x1] %vm4157_vm0, %v4325_v5  ;;  %v6775_v5 = vld [vmem:[%s9528_s6 + $0x250] sm:$0xff]  }
 0x5c3   :  { %v4348_v38 = vpop.permute.xlu0 %4347 }
 0x5c4   :  { %v4389_v56 = vpop.permute.xlu1 %4388  ;;  %4350 = vst.msk [vmem:[#allocation5 + $0x6] sm:$0x1] %vm4157_vm0, %v4348_v38  ;;  %v6774_v38 = vld [vmem:[%s9528_s6 + $0x288] sm:$0xff]  }
 0x5c5   :  { %4391 = vst.msk [vmem:[#allocation5 + $0x7] sm:$0x1] %vm4157_vm0, %v4389_v56  ;;  %v6777_v56 = vld [vmem:[%s9528_s6 + $0x2d0] sm:$0xff]  }
 0x5c7   :  { %v4412_v50 = vpop.permute.xlu0 %4411 }
 0x5c8   :  { %v4453_v11 = vpop.permute.xlu1 %4452  ;;  %4414 = vst.msk [vmem:[#allocation5 + $0x8] sm:$0x1] %vm4157_vm0, %v4412_v50  ;;  %v6776_v50 = vld [vmem:[%s9528_s6 + $0x210] sm:$0xff]  }
 0x5c9   :  { %4455 = vst.msk [vmem:[#allocation5 + $0x9] sm:$0x1] %vm4157_vm0, %v4453_v11  ;;  %v6779_v11 = vld [vmem:[%s9528_s6 + $0x258] sm:$0xff]  }
 0x5cb   :  { %v4476_v41 = vpop.permute.xlu0 %4475 }
 0x5cc   :  { %v4517_v8 = vpop.permute.xlu1 %4516  ;;  %4478 = vst.msk [vmem:[#allocation5 + $0xa] sm:$0x1] %vm4157_vm0, %v4476_v41  ;;  %v4522_v28 = vld [vmem:[#allocation5] sm:$0xff] }
 0x5cd   :  { %4519 = vst.msk [vmem:[#allocation5 + $0xb] sm:$0x1] %vm4157_vm0, %v4517_v8  ;;  %v4740_v25 = vrot.slane %v4522_v28, %v9125_v19  ;;  %v4733_v1 = vcombine.high %v4522_v28, %v4522_v28  ;;  %v6778_v41 = vld [vmem:[%s9528_s6 + $0x290] sm:$0xff]   ;;  %v6781_v8 = vld [vmem:[%s9528_s6 + $0x2d8] sm:$0xff]  }
 0x5ce   :  { %v6780_v28 = vld [vmem:[%s9528_s6 + $0x218] sm:$0xff]  }
 0x5cf   :  { %v4748_v45 = vcombine.high %v4740_v25, %v4740_v25  ;;  %v9257_v27 = vrot.slane %v4733_v1, %v9125_v19  ;;  %v4756_v47 = vrot.slane %v4740_v25, %v9125_v19  ;;  %v6783_v25 = vld [vmem:[%s9528_s6 + $0x260] sm:$0xff]   ;;  %v6782_v1 = vld [vmem:[%s9528_s6 + $0x298] sm:$0xff]  }
 0x5d1   :  { %v4770_v55 = vrot.slane %v4748_v45, %v9125_v19  ;;  %v4749_v26 = vcombine.high %v9257_v27, %v9257_v27  ;;  %v4778_v40 = vcombine.high %v4756_v47, %v4756_v47  ;;  %v4763_v60 = vrot.slane %v9257_v27, %v9125_v19  ;;  %v6785_v45 = vld [vmem:[%s9528_s6 + $0x2e0] sm:$0xff]  }
 0x5d2   :  { %v6784_v27 = vld [vmem:[%s9528_s6 + $0x220] sm:$0xff]  }
 0x5d3   :  { %5468 = vmatprep.mubr.bf16.mxu1 %v4770_v55  ;;  %v4780_v54 = vcombine.high %v4770_v55, %v4770_v55  ;;  %v4777_v36 = vrot.slane %v4749_v26, %v9125_v19  ;;  %v4779_v32 = vcombine.high %v4763_v60, %v4763_v60  ;;  %v6786_v55 = vld [vmem:[%s9528_s6 + $0x2a0] sm:$0xff]   ;;  %v6788_v26 = vld [vmem:[%s9528_s6 + $0x228] sm:$0xff]  }
 0x5d4   :  { %5469 = vmatmul.mubr.bf16.vlgmr.msra.gmra.mrb[108].mxu1 %v4756_v47  ;;  %v9330_v58 = vld [vmem:[#allocation5 + $0x8] sm:$0x1f]  ;;  %v6787_v47 = vld [vmem:[%s9528_s6 + $0x268] sm:$0xff]  }
 0x5d5   :  { %6337 = vmatpush3.bf16.msra.mxu1 %v6734_v53  ;;  %5508 = vmatprep.mubr.bf16.mxu0 %v4780_v54  ;;  %v4781_v20 = vcombine.high %v4777_v36, %v4777_v36  ;;  %v9343_v3 = vrot.slane %v9330_v58, %v9125_v19  ;;  %v6789_v53 = vld [vmem:[%s9528_s6 + $0x2e8] sm:$0xff]  }
 0x5d6   :  { %5509 = vmatmul.mubr.bf16.vlgmr.msra.gmra.mrb[140].mxu0 %v4778_v40  ;;  %6338 = vmatprep.subr.bf16.mxu1 %v6737_v17  ;;  %v6791_v17 = vld [vmem:[%s9528_s6 + $0x270] sm:$0xff]   ;;  %v6790_v54 = vld [vmem:[%s9528_s6 + $0x2a8] sm:$0xff]   ;;  %v6795_v40 = vld [vmem:[%s9528_s6 + $0x278] sm:$0xff]  }
 0x5d7   :  { %6359 = vmatpush3.bf16.msra.mxu0 %v6736_v57  ;;  %5548 = vmatprep.mubr.bf16.mxu1 %v4777_v36  ;;  %v4797_v61 = vcombine.high %v9343_v3, %v9343_v3  ;;  %v6793_v57 = vld [vmem:[%s9528_s6 + $0x2f0] sm:$0xff]  }
 0x5d8   :  { %6360 = vmatprep.subr.bf16.mxu0 %v6739_v44  ;;  %5588 = vmatprep.mubr.bf16.mxu0 %v4781_v20  ;;  %v6792_v36 = vld [vmem:[%s9528_s6 + $0x230] sm:$0xff]   ;;  %v6796_v20 = vld [vmem:[%s9528_s6 + $0x238] sm:$0xff]  }
 0x5d9   :  { %6339 = vmatpush3.bf16.msra.mxu1 %v6738_v29  ;;  %v4818_v37 = vrot.slane %v4797_v61, %v9125_v19  ;;  %v6794_v44 = vld [vmem:[%s9528_s6 + $0x2b0] sm:$0xff]   ;;  %v6797_v29 = vld [vmem:[%s9528_s6 + $0x2f8] sm:$0xff]  }
 0x5da   :  { %6340 = vmatprep.subr.bf16.mxu1 %v6741_v51  ;;  %v6798_v51 = vld [vmem:[%s9528_s6 + $0x2b8] sm:$0xff]  }
 0x5db   :  { %6361 = vmatpush3.bf16.msra.mxu0 %v6740_v6  ;;  %v4820_v59 = vcombine.high %v4818_v37, %v4818_v37  ;;  %v4804_v6 = vrot.slane %v9343_v3, %v9125_v19 }
 0x5dc   :  { %6362 = vmatprep.subr.bf16.mxu0 %v6743_v2  ;;  %v6799_v2 = vld [vmem:[%s9528_s6 + $0x300] sm:$0xff]  }
 0x5dd   :  { %6341 = vmatpush3.bf16.msra.mxu1 %v6742_v9  ;;  %v6841_v9 = vmov 0.0  }
 0x5de   :  { %6342 = vmatprep.subr.bf16.mxu1 %v6745_v12  ;;  %v4819_v12 = vcombine.high %v4804_v6, %v4804_v6 }
 0x5df   :  { %6363 = vmatpush3.bf16.msra.mxu0 %v6744_v39  ;;  %v6800_v39 = vld [vmem:[%s9528_s6 + $0x308] sm:$0xff]  }
 0x5e0   :  { %6364 = vmatprep.subr.bf16.mxu0 %v6747_v14  ;;  %v6801_v14 = vld [vmem:[%s9528_s6 + $0x310] sm:$0xff]  }
 0x5e1   :  { %6343 = vmatpush3.bf16.msra.mxu1 %v6746_v10  ;;  %v4782_v10 = vcombine.high %v9330_v58, %v9330_v58  ;;  %v6810_v58 = vld [vmem:[%s9530_s8 + $0x38] sm:$0xff]  }
 0x5e2   :  { %6344 = vmatprep.subr.bf16.mxu1 %v6749_v33  ;;  %v6802_v33 = vld [vmem:[%s9528_s6 + $0x318] sm:$0xff]  }
 0x5e3   :  { %6365 = vmatpush3.bf16.msra.mxu0 %v6748_v46  ;;  %v4796_v46 = vrot.slane %v4782_v10, %v9125_v19 }
 0x5e4   :  { %6366 = vmatprep.subr.bf16.mxu0 %v6751_v34 }
 0x5e5   :  { %6345 = vmatpush3.bf16.msra.mxu1 %v6750_v23  ;;  %v4811_v34 = vrot.slane %v4796_v46, %v9125_v19  ;;  %v6803_v23 = vld [vmem:[%s9530_s8] sm:$0xff]   ;;  %v6806_v19 = vld [vmem:[%s9530_s8 + $0x18] sm:$0xff]  }
 0x5e6   :  { %6346 = vmatprep.subr.bf16.mxu1 %v6753_v18  ;;  %v6804_v18 = vld [vmem:[%s9530_s8 + $0x8] sm:$0xff]  }
 0x5e7   :  { %6367 = vmatpush3.bf16.msra.mxu0 %v6752_v43  ;;  %v6805_v43 = vld [vmem:[%s9530_s8 + $0x10] sm:$0xff]  }
 0x5e8   :  { %6368 = vmatprep.subr.bf16.mxu0 %v6755_v62  ;;  %v6807_v62 = vld [vmem:[%s9530_s8 + $0x20] sm:$0xff]  }
 0x5e9   :  { %6347 = vmatpush3.bf16.msra.mxu1 %v6754_v31  ;;  %v6808_v31 = vld [vmem:[%s9530_s8 + $0x28] sm:$0xff]  }
 0x5ea   :  { %6348 = vmatprep.subr.bf16.mxu1 %v6757_v16  ;;  %v6809_v16 = vld [vmem:[%s9530_s8 + $0x30] sm:$0xff]  }
 0x5eb   :  { %6369 = vmatpush3.bf16.msra.mxu0 %v6756_v21 }
 0x5ec   :  { %6370 = vmatprep.subr.bf16.mxu0 %v6759_v49  ;;  %v6011_v49 = vld [vmem:[%s9529_s7] ss:$0 sm:$0xff] }
 0x5ed   :  { %6349 = vmatpush3.bf16.msra.mxu1 %v6758_v13 }
 0x5ee   :  { %6350 = vmatprep.subr.bf16.mxu1 %v6761_v4 }
 0x5ef   :  { %6371 = vmatpush3.bf16.msra.mxu0 %v6760_v63 }
 0x5f0   :  { %6372 = vmatprep.subr.bf16.mxu0 %v6763_v35 }
 0x5f1   :  { %6351 = vmatpush3.bf16.msra.mxu1 %v6762_v22 }
 0x5f2   :  { %6380 = vmatprep.subr.bf16.mxu1 %v6766_v52 }
 0x5f3   :  { %6373 = vmatpush3.bf16.msra.mxu0 %v6765_v30 }
 0x5f4   :  { %5549 = vmatmul.mubr.bf16.vlgmr.msra.gmra.mrb[112].mxu1 %v4763_v60  ;;  %6402 = vmatprep.subr.bf16.mxu0 %v6769_v7 }
 0x5f5   :  { %6381 = vmatpush3.bf16.msra.mxu1 %v6767_v48  ;;  %5628 = vmatprep.mubr.bf16.mxu1 %v4818_v37 }
 0x5f6   :  { %5589 = vmatmul.mubr.bf16.vlgmr.msra.gmra.mrb[144].mxu0 %v4779_v32  ;;  %6382 = vmatprep.subr.bf16.mxu1 %v6771_v24 }
 0x5f7   :  { %6403 = vmatpush3.bf16.msra.mxu0 %v6770_v42  ;;  %5668 = vmatprep.mubr.bf16.mxu0 %v4820_v59 }
 0x5f8   :  { %6404 = vmatprep.subr.bf16.mxu0 %v6773_v0 }
 0x5f9   :  { %6383 = vmatpush3.bf16.msra.mxu1 %v6772_v15 }
 0x5fa   :  { %6384 = vmatprep.subr.bf16.mxu1 %v6775_v5 }
 0x5fb   :  { %6405 = vmatpush3.bf16.msra.mxu0 %v6774_v38 }
 0x5fc   :  { %6406 = vmatprep.subr.bf16.mxu0 %v6777_v56 }
 0x5fd   :  { %6385 = vmatpush3.bf16.msra.mxu1 %v6776_v50 }
 0x5fe   :  { %6386 = vmatprep.subr.bf16.mxu1 %v6779_v11 }
 0x5ff   :  { %6407 = vmatpush3.bf16.msra.mxu0 %v6778_v41 }
 0x600   :  { %6408 = vmatprep.subr.bf16.mxu0 %v6781_v8 }
 0x601   :  { %6387 = vmatpush3.bf16.msra.mxu1 %v6780_v28 }
 0x602   :  { %6388 = vmatprep.subr.bf16.mxu1 %v6783_v25 }
 0x603   :  { %6409 = vmatpush3.bf16.msra.mxu0 %v6782_v1 }
 0x604   :  { %6410 = vmatprep.subr.bf16.mxu0 %v6785_v45 }
 0x605   :  { %6389 = vmatpush3.bf16.msra.mxu1 %v6784_v27 }
 0x606   :  { %6390 = vmatprep.subr.bf16.mxu1 %v6787_v47 }
 0x607   :  { %6411 = vmatpush3.bf16.msra.mxu0 %v6786_v55 }
 0x608   :  { %6412 = vmatprep.subr.bf16.mxu0 %v6789_v53 }
 0x609   :  { %6391 = vmatpush3.bf16.msra.mxu1 %v6788_v26 }
 0x60a   :  { %6392 = vmatprep.subr.bf16.mxu1 %v6791_v17 }
 0x60b   :  { %6413 = vmatpush3.bf16.msra.mxu0 %v6790_v54 }
 0x60c   :  { %6414 = vmatprep.subr.bf16.mxu0 %v6793_v57 }
 0x60d   :  { %6393 = vmatpush3.bf16.msra.mxu1 %v6792_v36 }
 0x60e   :  { %6394 = vmatprep.subr.bf16.mxu1 %v6795_v40 }
 0x60f   :  { %6415 = vmatpush3.bf16.msra.mxu0 %v6794_v44 }
 0x610   :  { %6416 = vmatprep.subr.bf16.mxu0 %v6797_v29 }
 0x611   :  { %6395 = vmatpush3.bf16.msra.mxu1 %v6796_v20  ;;  %v6113_v20 = vld [vmem:[%s9531_s9] ss:$0 sm:$0xff] }
 0x612   :  { %6564 = vmatprep.subr.bf16.mxu1 %v6841_v9 }
 0x613   :  { %6417 = vmatpush3.bf16.msra.mxu0 %v6798_v51 }
 0x614   :  { %5629 = vmatmul.mubr.bf16.vlgmr.msra.gmra.mrb[116].mxu1 %v4804_v6  ;;  %6576 = vmatprep.subr.bf16.mxu0 %v6841_v9 }
 0x615   :  { %6565 = vmatpush3.bf16.msra.mxu1 %v6799_v2  ;;  %6572 = vmatprep.mubr.msk.bf16.mxu1 %vm6842_vm1, %v6841_v9 }
 0x616   :  { %5669 = vmatmul.mubr.bf16.vlgmr.msra.gmra.mrb[148].mxu0 %v4819_v12  ;;  %6566 = vmatprep.subr.bf16.mxu1 %v6841_v9 }
 0x617   :  { %6592 = vmatprep.mubr.msk.bf16.mxu0 %vm6842_vm1, %v6841_v9  ;;  %6577 = vmatpush3.bf16.msra.mxu0 %v6803_v23 }
 0x618   :  { %6578 = vmatprep.subr.bf16.mxu0 %v6841_v9 }
 0x619   :  { %6567 = vmatpush3.bf16.msra.mxu1 %v6800_v39 }
 0x61a   :  { %6568 = vmatprep.subr.bf16.mxu1 %v6841_v9 }
 0x61b   :  { %6579 = vmatpush3.bf16.msra.mxu0 %v6804_v18 }
 0x61c   :  { %6580 = vmatprep.subr.bf16.mxu0 %v6841_v9 }
 0x61d   :  { %6569 = vmatpush3.bf16.msra.mxu1 %v6801_v14 }
 0x61e   :  { %6570 = vmatprep.subr.bf16.mxu1 %v6841_v9 }
 0x61f   :  { %6581 = vmatpush3.bf16.msra.mxu0 %v6805_v43 }
 0x620   :  { %6582 = vmatprep.subr.bf16.mxu0 %v6841_v9 }
 0x621   :  { %6571 = vmatpush3.bf16.msra.mxu1 %v6802_v33 }
 0x623   :  { %6583 = vmatpush3.bf16.msra.mxu0 %v6806_v19 }
 0x624   :  { %6573 = vmatmul.mubr.msk.bf16.vlgmr.msra.gmra.mrb[120].mxu1 %vm3722_vm13, %v4811_v34  ;;  %6584 = vmatprep.subr.bf16.mxu0 %v6841_v9 }
 0x627   :  { %6585 = vmatpush3.bf16.msra.mxu0 %v6807_v62 }
 0x628   :  { %6586 = vmatprep.subr.bf16.mxu0 %v6841_v9 }
 0x62b   :  { %6587 = vmatpush3.bf16.msra.mxu0 %v6808_v31 }
 0x62c   :  { %6588 = vmatprep.subr.bf16.mxu0 %v6841_v9 }
 0x62f   :  { %6589 = vmatpush3.bf16.msra.mxu0 %v6809_v16 }
 0x630   :  { %6590 = vmatprep.subr.bf16.mxu0 %v6841_v9 }
 0x633   :  { %6591 = vmatpush3.bf16.msra.mxu0 %v6810_v58 }
 0x6a7   :  { %v6308_v21 = vpop.f32.mrb[108].mxu1 }
 0x6a8   :  { %v6309_v13 = vpop.f32.mrb[109].mxu1 }
 0x6a9   :  { %v6310_v3 = vadd.f32 %v6309_v13, %v6308_v21  ;;  %v6311_v4 = vpop.f32.mrb[110].mxu1  ;;  %v6330_v63 = vpop.f32.mrb[140].mxu0 }
 0x6aa   :  { %v6312_v35 = vpop.f32.mrb[111].mxu1  ;;  %v6331_v22 = vpop.f32.mrb[141].mxu0 }
 0x6ab   :  { %v5471_v61 = vadd.f32 %v6310_v3, %v6011_v49  ;;  %v6332_v52 = vadd.f32 %v6331_v22, %v6330_v63  ;;  %v6333_v30 = vpop.f32.mrb[142].mxu0 }
 0x6ac   :  { %v6334_v60 = vpop.f32.mrb[143].mxu0 }
 0x6ad   :  { %v5511_v7 = vadd.f32 %v6332_v52, %v5471_v61 }
 0x6c7   :  { %v6352_v48 = vpop.f32.mrb[112].mxu1 }
 0x6c8   :  { %v6353_v37 = vpop.f32.mrb[113].mxu1 }
 0x6c9   :  { %v6354_v24 = vadd.f32 %v6353_v37, %v6352_v48  ;;  %v6355_v42 = vpop.f32.mrb[114].mxu1  ;;  %v6374_v32 = vpop.f32.mrb[144].mxu0 }
 0x6ca   :  { %v6356_v0 = vpop.f32.mrb[115].mxu1  ;;  %v6375_v59 = vpop.f32.mrb[145].mxu0 }
 0x6cb   :  { %v5551_v15 = vadd.f32 %v6354_v24, %v5511_v7  ;;  %v6376_v5 = vadd.f32 %v6375_v59, %v6374_v32  ;;  %v6377_v38 = vpop.f32.mrb[146].mxu0 }
 0x6cc   :  { %v6378_v56 = vpop.f32.mrb[147].mxu0 }
 0x6cd   :  { %v5591_v50 = vadd.f32 %v6376_v5, %v5551_v15 }
 0x6e7   :  { %v6396_v11 = vpop.f32.mrb[116].mxu1 }
 0x6e8   :  { %v6397_v41 = vpop.f32.mrb[117].mxu1 }
 0x6e9   :  { %v6398_v8 = vadd.f32 %v6397_v41, %v6396_v11  ;;  %v6399_v28 = vpop.f32.mrb[118].mxu1  ;;  %v6418_v25 = vpop.f32.mrb[148].mxu0 }
 0x6ea   :  { %v6400_v1 = vpop.f32.mrb[119].mxu1  ;;  %v6419_v45 = vpop.f32.mrb[149].mxu0 }
 0x6eb   :  { %v5631_v27 = vadd.f32 %v6398_v8, %v5591_v50  ;;  %v6420_v47 = vadd.f32 %v6419_v45, %v6418_v25  ;;  %v6421_v55 = vpop.f32.mrb[150].mxu0 }
 0x6ec   :  { %v6422_v53 = vpop.f32.mrb[151].mxu0 }
 0x6ed   :  { %v5671_v26 = vadd.f32 %v6420_v47, %v5631_v27 }
 0x6f7   :  { %v5710_v17 = vpop.f32.mrb[120].mxu1 }
 0x6f8   :  { %v5711_v54 = vadd.f32 %v5710_v17, %v5671_v26  ;;  %v6574_v57 = vpop.f32.mrb[121].mxu1 }
 0x6f9   :  { %v5713_v36 = vpop.f32.mrb[122].mxu1 }
 0x6fa   :  { %v5716_v40 = vmax.f32 %v5711_v54, 0.0  ;;  %v6575_v44 = vpop.f32.mrb[123].mxu1 }
 0x6fc   :  { %v5717_v29 = vpack.c.bf16 %v5716_v40, %v5716_v40 }
 0x6fe   :  { %6593 = vmatmul.mubr.bf16.vlgmr.msra.gmra.mrb[152].mxu0 %v5717_v29 }
 0x7d1   :  { %v5823_v51 = vpop.f32.mrb[152].mxu0 }
 0x7d2   :  { %v5824_v6 = vadd.f32 %v6113_v20, %v5823_v51  ;;  %v6594_v2 = vpop.f32.mrb[153].mxu0 }
 0x7d3   :  { %v5826_v9 = vpop.f32.mrb[154].mxu0 }
 0x7d4   :  { %v6595_v12 = vpop.f32.mrb[155].mxu0  ;;  %5830 = vst.msk [vmem:[#allocation6] sm:$0x3] %vm5829_vm2, %v5824_v6 }
 0x7d5   :  { %6823 = shalt.err (!%p6820_p4)
}
 0x7d6   :  { %s6824_s9 = scalar_lea.hbm %s9532_s10, 32 }
 0x7d7   :  { %p6825_p5 = scmp.ne.s32.totalorder %s9532_s10, %s6824_s9  ;;  %p6828_p6 = scmp.lt.u32.totalorder %s6824_s9, %s9532_s10 }
 0x7d9   :  { %p6830_p7 = pnand %p6828_p6, %p6825_p5 }
 0x7db   :  { %6833 = shalt.err (!%p6830_p7)
}
 0x7dc   :  { %5840 = dma.vmem_to_hbm [thread:$0]  %s5838_s4, 32, %s9532_s10, [#allocation7]  }
 0x7dd   :  { %6834 = dma.done.wait [#allocation7], 32  }
 0x7de   :  { %6835 = vsyncadd [#allocation7], 4294967264 }
 0x7df   :  { %5844 = vsyncpa [#allocation7], 1 }

</bundles_post_ra>
